<compile_context>
chip_gen: v7x
topology: tpu7x:2x2x1
jax: 0.10.0
libtpu: 0.0.40
codegen_flags: <defaults>
</compile_context>

<pallas_src>
import math
import functools

import jax
import jax.numpy as jnp
from jax.experimental import pallas as pl
from jax.experimental.pallas import tpu as pltpu

_VMEM = pltpu.MemorySpace.VMEM


def _round_up(x, m):
    return ((x + m - 1) // m) * m


# ---------------- patch embedding: u = x @ W_P + b_P + W_pos (one fused 2D bf16 matmul) ----
def _embed_kernel(x_ref, wp_ref, bp_ref, wpos_ref, u_ref, *, B, Pp):
    D = wp_ref.shape[1]
    u = jnp.dot(x_ref[...].astype(jnp.bfloat16), wp_ref[...],
                preferred_element_type=jnp.float32) + bp_ref[...]        # (B*Pp, D) f32
    u = u.reshape(B, Pp, D) + wpos_ref[...][None]                        # + positional enc
    u_ref[...] = u.reshape(B * Pp, D)


def patch_embed(x2d, wp, bp, wpos, *, B, Pp):
    D = wp.shape[1]
    kern = functools.partial(_embed_kernel, B=B, Pp=Pp)
    return pl.pallas_call(
        kern,
        out_shape=jax.ShapeDtypeStruct((B * Pp, D), jnp.float32),
        in_specs=[pl.BlockSpec(memory_space=_VMEM)] * 4,
        out_specs=pl.BlockSpec(memory_space=_VMEM),
    )(x2d, wp, bp, wpos)


# ---------------- fused TST encoder: all layers in one pallas_call --------------------------
# grid = (n_layers,); activations (x_scr) and residual-attention scores (sc_scr) are carried
# across grid iterations in VMEM scratch.  All big matmuls are 2D bf16 with f32 accumulation.
def _encoder_kernel(u_ref,
                    wqkv_ref, bqkv_ref, wo_ref, bo_ref, g1_ref, be1_ref,
                    w1_ref, b1_ref, w2_ref, b2_ref, g2_ref, be2_ref,
                    out_ref, x_scr, sc_scr,
                    *, n_heads, p_valid, p_pad, eps):
    l = pl.program_id(0)
    BPp, D = x_scr.shape
    H = n_heads
    dk = D // H
    P, Pp = p_valid, p_pad
    B = BPp // Pp

    @pl.when(l == 0)
    def _():
        x_scr[...] = u_ref[...]
        sc_scr[...] = jnp.zeros_like(sc_scr)      # prev=None for the first layer

    x = x_scr[...]                                 # (B*Pp, D) f32
    xb = x.astype(jnp.bfloat16)

    # ---- fused QKV projection: one (B*Pp, D) @ (D, 3D) MXU matmul (scale folded into W_Q) --
    qkv = jnp.dot(xb, wqkv_ref[0], preferred_element_type=jnp.float32) + bqkv_ref[0]

    def split_heads(off):
        # lane-slice each head, tile-aligned reshape, stack on the leading batch axis.
        parts = [qkv[:, off + h * dk: off + (h + 1) * dk].reshape(B, Pp, dk)
                 for h in range(H)]
        return jnp.concatenate(parts, axis=0).astype(jnp.bfloat16)   # (H*B, Pp, dk)

    qh = split_heads(0)
    kh = split_heads(D)
    vh = split_heads(2 * D)

    # ---- scaled dot-product attention with residual scores (kept in VMEM scratch) ----------
    s = jnp.einsum('xpe,xqe->xpq', qh, kh,
                   preferred_element_type=jnp.float32) + sc_scr[...]     # (H*B, Pp, Pp)
    sc_scr[...] = s                                                       # prev for next layer

    if Pp != P:   # mask padded key positions (static branch; no-op when P % 8 == 0)
        kidx = jax.lax.broadcasted_iota(jnp.int32, (H * B, Pp, Pp), 2)
        s = jnp.where(kidx < P, s, -1e30)

    m = jnp.max(s, axis=-1, keepdims=True)
    e = jnp.exp(s - m)
    a = e * pl.reciprocal(jnp.sum(e, axis=-1, keepdims=True), approx=True)

    o = jnp.einsum('xpq,xqe->xpe', a.astype(jnp.bfloat16), vh,
                   preferred_element_type=jnp.float32)                   # (H*B, Pp, dk)

    # ---- output projection: accumulate per-head slices of W_O (avoids lane-dim concat) -----
    attn = bo_ref[0]
    for h in range(H):
        oh = o[h * B:(h + 1) * B].reshape(BPp, dk).astype(jnp.bfloat16)
        attn = attn + jnp.dot(oh, wo_ref[0, h], preferred_element_type=jnp.float32)

    # ---- BatchNorm1d over d_model (training-mode batch stats over the B*P valid rows) ------
    def batchnorm(y, gamma, beta):
        if Pp == P:
            mu = jnp.mean(y, axis=0, keepdims=True)
            var = jnp.mean((y - mu) ** 2, axis=0, keepdims=True)
            return (y - mu) * jax.lax.rsqrt(var + eps) * gamma + beta
        y3 = y.reshape(B, Pp, D)
        msk = (jax.lax.broadcasted_iota(jnp.int32, (B, Pp, 1), 1) < P).astype(jnp.float32)
        inv_cnt = 1.0 / float(B * P)
        mu = jnp.sum(jnp.sum(y3 * msk, axis=1, keepdims=True),
                     axis=0, keepdims=True) * inv_cnt
        var = jnp.sum(jnp.sum(((y3 - mu) ** 2) * msk, axis=1, keepdims=True),
                      axis=0, keepdims=True) * inv_cnt
        y3 = (y3 - mu) * jax.lax.rsqrt(var + eps) * gamma[None] + beta[None]
        return y3.reshape(BPp, D)

    y = batchnorm(x + attn, g1_ref[0], be1_ref[0])

    # ---- position-wise FFN: Linear -> GELU(exact erf) -> Linear (2D bf16 matmuls) ----------
    h1 = jnp.dot(y.astype(jnp.bfloat16), w1_ref[0],
                 preferred_element_type=jnp.float32) + b1_ref[0]
    h1 = 0.5 * h1 * (1.0 + jax.lax.erf(h1 * (1.0 / math.sqrt(2.0))))
    ff = jnp.dot(h1.astype(jnp.bfloat16), w2_ref[0],
                 preferred_element_type=jnp.float32) + b2_ref[0]

    z = batchnorm(y + ff, g2_ref[0], be2_ref[0])

    x_scr[...] = z

    @pl.when(l == pl.num_programs(0) - 1)
    def _():
        out_ref[...] = z


def tst_encoder(u2d, lw, *, n_heads, p_valid, p_pad):
    BPp, D = u2d.shape
    L = lw['wqkv'].shape[0]
    F = lw['w1'].shape[-1]
    H = n_heads
    dk = D // H
    B = BPp // p_pad

    def lspec(*dims):
        zeros = (0,) * len(dims)
        return pl.BlockSpec((1,) + dims, lambda l: (l,) + zeros)

    full2d = pl.BlockSpec((BPp, D), lambda l: (0, 0))

    kern = functools.partial(_encoder_kernel, n_heads=n_heads,
                             p_valid=p_valid, p_pad=p_pad, eps=1e-5)
    return pl.pallas_call(
        kern,
        out_shape=jax.ShapeDtypeStruct((BPp, D), jnp.float32),
        grid=(L,),
        in_specs=[full2d,
                  lspec(D, 3 * D), lspec(1, 3 * D),          # wqkv, bqkv
                  lspec(H, dk, D), lspec(1, D),               # wo (per-head), bo
                  lspec(1, D), lspec(1, D),                   # g1, be1
                  lspec(D, F), lspec(1, F),                   # w1, b1
                  lspec(F, D), lspec(1, D),                   # w2, b2
                  lspec(1, D), lspec(1, D)],                  # g2, be2
        out_specs=full2d,
        scratch_shapes=[pltpu.VMEM((BPp, D), jnp.float32),
                        pltpu.VMEM((H * B, p_pad, p_pad), jnp.float32)],
        compiler_params=pltpu.CompilerParams(dimension_semantics=("arbitrary",)),
    )(u2d, lw['wqkv'], lw['bqkv'], lw['wo'], lw['bo'], lw['g1'], lw['be1'],
      lw['w1'], lw['b1'], lw['w2'], lw['b2'], lw['g2'], lw['be2'])


# ---------------- Flatten_Head (individual=False): flatten + Linear -------------------------
# TODO(synk): target_window < 128 lanes -> masked stores; pad/tile if the head ever matters.
def _head_kernel(x_ref, w_ref, b_ref, o_ref):
    o_ref[...] = (jnp.dot(x_ref[...].astype(jnp.bfloat16), w_ref[...],
                          preferred_element_type=jnp.float32) + b_ref[...])


def flatten_head(x_flat, w, b):
    N = x_flat.shape[0]
    tw = w.shape[1]
    return pl.pallas_call(
        _head_kernel,
        out_shape=jax.ShapeDtypeStruct((N, tw), jnp.float32),
        in_specs=[pl.BlockSpec(memory_space=_VMEM)] * 3,
        out_specs=pl.BlockSpec(memory_space=_VMEM),
    )(x_flat, w, b)


# ------------------------------------ full forward ------------------------------------------
def patchtst_forward(z, params, *, patch_len, stride, n_heads):
    bs, nvars, L = z.shape
    D = params['Wp'].shape[1]
    P = params['Wpos'].shape[0]                                   # patch_num
    Pp = _round_up(P, 8)                                          # tile-aligned patch axis
    B = bs * nvars
    eps = 1e-5

    # RevIN 'norm' (per-series time statistics; plain-JAX elementwise glue)
    zt = jnp.transpose(z, (0, 2, 1))                              # [bs, L, nvars]
    mean = jnp.mean(zt, axis=1, keepdims=True)
    stdev = jnp.sqrt(jnp.var(zt, axis=1, keepdims=True) + eps)
    zt = (zt - mean) / stdev
    zt = zt * params['revin_w'] + params['revin_b']
    zn = jnp.transpose(zt, (0, 2, 1))                             # [bs, nvars, L]

    # patching (torch.unfold(-1, patch_len, stride)) + zero-pad patch axis to Pp
    idx = jnp.arange(P)[:, None] * stride + jnp.arange(patch_len)[None, :]
    patches = zn[:, :, idx]                                       # [bs, nvars, P, patch_len]
    x = patches.reshape(B, P, patch_len).astype(jnp.float32)
    wpos = params['Wpos']
    if Pp != P:
        x = jnp.pad(x, ((0, 0), (0, Pp - P), (0, 0)))
        wpos = jnp.pad(wpos, ((0, Pp - P), (0, 0)))
    x2d = x.reshape(B * Pp, patch_len)

    # patch embedding + positional encoding (Pallas)
    u = patch_embed(x2d, params['Wp'], params['bp'], wpos, B=B, Pp=Pp)

    # fused TST encoder with residual attention (scores carried in VMEM scratch)
    enc = tst_encoder(u, params['layers'], n_heads=n_heads, p_valid=P, p_pad=Pp)

    # flatten head (head transpose folded into Wh at init, so native (P, D) row order is used)
    zz = enc.reshape(B, Pp, D)[:, :P, :]
    flat = zz.reshape(B, P * D)
    out = flatten_head(flat, params['Wh'], params['bh'])
    tw = params['Wh'].shape[1]
    out = out.reshape(bs, nvars, tw)

    # RevIN 'denorm'
    ot = jnp.transpose(out, (0, 2, 1))                            # [bs, tw, nvars]
    ot = (ot - params['revin_b']) / (params['revin_w'] + eps * eps)
    ot = ot * stdev + mean
    return jnp.transpose(ot, (0, 2, 1))                           # [bs, nvars, target_window]


# ---------------------------- deterministic parameter init ----------------------------------
def init_params(key, *, c_in, patch_len, patch_num, d_model, n_heads, d_ff,
                n_layers, target_window):
    dk = d_model // n_heads
    scale = dk ** -0.5
    keys = iter(jax.random.split(key, 12 * n_layers + 8))

    def w(shape, s=0.05):
        return jax.random.normal(next(keys), shape, jnp.float32) * s

    wqkv, bqkv, wo, bo, g1, be1 = [], [], [], [], [], []
    w1, b1, w2, b2, g2, be2 = [], [], [], [], [], []
    for _ in range(n_layers):
        wq, wk, wv = w((d_model, d_model)), w((d_model, d_model)), w((d_model, d_model))
        bq, bk, bv = w((1, d_model)), w((1, d_model)), w((1, d_model))
        # fold the attention scale (dk^-0.5) into W_Q / b_Q; fuse QKV along the output axis
        wqkv.append(jnp.concatenate([wq * scale, wk, wv], axis=1))
        bqkv.append(jnp.concatenate([bq * scale, bk, bv], axis=1))
        wo_full = w((d_model, d_model))                           # to_out weight
        wo.append(wo_full.reshape(n_heads, dk, d_model))          # per-head row slices
        bo.append(w((1, d_model)))
        g1.append(jnp.ones((1, d_model), jnp.float32)); be1.append(jnp.zeros((1, d_model), jnp.float32))
        w1.append(w((d_model, d_ff))); b1.append(w((1, d_ff)))
        w2.append(w((d_ff, d_model))); b2.append(w((1, d_model)))
        g2.append(jnp.ones((1, d_model), jnp.float32)); be2.append(jnp.zeros((1, d_model), jnp.float32))

    layers = {
        'wqkv': jnp.stack(wqkv).astype(jnp.bfloat16), 'bqkv': jnp.stack(bqkv),
        'wo': jnp.stack(wo).astype(jnp.bfloat16), 'bo': jnp.stack(bo),
        'g1': jnp.stack(g1), 'be1': jnp.stack(be1),
        'w1': jnp.stack(w1).astype(jnp.bfloat16), 'b1': jnp.stack(b1),
        'w2': jnp.stack(w2).astype(jnp.bfloat16), 'b2': jnp.stack(b2),
        'g2': jnp.stack(g2), 'be2': jnp.stack(be2),
    }

    # Flatten_Head linear is defined on the PyTorch (d_model-major) flatten order; permute its
    # rows once at init so the kernel can consume the encoder output in native (P, D) order.
    wh_torch = w((d_model * patch_num, target_window))
    wh_native = jnp.transpose(wh_torch.reshape(d_model, patch_num, target_window),
                              (1, 0, 2)).reshape(patch_num * d_model, target_window)

    return {
        'revin_w': jnp.ones((c_in,), jnp.float32),                # RevIN affine defaults
        'revin_b': jnp.zeros((c_in,), jnp.float32),
        'Wp': w((patch_len, d_model)).astype(jnp.bfloat16),       # W_P (in -> out)
        'bp': w((1, d_model)),
        # pe='zeros', learn_pe=True -> uniform(-0.02, 0.02) init
        'Wpos': jax.random.uniform(next(keys), (patch_num, d_model), jnp.float32, -0.02, 0.02),
        'Wh': wh_native.astype(jnp.bfloat16),
        'bh': w((1, target_window)),
        'layers': layers,
    }


if __name__ == "__main__":
    bs, c_in = 2, 4
    context_window, target_window = 32, 16
    patch_len, stride = 8, 4
    patch_num = (context_window - patch_len) // stride + 1        # padding_patch=None -> 7
    d_model, n_heads, d_ff, n_layers = 32, 4, 64, 2

    key = jax.random.PRNGKey(0)
    kx, kp = jax.random.split(key)
    z = jax.random.normal(kx, (bs, c_in, context_window), jnp.float32)
    params = init_params(kp, c_in=c_in, patch_len=patch_len, patch_num=patch_num,
                         d_model=d_model, n_heads=n_heads, d_ff=d_ff,
                         n_layers=n_layers, target_window=target_window)

    fwd = jax.jit(functools.partial(patchtst_forward, patch_len=patch_len,
                                    stride=stride, n_heads=n_heads))
    out = jax.block_until_ready(fwd(z, params))
    assert out.shape == (bs, c_in, target_window), out.shape
    assert bool(jnp.all(jnp.isfinite(out)))
    print("KERNEL_OK")
</pallas_src>

<mosaic_0001>
module attributes {stable_mosaic.version = 11 : i64} {
  func.func @_embed_kernel(%arg0: memref<64x8xf32, #tpu.memory_space<vmem>>, %arg1: memref<8x32xbf16, #tpu.memory_space<vmem>>, %arg2: memref<1x32xf32, #tpu.memory_space<vmem>>, %arg3: memref<8x32xf32, #tpu.memory_space<vmem>>, %arg4: memref<64x32xf32, #tpu.memory_space<vmem>>) attributes {dimension_semantics = [], scalar_prefetch = 0 : i64, scratch_operands = 0 : i64, tpu.core_type = #tpu.core_type<tc>} {
    %c0 = arith.constant 0 : index
    %c0_0 = arith.constant 0 : index
    %0 = vector.load %arg0[%c0, %c0_0] : memref<64x8xf32, #tpu.memory_space<vmem>>, vector<64x8xf32>
    %1 = arith.truncf %0 : vector<64x8xf32> to vector<64x8xbf16>
    %c0_1 = arith.constant 0 : index
    %c0_2 = arith.constant 0 : index
    %2 = vector.load %arg1[%c0_1, %c0_2] : memref<8x32xbf16, #tpu.memory_space<vmem>>, vector<8x32xbf16>
    %cst = arith.constant dense<0.000000e+00> : vector<64x32xf32>
    %3 = tpu.matmul %1, %2, %cst {dimension_numbers = #tpu.dot_dimension_numbers<[1], [0], [0], [1], [0, 0, 1, 1], [], []>} : vector<64x8xbf16>, vector<8x32xbf16>, vector<64x32xf32> -> vector<64x32xf32>
    %c0_3 = arith.constant 0 : index
    %c0_4 = arith.constant 0 : index
    %4 = vector.load %arg2[%c0_3, %c0_4] : memref<1x32xf32, #tpu.memory_space<vmem>>, vector<1x32xf32>
    %5 = vector.broadcast %4 : vector<1x32xf32> to vector<64x32xf32>
    %6 = arith.addf %3, %5 : vector<64x32xf32>
    %7 = vector.shape_cast %6 : vector<64x32xf32> to vector<8x8x32xf32>
    %c0_5 = arith.constant 0 : index
    %c0_6 = arith.constant 0 : index
    %8 = vector.load %arg3[%c0_5, %c0_6] : memref<8x32xf32, #tpu.memory_space<vmem>>, vector<8x32xf32>
    %9 = vector.shape_cast %8 : vector<8x32xf32> to vector<1x8x32xf32>
    %10 = vector.broadcast %9 : vector<1x8x32xf32> to vector<8x8x32xf32>
    %11 = arith.addf %7, %10 : vector<8x8x32xf32>
    %12 = vector.shape_cast %11 : vector<8x8x32xf32> to vector<64x32xf32>
    %c0_7 = arith.constant 0 : index
    %c0_8 = arith.constant 0 : index
    %13 = vector.load %arg4[%c0_7, %c0_8] : memref<64x32xf32, #tpu.memory_space<vmem>>, vector<64x32xf32>
    tpu.vector_store %arg4[%c0_7, %c0_8], %12 {strides = array<i32>} : memref<64x32xf32, #tpu.memory_space<vmem>>, vector<64x32xf32>,
    return
  }
}

module attributes {stable_mosaic.version = 11 : i64} {
  func.func @_encoder_kernel(%arg0: i32, %arg1: memref<64x32xf32, #tpu.memory_space<vmem>>, %arg2: memref<1x32x96xbf16, #tpu.memory_space<vmem>>, %arg3: memref<1x1x96xf32, #tpu.memory_space<vmem>>, %arg4: memref<1x4x8x32xbf16, #tpu.memory_space<vmem>>, %arg5: memref<1x1x32xf32, #tpu.memory_space<vmem>>, %arg6: memref<1x1x32xf32, #tpu.memory_space<vmem>>, %arg7: memref<1x1x32xf32, #tpu.memory_space<vmem>>, %arg8: memref<1x32x64xbf16, #tpu.memory_space<vmem>>, %arg9: memref<1x1x64xf32, #tpu.memory_space<vmem>>, %arg10: memref<1x64x32xbf16, #tpu.memory_space<vmem>>, %arg11: memref<1x1x32xf32, #tpu.memory_space<vmem>>, %arg12: memref<1x1x32xf32, #tpu.memory_space<vmem>>, %arg13: memref<1x1x32xf32, #tpu.memory_space<vmem>>, %arg14: memref<64x32xf32, #tpu.memory_space<vmem>>, %arg15: memref<64x32xf32, #tpu.memory_space<vmem>>, %arg16: memref<32x8x8xf32, #tpu.memory_space<vmem>>) attributes {dimension_semantics = [#tpu.dimension_semantics<arbitrary>], iteration_bounds = array<i64: 2>, scalar_prefetch = 0 : i64, scratch_operands = 2 : i64, tpu.core_type = #tpu.core_type<tc>, window_params = [{pipeline_mode = #tpu.pipeline_mode<synchronous>, transform_indices = @transform_0, window_bounds = array<i64: 64, 32>}, {transform_indices = @transform_1, window_bounds = array<i64: 1, 32, 96>}, {transform_indices = @transform_2, window_bounds = array<i64: 1, 1, 96>}, {transform_indices = @transform_3, window_bounds = array<i64: 1, 4, 8, 32>}, {transform_indices = @transform_4, window_bounds = array<i64: 1, 1, 32>}, {transform_indices = @transform_5, window_bounds = array<i64: 1, 1, 32>}, {transform_indices = @transform_6, window_bounds = array<i64: 1, 1, 32>}, {transform_indices = @transform_7, window_bounds = array<i64: 1, 32, 64>}, {transform_indices = @transform_8, window_bounds = array<i64: 1, 1, 64>}, {transform_indices = @transform_9, window_bounds = array<i64: 1, 64, 32>}, {transform_indices = @transform_10, window_bounds = array<i64: 1, 1, 32>}, {transform_indices = @transform_11, window_bounds = array<i64: 1, 1, 32>}, {transform_indices = @transform_12, window_bounds = array<i64: 1, 1, 32>}, {pipeline_mode = #tpu.pipeline_mode<synchronous>, transform_indices = @transform_13, window_bounds = array<i64: 64, 32>}]} {
    %c0_i32 = arith.constant 0 : i32
    %0 = arith.cmpi eq, %arg0, %c0_i32 : i32
    %1 = arith.extui %0 : i1 to i32
    %c0_i32_0 = arith.constant 0 : i32
    %2 = arith.cmpi ne, %1, %c0_i32_0 : i32
    scf.if %2 {
      %c0_87 = arith.constant 0 : index
      %c0_88 = arith.constant 0 : index
      %210 = vector.load %arg1[%c0_87, %c0_88] : memref<64x32xf32, #tpu.memory_space<vmem>>, vector<64x32xf32>
      %c0_89 = arith.constant 0 : index
      %c0_90 = arith.constant 0 : index
      %211 = vector.load %arg15[%c0_89, %c0_90] : memref<64x32xf32, #tpu.memory_space<vmem>>, vector<64x32xf32>
      tpu.vector_store %arg15[%c0_89, %c0_90], %210 {strides = array<i32>} : memref<64x32xf32, #tpu.memory_space<vmem>>, vector<64x32xf32>,
      %cst_91 = arith.constant 0.000000e+00 : f32
      %212 = vector.broadcast %cst_91 : f32 to vector<32x8x8xf32>
      %c0_92 = arith.constant 0 : index
      %c0_93 = arith.constant 0 : index
      %c0_94 = arith.constant 0 : index
      %213 = vector.load %arg16[%c0_92, %c0_93, %c0_94] : memref<32x8x8xf32, #tpu.memory_space<vmem>>, vector<32x8x8xf32>
      tpu.vector_store %arg16[%c0_92, %c0_93, %c0_94], %212 {strides = array<i32>} : memref<32x8x8xf32, #tpu.memory_space<vmem>>, vector<32x8x8xf32>,
    } else {
    }
    %c0 = arith.constant 0 : index
    %c0_1 = arith.constant 0 : index
    %3 = vector.load %arg15[%c0, %c0_1] : memref<64x32xf32, #tpu.memory_space<vmem>>, vector<64x32xf32>
    %4 = arith.truncf %3 : vector<64x32xf32> to vector<64x32xbf16>
    %c0_2 = arith.constant 0 : index
    %c0_3 = arith.constant 0 : index
    %c0_4 = arith.constant 0 : index
    %5 = vector.load %arg2[%c0_2, %c0_3, %c0_4] : memref<1x32x96xbf16, #tpu.memory_space<vmem>>, vector<1x32x96xbf16>
    %6 = vector.shape_cast %5 : vector<1x32x96xbf16> to vector<32x96xbf16>
    %cst = arith.constant dense<0.000000e+00> : vector<64x96xf32>
    %7 = tpu.matmul %4, %6, %cst {dimension_numbers = #tpu.dot_dimension_numbers<[1], [0], [0], [1], [0, 0, 1, 1], [], []>} : vector<64x32xbf16>, vector<32x96xbf16>, vector<64x96xf32> -> vector<64x96xf32>
    %c0_5 = arith.constant 0 : index
    %c0_6 = arith.constant 0 : index
    %c0_7 = arith.constant 0 : index
    %8 = vector.load %arg3[%c0_5, %c0_6, %c0_7] : memref<1x1x96xf32, #tpu.memory_space<vmem>>, vector<1x1x96xf32>
    %9 = vector.shape_cast %8 : vector<1x1x96xf32> to vector<1x96xf32>
    %10 = vector.broadcast %9 : vector<1x96xf32> to vector<64x96xf32>
    %11 = arith.addf %7, %10 : vector<64x96xf32>
    %12 = vector.extract_strided_slice %11 {offsets = [0, 0], sizes = [64, 8], strides = [1, 1]} : vector<64x96xf32> to vector<64x8xf32>
    %13 = vector.shape_cast %12 : vector<64x8xf32> to vector<8x8x8xf32>
    %14 = vector.extract_strided_slice %11 {offsets = [0, 8], sizes = [64, 8], strides = [1, 1]} : vector<64x96xf32> to vector<64x8xf32>
    %15 = vector.shape_cast %14 : vector<64x8xf32> to vector<8x8x8xf32>
    %16 = vector.extract_strided_slice %11 {offsets = [0, 16], sizes = [64, 8], strides = [1, 1]} : vector<64x96xf32> to vector<64x8xf32>
    %17 = vector.shape_cast %16 : vector<64x8xf32> to vector<8x8x8xf32>
    %18 = vector.extract_strided_slice %11 {offsets = [0, 24], sizes = [64, 8], strides = [1, 1]} : vector<64x96xf32> to vector<64x8xf32>
    %19 = vector.shape_cast %18 : vector<64x8xf32> to vector<8x8x8xf32>
    %20 = tpu.concatenate %13, %15, %17, %19 in 0 : vector<8x8x8xf32>, vector<8x8x8xf32>, vector<8x8x8xf32>, vector<8x8x8xf32> -> vector<32x8x8xf32>
    %21 = arith.truncf %20 : vector<32x8x8xf32> to vector<32x8x8xbf16>
    %22 = vector.extract_strided_slice %11 {offsets = [0, 32], sizes = [64, 8], strides = [1, 1]} : vector<64x96xf32> to vector<64x8xf32>
    %23 = vector.shape_cast %22 : vector<64x8xf32> to vector<8x8x8xf32>
    %24 = vector.extract_strided_slice %11 {offsets = [0, 40], sizes = [64, 8], strides = [1, 1]} : vector<64x96xf32> to vector<64x8xf32>
    %25 = vector.shape_cast %24 : vector<64x8xf32> to vector<8x8x8xf32>
    %26 = vector.extract_strided_slice %11 {offsets = [0, 48], sizes = [64, 8], strides = [1, 1]} : vector<64x96xf32> to vector<64x8xf32>
    %27 = vector.shape_cast %26 : vector<64x8xf32> to vector<8x8x8xf32>
    %28 = vector.extract_strided_slice %11 {offsets = [0, 56], sizes = [64, 8], strides = [1, 1]} : vector<64x96xf32> to vector<64x8xf32>
    %29 = vector.shape_cast %28 : vector<64x8xf32> to vector<8x8x8xf32>
    %30 = tpu.concatenate %23, %25, %27, %29 in 0 : vector<8x8x8xf32>, vector<8x8x8xf32>, vector<8x8x8xf32>, vector<8x8x8xf32> -> vector<32x8x8xf32>
    %31 = arith.truncf %30 : vector<32x8x8xf32> to vector<32x8x8xbf16>
    %32 = vector.extract_strided_slice %11 {offsets = [0, 64], sizes = [64, 8], strides = [1, 1]} : vector<64x96xf32> to vector<64x8xf32>
    %33 = vector.shape_cast %32 : vector<64x8xf32> to vector<8x8x8xf32>
    %34 = vector.extract_strided_slice %11 {offsets = [0, 72], sizes = [64, 8], strides = [1, 1]} : vector<64x96xf32> to vector<64x8xf32>
    %35 = vector.shape_cast %34 : vector<64x8xf32> to vector<8x8x8xf32>
    %36 = vector.extract_strided_slice %11 {offsets = [0, 80], sizes = [64, 8], strides = [1, 1]} : vector<64x96xf32> to vector<64x8xf32>
    %37 = vector.shape_cast %36 : vector<64x8xf32> to vector<8x8x8xf32>
    %38 = vector.extract_strided_slice %11 {offsets = [0, 88], sizes = [64, 8], strides = [1, 1]} : vector<64x96xf32> to vector<64x8xf32>
    %39 = vector.shape_cast %38 : vector<64x8xf32> to vector<8x8x8xf32>
    %40 = tpu.concatenate %33, %35, %37, %39 in 0 : vector<8x8x8xf32>, vector<8x8x8xf32>, vector<8x8x8xf32>, vector<8x8x8xf32> -> vector<32x8x8xf32>
    %41 = arith.truncf %40 : vector<32x8x8xf32> to vector<32x8x8xbf16>
    "tpu.trace_start"() <{level = 10 : i32, message = "xpe,xqe->xpq"}> : () -> ()
    %cst_8 = arith.constant dense<0.000000e+00> : vector<32x8x8xf32>
    %42 = tpu.matmul %21, %31, %cst_8 {dimension_numbers = #tpu.dot_dimension_numbers<[2], [2], [1], [1], [0, 0, 0, 1, 1, 1], [0], [0]>} : vector<32x8x8xbf16>, vector<32x8x8xbf16>, vector<32x8x8xf32> -> vector<32x8x8xf32>
    "tpu.trace_stop"() : () -> ()
    %c0_9 = arith.constant 0 : index
    %c0_10 = arith.constant 0 : index
    %c0_11 = arith.constant 0 : index
    %43 = vector.load %arg16[%c0_9, %c0_10, %c0_11] : memref<32x8x8xf32, #tpu.memory_space<vmem>>, vector<32x8x8xf32>
    %44 = arith.addf %42, %43 : vector<32x8x8xf32>
    %c0_12 = arith.constant 0 : index
    %c0_13 = arith.constant 0 : index
    %c0_14 = arith.constant 0 : index
    %45 = vector.load %arg16[%c0_12, %c0_13, %c0_14] : memref<32x8x8xf32, #tpu.memory_space<vmem>>, vector<32x8x8xf32>
    tpu.vector_store %arg16[%c0_12, %c0_13, %c0_14], %44 {strides = array<i32>} : memref<32x8x8xf32, #tpu.memory_space<vmem>>, vector<32x8x8xf32>,
    %46 = tpu.iota {dimensions = array<i32: 2>} : vector<32x8x8xi32>
    %c7_i32 = arith.constant 7 : i32
    %47 = vector.broadcast %c7_i32 : i32 to vector<32x8x8xi32>
    %48 = arith.cmpi slt, %46, %47 : vector<32x8x8xi32>
    %cst_15 = arith.constant -1.000000e+30 : f32
    %49 = vector.broadcast %cst_15 : f32 to vector<32x8x8xf32>
    %50 = arith.select %48, %44, %49 : vector<32x8x8xi1>, vector<32x8x8xf32>
    %cst_16 = arith.constant dense<0xFF800000> : vector<32x8xf32>
    %51 = vector.multi_reduction <maximumf>, %50, %cst_16 [2] : vector<32x8x8xf32> to vector<32x8xf32>
    %52 = vector.shape_cast %51 : vector<32x8xf32> to vector<32x8x1xf32>
    %53 = vector.broadcast %52 : vector<32x8x1xf32> to vector<32x8x8xf32>
    %54 = arith.subf %50, %53 : vector<32x8x8xf32>
    %55 = math.exp %54 : vector<32x8x8xf32>
    %cst_17 = arith.constant dense<0.000000e+00> : vector<32x8xf32>
    %56 = vector.multi_reduction <add>, %55, %cst_17 [2] : vector<32x8x8xf32> to vector<32x8xf32>
    %57 = vector.shape_cast %56 : vector<32x8xf32> to vector<32x8x1xf32>
    %58 = tpu.reciprocal %57 {approx = true} : vector<32x8x1xf32> -> vector<32x8x1xf32>
    %59 = vector.broadcast %58 : vector<32x8x1xf32> to vector<32x8x8xf32>
    %60 = arith.mulf %55, %59 : vector<32x8x8xf32>
    %61 = arith.truncf %60 : vector<32x8x8xf32> to vector<32x8x8xbf16>
    "tpu.trace_start"() <{level = 10 : i32, message = "xpq,xqe->xpe"}> : () -> ()
    %cst_18 = arith.constant dense<0.000000e+00> : vector<32x8x8xf32>
    %62 = tpu.matmul %61, %41, %cst_18 {dimension_numbers = #tpu.dot_dimension_numbers<[2], [1], [1], [2], [0, 0, 0, 1, 1, 2], [0], [0]>} : vector<32x8x8xbf16>, vector<32x8x8xbf16>, vector<32x8x8xf32> -> vector<32x8x8xf32>
    "tpu.trace_stop"() : () -> ()
    %c0_19 = arith.constant 0 : index
    %c0_20 = arith.constant 0 : index
    %c0_21 = arith.constant 0 : index
    %63 = vector.load %arg5[%c0_19, %c0_20, %c0_21] : memref<1x1x32xf32, #tpu.memory_space<vmem>>, vector<1x1x32xf32>
    %64 = vector.shape_cast %63 : vector<1x1x32xf32> to vector<1x32xf32>
    %65 = vector.extract_strided_slice %62 {offsets = [0, 0, 0], sizes = [8, 8, 8], strides = [1, 1, 1]} : vector<32x8x8xf32> to vector<8x8x8xf32>
    %66 = vector.shape_cast %65 : vector<8x8x8xf32> to vector<64x8xf32>
    %67 = arith.truncf %66 : vector<64x8xf32> to vector<64x8xbf16>
    %c0_22 = arith.constant 0 : index
    %c0_23 = arith.constant 0 : index
    %c0_24 = arith.constant 0 : index
    %c0_25 = arith.constant 0 : index
    %68 = vector.load %arg4[%c0_22, %c0_23, %c0_24, %c0_25] : memref<1x4x8x32xbf16, #tpu.memory_space<vmem>>, vector<1x1x8x32xbf16>
    %69 = vector.shape_cast %68 : vector<1x1x8x32xbf16> to vector<8x32xbf16>
    %cst_26 = arith.constant dense<0.000000e+00> : vector<64x32xf32>
    %70 = tpu.matmul %67, %69, %cst_26 {dimension_numbers = #tpu.dot_dimension_numbers<[1], [0], [0], [1], [0, 0, 1, 1], [], []>} : vector<64x8xbf16>, vector<8x32xbf16>, vector<64x32xf32> -> vector<64x32xf32>
    %71 = vector.broadcast %64 : vector<1x32xf32> to vector<64x32xf32>
    %72 = arith.addf %71, %70 : vector<64x32xf32>
    %73 = vector.extract_strided_slice %62 {offsets = [8, 0, 0], sizes = [8, 8, 8], strides = [1, 1, 1]} : vector<32x8x8xf32> to vector<8x8x8xf32>
    %74 = vector.shape_cast %73 : vector<8x8x8xf32> to vector<64x8xf32>
    %75 = arith.truncf %74 : vector<64x8xf32> to vector<64x8xbf16>
    %c0_27 = arith.constant 0 : index
    %c1 = arith.constant 1 : index
    %c0_28 = arith.constant 0 : index
    %c0_29 = arith.constant 0 : index
    %76 = vector.load %arg4[%c0_27, %c1, %c0_28, %c0_29] : memref<1x4x8x32xbf16, #tpu.memory_space<vmem>>, vector<1x1x8x32xbf16>
    %77 = vector.shape_cast %76 : vector<1x1x8x32xbf16> to vector<8x32xbf16>
    %cst_30 = arith.constant dense<0.000000e+00> : vector<64x32xf32>
    %78 = tpu.matmul %75, %77, %cst_30 {dimension_numbers = #tpu.dot_dimension_numbers<[1], [0], [0], [1], [0, 0, 1, 1], [], []>} : vector<64x8xbf16>, vector<8x32xbf16>, vector<64x32xf32> -> vector<64x32xf32>
    %79 = arith.addf %72, %78 : vector<64x32xf32>
    %80 = vector.extract_strided_slice %62 {offsets = [16, 0, 0], sizes = [8, 8, 8], strides = [1, 1, 1]} : vector<32x8x8xf32> to vector<8x8x8xf32>
    %81 = vector.shape_cast %80 : vector<8x8x8xf32> to vector<64x8xf32>
    %82 = arith.truncf %81 : vector<64x8xf32> to vector<64x8xbf16>
    %c0_31 = arith.constant 0 : index
    %c2 = arith.constant 2 : index
    %c0_32 = arith.constant 0 : index
    %c0_33 = arith.constant 0 : index
    %83 = vector.load %arg4[%c0_31, %c2, %c0_32, %c0_33] : memref<1x4x8x32xbf16, #tpu.memory_space<vmem>>, vector<1x1x8x32xbf16>
    %84 = vector.shape_cast %83 : vector<1x1x8x32xbf16> to vector<8x32xbf16>
    %cst_34 = arith.constant dense<0.000000e+00> : vector<64x32xf32>
    %85 = tpu.matmul %82, %84, %cst_34 {dimension_numbers = #tpu.dot_dimension_numbers<[1], [0], [0], [1], [0, 0, 1, 1], [], []>} : vector<64x8xbf16>, vector<8x32xbf16>, vector<64x32xf32> -> vector<64x32xf32>
    %86 = arith.addf %79, %85 : vector<64x32xf32>
    %87 = vector.extract_strided_slice %62 {offsets = [24, 0, 0], sizes = [8, 8, 8], strides = [1, 1, 1]} : vector<32x8x8xf32> to vector<8x8x8xf32>
    %88 = vector.shape_cast %87 : vector<8x8x8xf32> to vector<64x8xf32>
    %89 = arith.truncf %88 : vector<64x8xf32> to vector<64x8xbf16>
    %c0_35 = arith.constant 0 : index
    %c3 = arith.constant 3 : index
    %c0_36 = arith.constant 0 : index
    %c0_37 = arith.constant 0 : index
    %90 = vector.load %arg4[%c0_35, %c3, %c0_36, %c0_37] : memref<1x4x8x32xbf16, #tpu.memory_space<vmem>>, vector<1x1x8x32xbf16>
    %91 = vector.shape_cast %90 : vector<1x1x8x32xbf16> to vector<8x32xbf16>
    %cst_38 = arith.constant dense<0.000000e+00> : vector<64x32xf32>
    %92 = tpu.matmul %89, %91, %cst_38 {dimension_numbers = #tpu.dot_dimension_numbers<[1], [0], [0], [1], [0, 0, 1, 1], [], []>} : vector<64x8xbf16>, vector<8x32xbf16>, vector<64x32xf32> -> vector<64x32xf32>
    %93 = arith.addf %86, %92 : vector<64x32xf32>
    %94 = arith.addf %3, %93 : vector<64x32xf32>
    %c0_39 = arith.constant 0 : index
    %c0_40 = arith.constant 0 : index
    %c0_41 = arith.constant 0 : index
    %95 = vector.load %arg6[%c0_39, %c0_40, %c0_41] : memref<1x1x32xf32, #tpu.memory_space<vmem>>, vector<1x1x32xf32>
    %96 = vector.shape_cast %95 : vector<1x1x32xf32> to vector<1x32xf32>
    %c0_42 = arith.constant 0 : index
    %c0_43 = arith.constant 0 : index
    %c0_44 = arith.constant 0 : index
    %97 = vector.load %arg7[%c0_42, %c0_43, %c0_44] : memref<1x1x32xf32, #tpu.memory_space<vmem>>, vector<1x1x32xf32>
    %98 = vector.shape_cast %97 : vector<1x1x32xf32> to vector<1x32xf32>
    %99 = vector.shape_cast %94 : vector<64x32xf32> to vector<8x8x32xf32>
    %100 = tpu.iota {dimensions = array<i32: 1>} : vector<8x8x1xi32>
    %c7_i32_45 = arith.constant 7 : i32
    %101 = vector.broadcast %c7_i32_45 : i32 to vector<8x8x1xi32>
    %102 = arith.cmpi slt, %100, %101 : vector<8x8x1xi32>
    %103 = arith.extui %102 : vector<8x8x1xi1> to vector<8x8x1xi32>
    %104 = arith.sitofp %103 : vector<8x8x1xi32> to vector<8x8x1xf32>
    %105 = vector.broadcast %104 : vector<8x8x1xf32> to vector<8x8x32xf32>
    %106 = arith.mulf %99, %105 : vector<8x8x32xf32>
    %cst_46 = arith.constant dense<0.000000e+00> : vector<8x32xf32>
    %107 = vector.multi_reduction <add>, %106, %cst_46 [1] : vector<8x8x32xf32> to vector<8x32xf32>
    %108 = vector.shape_cast %107 : vector<8x32xf32> to vector<8x1x32xf32>
    %cst_47 = arith.constant dense<0.000000e+00> : vector<1x32xf32>
    %109 = vector.multi_reduction <add>, %108, %cst_47 [0] : vector<8x1x32xf32> to vector<1x32xf32>
    %110 = vector.shape_cast %109 : vector<1x32xf32> to vector<1x1x32xf32>
    %cst_48 = arith.constant 0.0178571437 : f32
    %111 = vector.broadcast %cst_48 : f32 to vector<1x1x32xf32>
    %112 = arith.mulf %110, %111 : vector<1x1x32xf32>
    %113 = vector.broadcast %112 : vector<1x1x32xf32> to vector<8x8x32xf32>
    %114 = arith.subf %99, %113 : vector<8x8x32xf32>
    %115 = arith.mulf %114, %114 : vector<8x8x32xf32>
    %116 = vector.broadcast %104 : vector<8x8x1xf32> to vector<8x8x32xf32>
    %117 = arith.mulf %115, %116 : vector<8x8x32xf32>
    %cst_49 = arith.constant dense<0.000000e+00> : vector<8x32xf32>
    %118 = vector.multi_reduction <add>, %117, %cst_49 [1] : vector<8x8x32xf32> to vector<8x32xf32>
    %119 = vector.shape_cast %118 : vector<8x32xf32> to vector<8x1x32xf32>
    %cst_50 = arith.constant dense<0.000000e+00> : vector<1x32xf32>
    %120 = vector.multi_reduction <add>, %119, %cst_50 [0] : vector<8x1x32xf32> to vector<1x32xf32>
    %121 = vector.shape_cast %120 : vector<1x32xf32> to vector<1x1x32xf32>
    %cst_51 = arith.constant 0.0178571437 : f32
    %122 = vector.broadcast %cst_51 : f32 to vector<1x1x32xf32>
    %123 = arith.mulf %121, %122 : vector<1x1x32xf32>
    %124 = vector.broadcast %112 : vector<1x1x32xf32> to vector<8x8x32xf32>
    %125 = arith.subf %99, %124 : vector<8x8x32xf32>
    %cst_52 = arith.constant 9.99999974E-6 : f32
    %126 = vector.broadcast %cst_52 : f32 to vector<1x1x32xf32>
    %127 = arith.addf %123, %126 : vector<1x1x32xf32>
    %128 = math.rsqrt %127 : vector<1x1x32xf32>
    %129 = vector.broadcast %128 : vector<1x1x32xf32> to vector<8x8x32xf32>
    %130 = arith.mulf %125, %129 : vector<8x8x32xf32>
    %131 = vector.shape_cast %96 : vector<1x32xf32> to vector<1x1x32xf32>
    %132 = vector.broadcast %131 : vector<1x1x32xf32> to vector<8x8x32xf32>
    %133 = arith.mulf %130, %132 : vector<8x8x32xf32>
    %134 = vector.shape_cast %98 : vector<1x32xf32> to vector<1x1x32xf32>
    %135 = vector.broadcast %134 : vector<1x1x32xf32> to vector<8x8x32xf32>
    %136 = arith.addf %133, %135 : vector<8x8x32xf32>
    %137 = vector.shape_cast %136 : vector<8x8x32xf32> to vector<64x32xf32>
    %138 = arith.truncf %137 : vector<64x32xf32> to vector<64x32xbf16>
    %c0_53 = arith.constant 0 : index
    %c0_54 = arith.constant 0 : index
    %c0_55 = arith.constant 0 : index
    %139 = vector.load %arg8[%c0_53, %c0_54, %c0_55] : memref<1x32x64xbf16, #tpu.memory_space<vmem>>, vector<1x32x64xbf16>
    %140 = vector.shape_cast %139 : vector<1x32x64xbf16> to vector<32x64xbf16>
    %cst_56 = arith.constant dense<0.000000e+00> : vector<64x64xf32>
    %141 = tpu.matmul %138, %140, %cst_56 {dimension_numbers = #tpu.dot_dimension_numbers<[1], [0], [0], [1], [0, 0, 1, 1], [], []>} : vector<64x32xbf16>, vector<32x64xbf16>, vector<64x64xf32> -> vector<64x64xf32>
    %c0_57 = arith.constant 0 : index
    %c0_58 = arith.constant 0 : index
    %c0_59 = arith.constant 0 : index
    %142 = vector.load %arg9[%c0_57, %c0_58, %c0_59] : memref<1x1x64xf32, #tpu.memory_space<vmem>>, vector<1x1x64xf32>
    %143 = vector.shape_cast %142 : vector<1x1x64xf32> to vector<1x64xf32>
    %144 = vector.broadcast %143 : vector<1x64xf32> to vector<64x64xf32>
    %145 = arith.addf %141, %144 : vector<64x64xf32>
    %cst_60 = arith.constant 5.000000e-01 : f32
    %146 = vector.broadcast %cst_60 : f32 to vector<64x64xf32>
    %147 = arith.mulf %146, %145 : vector<64x64xf32>
    %cst_61 = arith.constant 0.707106769 : f32
    %148 = vector.broadcast %cst_61 : f32 to vector<64x64xf32>
    %149 = arith.mulf %145, %148 : vector<64x64xf32>
    %150 = math.erf %149 : vector<64x64xf32>
    %cst_62 = arith.constant 1.000000e+00 : f32
    %151 = vector.broadcast %cst_62 : f32 to vector<64x64xf32>
    %152 = arith.addf %151, %150 : vector<64x64xf32>
    %153 = arith.mulf %147, %152 : vector<64x64xf32>
    %154 = arith.truncf %153 : vector<64x64xf32> to vector<64x64xbf16>
    %c0_63 = arith.constant 0 : index
    %c0_64 = arith.constant 0 : index
    %c0_65 = arith.constant 0 : index
    %155 = vector.load %arg10[%c0_63, %c0_64, %c0_65] : memref<1x64x32xbf16, #tpu.memory_space<vmem>>, vector<1x64x32xbf16>
    %156 = vector.shape_cast %155 : vector<1x64x32xbf16> to vector<64x32xbf16>
    %cst_66 = arith.constant dense<0.000000e+00> : vector<64x32xf32>
    %157 = tpu.matmul %154, %156, %cst_66 {dimension_numbers = #tpu.dot_dimension_numbers<[1], [0], [0], [1], [0, 0, 1, 1], [], []>} : vector<64x64xbf16>, vector<64x32xbf16>, vector<64x32xf32> -> vector<64x32xf32>
    %c0_67 = arith.constant 0 : index
    %c0_68 = arith.constant 0 : index
    %c0_69 = arith.constant 0 : index
    %158 = vector.load %arg11[%c0_67, %c0_68, %c0_69] : memref<1x1x32xf32, #tpu.memory_space<vmem>>, vector<1x1x32xf32>
    %159 = vector.shape_cast %158 : vector<1x1x32xf32> to vector<1x32xf32>
    %160 = vector.broadcast %159 : vector<1x32xf32> to vector<64x32xf32>
    %161 = arith.addf %157, %160 : vector<64x32xf32>
    %162 = arith.addf %137, %161 : vector<64x32xf32>
    %c0_70 = arith.constant 0 : index
    %c0_71 = arith.constant 0 : index
    %c0_72 = arith.constant 0 : index
    %163 = vector.load %arg12[%c0_70, %c0_71, %c0_72] : memref<1x1x32xf32, #tpu.memory_space<vmem>>, vector<1x1x32xf32>
    %164 = vector.shape_cast %163 : vector<1x1x32xf32> to vector<1x32xf32>
    %c0_73 = arith.constant 0 : index
    %c0_74 = arith.constant 0 : index
    %c0_75 = arith.constant 0 : index
    %165 = vector.load %arg13[%c0_73, %c0_74, %c0_75] : memref<1x1x32xf32, #tpu.memory_space<vmem>>, vector<1x1x32xf32>
    %166 = vector.shape_cast %165 : vector<1x1x32xf32> to vector<1x32xf32>
    %167 = vector.shape_cast %162 : vector<64x32xf32> to vector<8x8x32xf32>
    %168 = tpu.iota {dimensions = array<i32: 1>} : vector<8x8x1xi32>
    %c7_i32_76 = arith.constant 7 : i32
    %169 = vector.broadcast %c7_i32_76 : i32 to vector<8x8x1xi32>
    %170 = arith.cmpi slt, %168, %169 : vector<8x8x1xi32>
    %171 = arith.extui %170 : vector<8x8x1xi1> to vector<8x8x1xi32>
    %172 = arith.sitofp %171 : vector<8x8x1xi32> to vector<8x8x1xf32>
    %173 = vector.broadcast %172 : vector<8x8x1xf32> to vector<8x8x32xf32>
    %174 = arith.mulf %167, %173 : vector<8x8x32xf32>
    %cst_77 = arith.constant dense<0.000000e+00> : vector<8x32xf32>
    %175 = vector.multi_reduction <add>, %174, %cst_77 [1] : vector<8x8x32xf32> to vector<8x32xf32>
    %176 = vector.shape_cast %175 : vector<8x32xf32> to vector<8x1x32xf32>
    %cst_78 = arith.constant dense<0.000000e+00> : vector<1x32xf32>
    %177 = vector.multi_reduction <add>, %176, %cst_78 [0] : vector<8x1x32xf32> to vector<1x32xf32>
    %178 = vector.shape_cast %177 : vector<1x32xf32> to vector<1x1x32xf32>
    %cst_79 = arith.constant 0.0178571437 : f32
    %179 = vector.broadcast %cst_79 : f32 to vector<1x1x32xf32>
    %180 = arith.mulf %178, %179 : vector<1x1x32xf32>
    %181 = vector.broadcast %180 : vector<1x1x32xf32> to vector<8x8x32xf32>
    %182 = arith.subf %167, %181 : vector<8x8x32xf32>
    %183 = arith.mulf %182, %182 : vector<8x8x32xf32>
    %184 = vector.broadcast %172 : vector<8x8x1xf32> to vector<8x8x32xf32>
    %185 = arith.mulf %183, %184 : vector<8x8x32xf32>
    %cst_80 = arith.constant dense<0.000000e+00> : vector<8x32xf32>
    %186 = vector.multi_reduction <add>, %185, %cst_80 [1] : vector<8x8x32xf32> to vector<8x32xf32>
    %187 = vector.shape_cast %186 : vector<8x32xf32> to vector<8x1x32xf32>
    %cst_81 = arith.constant dense<0.000000e+00> : vector<1x32xf32>
    %188 = vector.multi_reduction <add>, %187, %cst_81 [0] : vector<8x1x32xf32> to vector<1x32xf32>
    %189 = vector.shape_cast %188 : vector<1x32xf32> to vector<1x1x32xf32>
    %cst_82 = arith.constant 0.0178571437 : f32
    %190 = vector.broadcast %cst_82 : f32 to vector<1x1x32xf32>
    %191 = arith.mulf %189, %190 : vector<1x1x32xf32>
    %192 = vector.broadcast %180 : vector<1x1x32xf32> to vector<8x8x32xf32>
    %193 = arith.subf %167, %192 : vector<8x8x32xf32>
    %cst_83 = arith.constant 9.99999974E-6 : f32
    %194 = vector.broadcast %cst_83 : f32 to vector<1x1x32xf32>
    %195 = arith.addf %191, %194 : vector<1x1x32xf32>
    %196 = math.rsqrt %195 : vector<1x1x32xf32>
    %197 = vector.broadcast %196 : vector<1x1x32xf32> to vector<8x8x32xf32>
    %198 = arith.mulf %193, %197 : vector<8x8x32xf32>
    %199 = vector.shape_cast %164 : vector<1x32xf32> to vector<1x1x32xf32>
    %200 = vector.broadcast %199 : vector<1x1x32xf32> to vector<8x8x32xf32>
    %201 = arith.mulf %198, %200 : vector<8x8x32xf32>
    %202 = vector.shape_cast %166 : vector<1x32xf32> to vector<1x1x32xf32>
    %203 = vector.broadcast %202 : vector<1x1x32xf32> to vector<8x8x32xf32>
    %204 = arith.addf %201, %203 : vector<8x8x32xf32>
    %205 = vector.shape_cast %204 : vector<8x8x32xf32> to vector<64x32xf32>
    %c0_84 = arith.constant 0 : index
    %c0_85 = arith.constant 0 : index
    %206 = vector.load %arg15[%c0_84, %c0_85] : memref<64x32xf32, #tpu.memory_space<vmem>>, vector<64x32xf32>
    tpu.vector_store %arg15[%c0_84, %c0_85], %205 {strides = array<i32>} : memref<64x32xf32, #tpu.memory_space<vmem>>, vector<64x32xf32>,
    %c1_i32 = arith.constant 1 : i32
    %207 = arith.cmpi eq, %arg0, %c1_i32 : i32
    %208 = arith.extui %207 : i1 to i32
    %c0_i32_86 = arith.constant 0 : i32
    %209 = arith.cmpi ne, %208, %c0_i32_86 : i32
    scf.if %209 {
      %c0_87 = arith.constant 0 : index
      %c0_88 = arith.constant 0 : index
      %210 = vector.load %arg14[%c0_87, %c0_88] : memref<64x32xf32, #tpu.memory_space<vmem>>, vector<64x32xf32>
      tpu.vector_store %arg14[%c0_87, %c0_88], %205 {strides = array<i32>} : memref<64x32xf32, #tpu.memory_space<vmem>>, vector<64x32xf32>,
    } else {
    }
    return
  }
  func.func @transform_0(%arg0: i32) -> (i32, i32) {
    %c0_i32 = arith.constant 0 : i32
    %c0_i32_0 = arith.constant 0 : i32
    %c0_i32_1 = arith.constant 0 : i32
    return %c0_i32, %c0_i32_0 : i32, i32
  }
  func.func @transform_1(%arg0: i32) -> (i32, i32, i32) {
    %c0_i32 = arith.constant 0 : i32
    %c0_i32_0 = arith.constant 0 : i32
    %c0_i32_1 = arith.constant 0 : i32
    return %arg0, %c0_i32, %c0_i32_0 : i32, i32, i32
  }
  func.func @transform_2(%arg0: i32) -> (i32, i32, i32) {
    %c0_i32 = arith.constant 0 : i32
    %c0_i32_0 = arith.constant 0 : i32
    %c0_i32_1 = arith.constant 0 : i32
    return %arg0, %c0_i32, %c0_i32_0 : i32, i32, i32
  }
  func.func @transform_3(%arg0: i32) -> (i32, i32, i32, i32) {
    %c0_i32 = arith.constant 0 : i32
    %c0_i32_0 = arith.constant 0 : i32
    %c0_i32_1 = arith.constant 0 : i32
    %c0_i32_2 = arith.constant 0 : i32
    return %arg0, %c0_i32, %c0_i32_0, %c0_i32_1 : i32, i32, i32, i32
  }
  func.func @transform_4(%arg0: i32) -> (i32, i32, i32) {
    %c0_i32 = arith.constant 0 : i32
    %c0_i32_0 = arith.constant 0 : i32
    %c0_i32_1 = arith.constant 0 : i32
    return %arg0, %c0_i32, %c0_i32_0 : i32, i32, i32
  }
  func.func @transform_5(%arg0: i32) -> (i32, i32, i32) {
    %c0_i32 = arith.constant 0 : i32
    %c0_i32_0 = arith.constant 0 : i32
    %c0_i32_1 = arith.constant 0 : i32
    return %arg0, %c0_i32, %c0_i32_0 : i32, i32, i32
  }
  func.func @transform_6(%arg0: i32) -> (i32, i32, i32) {
    %c0_i32 = arith.constant 0 : i32
    %c0_i32_0 = arith.constant 0 : i32
    %c0_i32_1 = arith.constant 0 : i32
    return %arg0, %c0_i32, %c0_i32_0 : i32, i32, i32
  }
  func.func @transform_7(%arg0: i32) -> (i32, i32, i32) {
    %c0_i32 = arith.constant 0 : i32
    %c0_i32_0 = arith.constant 0 : i32
    %c0_i32_1 = arith.constant 0 : i32
    return %arg0, %c0_i32, %c0_i32_0 : i32, i32, i32
  }
  func.func @transform_8(%arg0: i32) -> (i32, i32, i32) {
    %c0_i32 = arith.constant 0 : i32
    %c0_i32_0 = arith.constant 0 : i32
    %c0_i32_1 = arith.constant 0 : i32
    return %arg0, %c0_i32, %c0_i32_0 : i32, i32, i32
  }
  func.func @transform_9(%arg0: i32) -> (i32, i32, i32) {
    %c0_i32 = arith.constant 0 : i32
    %c0_i32_0 = arith.constant 0 : i32
    %c0_i32_1 = arith.constant 0 : i32
    return %arg0, %c0_i32, %c0_i32_0 : i32, i32, i32
  }
  func.func @transform_10(%arg0: i32) -> (i32, i32, i32) {
    %c0_i32 = arith.constant 0 : i32
    %c0_i32_0 = arith.constant 0 : i32
    %c0_i32_1 = arith.constant 0 : i32
    return %arg0, %c0_i32, %c0_i32_0 : i32, i32, i32
  }
  func.func @transform_11(%arg0: i32) -> (i32, i32, i32) {
    %c0_i32 = arith.constant 0 : i32
    %c0_i32_0 = arith.constant 0 : i32
    %c0_i32_1 = arith.constant 0 : i32
    return %arg0, %c0_i32, %c0_i32_0 : i32, i32, i32
  }
  func.func @transform_12(%arg0: i32) -> (i32, i32, i32) {
    %c0_i32 = arith.constant 0 : i32
    %c0_i32_0 = arith.constant 0 : i32
    %c0_i32_1 = arith.constant 0 : i32
    return %arg0, %c0_i32, %c0_i32_0 : i32, i32, i32
  }
  func.func @transform_13(%arg0: i32) -> (i32, i32) {
    %c0_i32 = arith.constant 0 : i32
    %c0_i32_0 = arith.constant 0 : i32
    %c0_i32_1 = arith.constant 0 : i32
    return %c0_i32, %c0_i32_0 : i32, i32
  }
}

module attributes {stable_mosaic.version = 11 : i64} {
  func.func @_head_kernel(%arg0: memref<8x224xf32, #tpu.memory_space<vmem>>, %arg1: memref<224x16xbf16, #tpu.memory_space<vmem>>, %arg2: memref<1x16xf32, #tpu.memory_space<vmem>>, %arg3: memref<8x16xf32, #tpu.memory_space<vmem>>) attributes {dimension_semantics = [], scalar_prefetch = 0 : i64, scratch_operands = 0 : i64, tpu.core_type = #tpu.core_type<tc>} {
    %c0 = arith.constant 0 : index
    %c0_0 = arith.constant 0 : index
    %0 = vector.load %arg0[%c0, %c0_0] : memref<8x224xf32, #tpu.memory_space<vmem>>, vector<8x224xf32>
    %1 = arith.truncf %0 : vector<8x224xf32> to vector<8x224xbf16>
    %c0_1 = arith.constant 0 : index
    %c0_2 = arith.constant 0 : index
    %2 = vector.load %arg1[%c0_1, %c0_2] : memref<224x16xbf16, #tpu.memory_space<vmem>>, vector<224x16xbf16>
    %cst = arith.constant dense<0.000000e+00> : vector<8x16xf32>
    %3 = tpu.matmul %1, %2, %cst {dimension_numbers = #tpu.dot_dimension_numbers<[1], [0], [0], [1], [0, 0, 1, 1], [], []>} : vector<8x224xbf16>, vector<224x16xbf16>, vector<8x16xf32> -> vector<8x16xf32>
    %c0_3 = arith.constant 0 : index
    %c0_4 = arith.constant 0 : index
    %4 = vector.load %arg2[%c0_3, %c0_4] : memref<1x16xf32, #tpu.memory_space<vmem>>, vector<1x16xf32>
    %5 = vector.broadcast %4 : vector<1x16xf32> to vector<8x16xf32>
    %6 = arith.addf %3, %5 : vector<8x16xf32>
    %c0_5 = arith.constant 0 : index
    %c0_6 = arith.constant 0 : index
    %7 = vector.load %arg3[%c0_5, %c0_6] : memref<8x16xf32, #tpu.memory_space<vmem>>, vector<8x16xf32>
    tpu.vector_store %arg3[%c0_5, %c0_6], %6 {strides = array<i32>} : memref<8x16xf32, #tpu.memory_space<vmem>>, vector<8x16xf32>,
    return
  }
}

</mosaic_0001>

<bundles_post_ra>
// kernel: patchtst_forward.5
= control target key start
LH: loop header
LB: loop body
LE: loop exit
PB: predicated region body
PF: predicated region fallthrough
CT: control target
= control target key end

     0   :  { %v219_v0 = vmov 0   ;;  %vm138_vm0 = vcmask 785408   ;;  %vm182_vm1 = vcmask 130048   ;;  %s294_s1 = inlined_call_operand.vmem [shape: bf16[224,16], index: 1, kind: input, shape index: {}]   ;;  %s295_s0 = inlined_call_operand.vmem [shape: f32[8,224], index: 0, kind: input, shape index: {}]   ;;  %s296_s2 = inlined_call_operand.vmem [shape: f32[1,16], index: 2, kind: input, shape index: {}]   ;;  %s297_s3 = inlined_call_operand.vmem [shape: f32[8,16], index: 3, kind: output, shape index: {}]  }
   0x1   :  { %142 = vmatprep.subr.bf16.mxu0 %v219_v0  ;;  %v205_v1 = vld [vmem:[%s294_s1] sm:$0xff]   ;;  %v206_v2 = vld [vmem:[%s294_s1 + $0x8] sm:$0xff]   ;;  %v207_v3 = vld [vmem:[%s294_s1 + $0x10] sm:$0xff]  }
   0x2   :  { %143 = vmatpush1.bf16.msra.mxu0 %v205_v1  ;;  %v208_v4 = vld [vmem:[%s294_s1 + $0x18] sm:$0xff]   ;;  %v209_v5 = vld [vmem:[%s294_s1 + $0x20] sm:$0xff]   ;;  %v16_v6 = vld [vmem:[%s295_s0 + $0x8] sm:$0xff] }
   0x3   :  { %144 = vmatprep.subr.bf16.mxu0 %v219_v0  ;;  %v18_v7 = vpack.c.bf16 %v16_v6, %v16_v6  ;;  %v210_v8 = vld [vmem:[%s294_s1 + $0x28] sm:$0xff]   ;;  %v211_v9 = vld [vmem:[%s294_s1 + $0x30] sm:$0xff]   ;;  %v212_v10 = vld [vmem:[%s294_s1 + $0x38] sm:$0xff]  }
   0x4   :  { %v213_v11 = vld [vmem:[%s294_s1 + $0x40] sm:$0xff]   ;;  %v214_v12 = vld [vmem:[%s294_s1 + $0x48] sm:$0xff]   ;;  %v215_v13 = vld [vmem:[%s294_s1 + $0x50] sm:$0xff]  }
   0x5   :  { %203 = vmatprep.mubr.msk.bf16.mxu0 %vm138_vm0, %v18_v7  ;;  %v216_v14 = vld [vmem:[%s294_s1 + $0x58] sm:$0xff]   ;;  %v217_v15 = vld [vmem:[%s294_s1 + $0x60] sm:$0xff]   ;;  %v218_v16 = vld [vmem:[%s294_s1 + $0x68] sm:$0xff]  }
   0x6   :  { %145 = vmatpush1.bf16.msra.mxu0 %v206_v2  ;;  %v15_v17 = vld [vmem:[%s295_s0] sm:$0xff] }
   0x7   :  { %146 = vmatprep.subr.bf16.mxu0 %v219_v0  ;;  %v17_v18 = vpack.c.bf16 %v15_v17, %v15_v17  ;;  %v188_v19 = vld [vmem:[%s296_s2] ss:$0 sm:$0xff] }
   0xa   :  { %147 = vmatpush1.bf16.msra.mxu0 %v207_v3 }
   0xb   :  { %148 = vmatprep.subr.bf16.mxu0 %v219_v0 }
   0xe   :  { %149 = vmatpush1.bf16.msra.mxu0 %v208_v4 }
   0xf   :  { %150 = vmatprep.subr.bf16.mxu0 %v219_v0 }
  0x12   :  { %151 = vmatpush1.bf16.msra.mxu0 %v209_v5 }
  0x13   :  { %152 = vmatprep.subr.bf16.mxu0 %v219_v0 }
  0x16   :  { %153 = vmatpush1.bf16.msra.mxu0 %v210_v8 }
  0x17   :  { %154 = vmatprep.subr.bf16.mxu0 %v219_v0 }
  0x1a   :  { %155 = vmatpush1.bf16.msra.mxu0 %v211_v9 }
  0x1b   :  { %156 = vmatprep.subr.bf16.mxu0 %v219_v0 }
  0x1e   :  { %157 = vmatpush1.bf16.msra.mxu0 %v212_v10 }
  0x1f   :  { %158 = vmatprep.subr.bf16.mxu0 %v219_v0 }
  0x22   :  { %159 = vmatpush1.bf16.msra.mxu0 %v213_v11 }
  0x23   :  { %160 = vmatprep.subr.bf16.mxu0 %v219_v0 }
  0x26   :  { %161 = vmatpush1.bf16.msra.mxu0 %v214_v12 }
  0x27   :  { %162 = vmatprep.subr.bf16.mxu0 %v219_v0 }
  0x2a   :  { %163 = vmatpush1.bf16.msra.mxu0 %v215_v13 }
  0x2b   :  { %164 = vmatprep.subr.bf16.mxu0 %v219_v0 }
  0x2e   :  { %165 = vmatpush1.bf16.msra.mxu0 %v216_v14 }
  0x2f   :  { %166 = vmatprep.subr.bf16.mxu0 %v219_v0 }
  0x32   :  { %167 = vmatpush1.bf16.msra.mxu0 %v217_v15 }
  0x33   :  { %168 = vmatprep.subr.bf16.mxu0 %v219_v0 }
  0x36   :  { %169 = vmatpush1.bf16.msra.mxu0 %v218_v16 }
  0x39   :  { %175 = vmatmul.mubr.bf16.vlgmr.msra.gmra.mrb[0].mxu0 %v17_v18 }
 0x10c   :  { %v176_v20 = vpop.f32.mrb[0].mxu0 }
 0x10d   :  { %v177_v21 = vadd.f32 %v188_v19, %v176_v20  ;;  %v178_v22 = vpop.f32.mrb[1].mxu0 }
 0x10e   :  { %v179_v23 = vpop.f32.mrb[2].mxu0 }
 0x10f   :  { %183 = vst.msk [vmem:[%s297_s3] sm:$0xff] %vm182_vm1, %v177_v21  ;;  %v180_v24 = vpop.f32.mrb[3].mxu0 }

// kernel: patchtst_forward.3
= control target key start
LH: loop header
LB: loop body
LE: loop exit
PB: predicated region body
PF: predicated region fallthrough
CT: control target
= control target key end

     0   :  { %vm51_vm0 = vcmask 1043456   ;;  %vm38_vm1 = vcmask 64512   ;;  %vm129_vm2 = vcmask 261120   ;;  %s260_s1 = inlined_call_operand.vmem [shape: bf16[8,32], index: 1, kind: input, shape index: {}]   ;;  %s261_s0 = inlined_call_operand.vmem [shape: f32[64,8], index: 0, kind: input, shape index: {}]   ;;  %s262_s2 = inlined_call_operand.vmem [shape: f32[1,32], index: 2, kind: input, shape index: {}]   ;;  %s263_s3 = inlined_call_operand.vmem [shape: f32[8,32], index: 3, kind: input, shape index: {}]   ;;  %s264_s4 = inlined_call_operand.vmem [shape: f32[64,32], index: 4, kind: output, shape index: {}]  }
   0x1   :  { %v30_v0 = vld [vmem:[%s260_s1] sm:$0xf]  ;;  %v19_v2 = vld [vmem:[%s261_s0 + $0x8] sm:$0xff]  ;;  %v20_v7 = vld [vmem:[%s261_s0 + $0x10] sm:$0xff] }
   0x2   :  { %v18_v1 = vld [vmem:[%s261_s0] sm:$0xff]  ;;  %164 = vmatprep.subr.msk.bf16.mxu0 %vm51_vm0, %v30_v0  ;;  %165 = vmatprep.subr.msk.bf16.mxu1 %vm51_vm0, %v30_v0  ;;  %v53_v3 = vsel %vm51_vm0, %v30_v0, 0  ;;  %v23_v6 = vld [vmem:[%s261_s0 + $0x28] sm:$0xff]  ;;  %v21_v9 = vld [vmem:[%s261_s0 + $0x18] sm:$0xff] }
   0x3   :  { %v26_v4 = vpack.c.bf16 %v19_v2, %v18_v1  ;;  %v22_v5 = vld [vmem:[%s261_s0 + $0x20] sm:$0xff]  ;;  %153 = vmatpush3.bf16.msra.mxu0 %v53_v3  ;;  %163 = vmatpush3.bf16.msra.mxu1 %v53_v3  ;;  %v24_v10 = vld [vmem:[%s261_s0 + $0x30] sm:$0xff]  ;;  %v25_v11 = vld [vmem:[%s261_s0 + $0x38] sm:$0xff]  ;;  %v27_v12 = vpack.c.bf16 %v21_v9, %v20_v7 }
   0x4   :  { %v28_v8 = vpack.c.bf16 %v23_v6, %v22_v5  ;;  %v29_v13 = vpack.c.bf16 %v25_v11, %v24_v10  ;;  %v142_v14 = vld [vmem:[%s262_s2] ss:$0 sm:$0xff] }
   0x5   :  { %154 = vmatprep.mubr.msk.bf16.mxu0 %vm38_vm1, %v26_v4  ;;  %v120_v16 = vld [vmem:[%s263_s3] sm:$0xff] }
   0x6   :  { %158 = vmatprep.mubr.msk.bf16.mxu1 %vm38_vm1, %v28_v8  ;;  %155 = vmatmul.mubr.msk.bf16.vlgmr.msra.gmra.mrb[0].mxu0 %vm38_vm1, %v27_v12 }
   0x7   :  { %159 = vmatmul.mubr.msk.bf16.vlgmr.msra.gmra.mrb[0].mxu1 %vm38_vm1, %v29_v13 }
  0xd9   :  { %v156_v15 = vpop.f32.mrb[0].mxu0 }
  0xda   :  { %v160_v17 = vpop.f32.mrb[0].mxu1  ;;  %v98_v18 = vadd.f32 %v156_v15, %v142_v14  ;;  %v89_v20 = vpop.f32.mrb[1].mxu0 }
  0xdb   :  { %v114_v19 = vadd.f32 %v160_v17, %v142_v14  ;;  %v105_v21 = vpop.f32.mrb[1].mxu1  ;;  %v90_v22 = vadd.f32 %v142_v14, %v89_v20  ;;  %v157_v24 = vpop.f32.mrb[2].mxu0 }
  0xdc   :  { %v106_v23 = vadd.f32 %v142_v14, %v105_v21  ;;  %v161_v25 = vpop.f32.mrb[2].mxu1  ;;  %v123_v26 = vadd.f32 %v120_v16, %v98_v18  ;;  %v101_v28 = vadd.f32 %v157_v24, %v142_v14  ;;  %v92_v30 = vpop.f32.mrb[3].mxu0 }
  0xdd   :  { %v127_v27 = vadd.f32 %v120_v16, %v114_v19  ;;  %v117_v29 = vadd.f32 %v161_v25, %v142_v14  ;;  %v108_v31 = vpop.f32.mrb[3].mxu1  ;;  %v121_v32 = vadd.f32 %v120_v16, %v90_v22  ;;  %v93_v34 = vadd.f32 %v142_v14, %v92_v30 }
  0xde   :  { %v125_v33 = vadd.f32 %v120_v16, %v106_v23  ;;  %v109_v35 = vadd.f32 %v142_v14, %v108_v31  ;;  %132 = vst.msk [vmem:[%s264_s4 + $0x10] sm:$0xff] %vm129_vm2, %v123_v26  ;;  %v124_v36 = vadd.f32 %v120_v16, %v101_v28 }
  0xdf   :  { %136 = vst.msk [vmem:[%s264_s4 + $0x30] sm:$0xff] %vm129_vm2, %v127_v27  ;;  %v128_v37 = vadd.f32 %v120_v16, %v117_v29  ;;  %130 = vst.msk [vmem:[%s264_s4] sm:$0xff] %vm129_vm2, %v121_v32  ;;  %v122_v38 = vadd.f32 %v120_v16, %v93_v34 }
  0xe0   :  { %134 = vst.msk [vmem:[%s264_s4 + $0x20] sm:$0xff] %vm129_vm2, %v125_v33  ;;  %v126_v39 = vadd.f32 %v120_v16, %v109_v35  ;;  %133 = vst.msk [vmem:[%s264_s4 + $0x18] sm:$0xff] %vm129_vm2, %v124_v36 }
  0xe1   :  { %137 = vst.msk [vmem:[%s264_s4 + $0x38] sm:$0xff] %vm129_vm2, %v128_v37  ;;  %131 = vst.msk [vmem:[%s264_s4 + $0x8] sm:$0xff] %vm129_vm2, %v122_v38 }
  0xe2   :  { %135 = vst.msk [vmem:[%s264_s4 + $0x28] sm:$0xff] %vm129_vm2, %v126_v39 }

// kernel: patchtst_forward.4
= control target key start
LH: loop header
LB: loop body
LE: loop exit
PB: predicated region body
PF: predicated region fallthrough
CT: control target
= control target key end

     0   :  { %s6849_s25 = smov 0   ;;  %s8488_s0 = inlined_call_operand.vmem [shape: f32[64,32], index: 0, kind: input, shape index: {}]   ;;  %s8489_s1 = inlined_call_operand.vmem [shape: bf16[2,32,96], index: 1, kind: input, shape index: {}]   ;;  %s8490_s2 = inlined_call_operand.vmem [shape: f32[2,1,96], index: 2, kind: input, shape index: {}]   ;;  %s8491_s3 = inlined_call_operand.vmem [shape: bf16[2,4,8,32], index: 3, kind: input, shape index: {}]   ;;  %s8492_s4 = inlined_call_operand.vmem [shape: f32[2,1,32], index: 4, kind: input, shape index: {}]   ;;  %s8493_s5 = inlined_call_operand.vmem [shape: f32[2,1,32], index: 5, kind: input, shape index: {}]   ;;  %s8494_s6 = inlined_call_operand.vmem [shape: f32[2,1,32], index: 6, kind: input, shape index: {}]   ;;  %s8495_s7 = inlined_call_operand.vmem [shape: bf16[2,32,64], index: 7, kind: input, shape index: {}]   ;;  %s8496_s8 = inlined_call_operand.vmem [shape: f32[2,1,64], index: 8, kind: input, shape index: {}]   ;;  %s8497_s9 = inlined_call_operand.vmem [shape: bf16[2,64,32], index: 9, kind: input, shape index: {}]   ;;  %s8498_s10 = inlined_call_operand.vmem [shape: f32[2,1,32], index: 10, kind: input, shape index: {}]   ;;  %s8499_s11 = inlined_call_operand.vmem [shape: f32[2,1,32], index: 11, kind: input, shape index: {}]   ;;  %s8500_s12 = inlined_call_operand.vmem [shape: f32[2,1,32], index: 12, kind: input, shape index: {}]   ;;  %s8501_s13 = inlined_call_operand.vmem [shape: f32[64,32], index: 13, kind: output, shape index: {}]  }
   0x1   :  { %8510 = sst [smem:[#allocation18_spill]] %s8489_s1 }
   0x2   :  { %8511 = sst [smem:[#allocation19_spill]] %s8491_s3 }
   0x3   :  { %8512 = sst [smem:[#allocation20_spill]] %s8501_s13 }
   0x4 LB: > { %8513 = sst [smem:[#allocation4_spill]] %s6769_s25  ;;  %s6855_s26 = sadd.s32 4294967295, %s6769_s25   ;;  %s6769_s25 = sphi %s6849_s25, %s23_s25  }
   0x5   : > { %p5726_p0 = scmp.ge.s32.totalorder %s6769_s25, 1  ;;  %p476_p1 = scmp.lt.s32.totalorder %s6769_s25, 3 }
   0x7   : > { %p477_p2 = pnand %p5726_p0, %p476_p1 }
   0x9   : > { %480 = sbr.rel (%p477_p2) target bundleno = 2304 (0x900), region = 72 }
  0x10   : > { %p554_p3 = scmp.lt.s32.totalorder %s6855_s26, 1  ;;  %s8514_s1 = sld [smem:[#allocation18_spill]] }
  0x11   : > { %s8515_s3 = sld [smem:[#allocation19_spill]]  ;;  %p5735_p4 = scmp.ne.s32.totalorder %s6855_s26, 0 }
  0x12   : > { %s6861_s27 = scalar_select %p554_p3, %s6855_s26, 1 }
  0x13   : > { %602 = sbr.rel (%p5735_p4) target bundleno = 40 (0x28), region = 76  ;;  %v603_v0 = vld [vmem:[%s8488_s0] sm:$0xff] (!%p5735_p4)  ;;  %vm611_vm0 = vcmask (!%p5735_p4), 261120   ;;  %v604_v1 = vld [vmem:[%s8488_s0 + $0x8] sm:$0xff] (!%p5735_p4)  ;;  %v605_v2 = vld [vmem:[%s8488_s0 + $0x10] sm:$0xff] (!%p5735_p4)  ;;  %vm620_vm1 = vcmask (!%p5735_p4), 64512  }
  0x14   : > { %s5851_s28 = sshll.u32 %s6861_s27, 4  ;;  %s591_s29 = scalar_lea.vmem %s8498_s10, %s6861_s27  ;;  %612 = vst.msk [vmem:[#allocation2] sm:$0xff] (!%p5735_p4), %vm611_vm0, %v603_v0  ;;  %613 = vst.msk [vmem:[#allocation2 + $0x8] sm:$0xff] (!%p5735_p4), %vm611_vm0, %v604_v1  ;;  %v606_v3 = vld [vmem:[%s8488_s0 + $0x18] sm:$0xff] (!%p5735_p4)  ;;  %v607_v4 = vld [vmem:[%s8488_s0 + $0x20] sm:$0xff] (!%p5735_p4)  ;;  %v6771_v6 = vmov (!%p5735_p4), 0.0  }
  0x15   : > { %s594_s15 = scalar_lea.vmem %s8499_s11, %s6861_s27  ;;  %s597_s13 = scalar_lea.vmem %s8500_s12, %s6861_s27  ;;  %614 = vst.msk [vmem:[#allocation2 + $0x10] sm:$0xff] (!%p5735_p4), %vm611_vm0, %v605_v2  ;;  %v608_v5 = vld [vmem:[%s8488_s0 + $0x28] sm:$0xff] (!%p5735_p4)  ;;  %615 = vst.msk [vmem:[#allocation2 + $0x18] sm:$0xff] (!%p5735_p4), %vm611_vm0, %v606_v3  ;;  %v609_v7 = vld [vmem:[%s8488_s0 + $0x30] sm:$0xff] (!%p5735_p4) }
  0x16   : > { %s6871_s17 = scalar_lea.vmem %s8514_s1, %s5851_s28  ;;  %s6893_s1 = scalar_lea.vmem %s8495_s7, %s5851_s28  ;;  %621 = vst.msk [vmem:[#allocation3] sm:$0xff] (!%p5735_p4), %vm620_vm1, %v6771_v6  ;;  %622 = vst.msk [vmem:[#allocation3 + $0x8] sm:$0xff] (!%p5735_p4), %vm620_vm1, %v6771_v6  ;;  %v610_v8 = vld [vmem:[%s8488_s0 + $0x38] sm:$0xff] (!%p5735_p4) }
  0x17   : > { %s6876_s20 = scalar_lea.vmem %s8515_s3, %s5851_s28  ;;  %s583_s3 = scalar_lea.vmem %s8496_s8, %s6861_s27  ;;  %623 = vst.msk [vmem:[#allocation3 + $0x10] sm:$0xff] (!%p5735_p4), %vm620_vm1, %v6771_v6  ;;  %624 = vst.msk [vmem:[#allocation3 + $0x18] sm:$0xff] (!%p5735_p4), %vm620_vm1, %v6771_v6 }
  0x18   : > { %8516 = sst [smem:[#allocation5_spill]] %s6876_s20  ;;  %s5854_s20 = sshll.u32 %s6861_s27, 5  ;;  %625 = vst.msk [vmem:[#allocation3 + $0x20] sm:$0xff] (!%p5735_p4), %vm620_vm1, %v6771_v6  ;;  %626 = vst.msk [vmem:[#allocation3 + $0x28] sm:$0xff] (!%p5735_p4), %vm620_vm1, %v6771_v6 }
  0x19   : > { %s6903_s23 = scalar_lea.vmem %s8497_s9, %s5854_s20  ;;  %627 = vst.msk [vmem:[#allocation3 + $0x30] sm:$0xff] (!%p5735_p4), %vm620_vm1, %v6771_v6  ;;  %628 = vst.msk [vmem:[#allocation3 + $0x38] sm:$0xff] (!%p5735_p4), %vm620_vm1, %v6771_v6 }
  0x1a   : > { %629 = vst.msk [vmem:[#allocation3 + $0x40] sm:$0xff] %vm620_vm1, %v6771_v6  ;;  %630 = vst.msk [vmem:[#allocation3 + $0x48] sm:$0xff] %vm620_vm1, %v6771_v6 }
  0x1b   : > { %631 = vst.msk [vmem:[#allocation3 + $0x50] sm:$0xff] %vm620_vm1, %v6771_v6  ;;  %632 = vst.msk [vmem:[#allocation3 + $0x58] sm:$0xff] %vm620_vm1, %v6771_v6 }
  0x1c   : > { %633 = vst.msk [vmem:[#allocation3 + $0x60] sm:$0xff] %vm620_vm1, %v6771_v6  ;;  %634 = vst.msk [vmem:[#allocation3 + $0x68] sm:$0xff] %vm620_vm1, %v6771_v6 }
  0x1d   : > { %635 = vst.msk [vmem:[#allocation3 + $0x70] sm:$0xff] %vm620_vm1, %v6771_v6  ;;  %636 = vst.msk [vmem:[#allocation3 + $0x78] sm:$0xff] %vm620_vm1, %v6771_v6 }
  0x1e   : > { %637 = vst.msk [vmem:[#allocation3 + $0x80] sm:$0xff] %vm620_vm1, %v6771_v6  ;;  %638 = vst.msk [vmem:[#allocation3 + $0x88] sm:$0xff] %vm620_vm1, %v6771_v6 }
  0x1f   : > { %639 = vst.msk [vmem:[#allocation3 + $0x90] sm:$0xff] %vm620_vm1, %v6771_v6  ;;  %640 = vst.msk [vmem:[#allocation3 + $0x98] sm:$0xff] %vm620_vm1, %v6771_v6 }
  0x20   : > { %641 = vst.msk [vmem:[#allocation3 + $0xa0] sm:$0xff] %vm620_vm1, %v6771_v6  ;;  %642 = vst.msk [vmem:[#allocation3 + $0xa8] sm:$0xff] %vm620_vm1, %v6771_v6 }
  0x21   : > { %643 = vst.msk [vmem:[#allocation3 + $0xb0] sm:$0xff] %vm620_vm1, %v6771_v6  ;;  %644 = vst.msk [vmem:[#allocation3 + $0xb8] sm:$0xff] %vm620_vm1, %v6771_v6 }
  0x22   : > { %645 = vst.msk [vmem:[#allocation3 + $0xc0] sm:$0xff] %vm620_vm1, %v6771_v6  ;;  %646 = vst.msk [vmem:[#allocation3 + $0xc8] sm:$0xff] %vm620_vm1, %v6771_v6 }
  0x23   : > { %647 = vst.msk [vmem:[#allocation3 + $0xd0] sm:$0xff] %vm620_vm1, %v6771_v6  ;;  %648 = vst.msk [vmem:[#allocation3 + $0xd8] sm:$0xff] %vm620_vm1, %v6771_v6 }
  0x24   : > { %649 = vst.msk [vmem:[#allocation3 + $0xe0] sm:$0xff] %vm620_vm1, %v6771_v6  ;;  %650 = vst.msk [vmem:[#allocation3 + $0xe8] sm:$0xff] %vm620_vm1, %v6771_v6 }
  0x25   : > { %651 = vst.msk [vmem:[#allocation3 + $0xf0] sm:$0xff] %vm620_vm1, %v6771_v6  ;;  %652 = vst.msk [vmem:[#allocation3 + $0xf8] sm:$0xff] %vm620_vm1, %v6771_v6 }
  0x26   : > { %616 = vst.msk [vmem:[#allocation2 + $0x20] sm:$0xff] %vm611_vm0, %v607_v4  ;;  %617 = vst.msk [vmem:[#allocation2 + $0x28] sm:$0xff] %vm611_vm0, %v608_v5 }
  0x27   : > { %618 = vst.msk [vmem:[#allocation2 + $0x30] sm:$0xff] %vm611_vm0, %v609_v7  ;;  %619 = vst.msk [vmem:[#allocation2 + $0x38] sm:$0xff] %vm611_vm0, %v610_v8 }
  0x28 PF: > { %v6599_v9 = vld [vmem:[%s6871_s17] sm:$0xff]   ;;  %v6600_v10 = vld [vmem:[%s6871_s17 + $0x8] sm:$0xff]   ;;  %vm688_vm2 = vcmask 261120   ;;  %s8517_s14 = scalar_lea.vmem %s8490_s2, %s6861_s27  ;;  %s6772_s24 = smov 120   ;;  %v8506_v35 = vmov 0.0   ;;  %vm6774_vm3 = vmmov 0  }
  0x29   : > { %6023 = vmatprep.subr.bf16.mxu1 %v6599_v9  ;;  %v653_v11 = vld [vmem:[#allocation2] sm:$0xff]  ;;  %v654_v12 = vld [vmem:[#allocation2 + $0x8] sm:$0xff]  ;;  %6047 = vmatprep.subr.bf16.mxu0 %v8506_v35  ;;  %s6775_s30 = smov 112   ;;  %s6776_s28 = smov 96   ;;  %vm913_vm4 = vcmask 64512   ;;  %vm2935_vm6 = vcmask 1043456  }
  0x2a   : > { %6024 = vmatpush3.bf16.msra.mxu1 %v6599_v9  ;;  %v661_v13 = vpack.c.bf16 %v654_v12, %v653_v11  ;;  %v655_v14 = vld [vmem:[#allocation2 + $0x10] sm:$0xff]  ;;  %v656_v15 = vld [vmem:[#allocation2 + $0x18] sm:$0xff]  ;;  %v5736_v24 = vld [vmem:[%s8517_s14] ss:$0 sm:$0xff]  ;;  %6049 = vmatprep.mubr.msk.bf16.mxu0 %vm6774_vm3, %v8506_v35  ;;  %s6777_s16 = smov 104   ;;  %s6778_s18 = smov 64  }
  0x2b   : > { %6025 = vmatprep.subr.bf16.mxu1 %v6600_v10  ;;  %v662_v18 = vpack.c.bf16 %v656_v15, %v655_v14  ;;  %s8543_s19 = sld [smem:[#allocation5_spill]]  ;;  %s8545_s22 = scalar_lea.vmem %s8492_s4, %s6861_s27  ;;  %vm5265_vm8 = vcmask 523264  }
  0x2c   : > { %6027 = vmatprep.mubr.msk.bf16.mxu1 %vm688_vm2, %v661_v13  ;;  %s8546_s25 = scalar_lea.vmem %s8493_s5, %s6861_s27  ;;  %p5848_p5 = scmp.ne.s32.totalorder %s6855_s26, 1 }
  0x2d   : > { %v657_v16 = vld [vmem:[#allocation2 + $0x20] sm:$0xff]  ;;  %v658_v17 = vld [vmem:[#allocation2 + $0x28] sm:$0xff] }
  0x2e   : > { %6026 = vmatpush3.bf16.msra.mxu1 %v6600_v10  ;;  %v663_v19 = vpack.c.bf16 %v658_v17, %v657_v16  ;;  %v659_v20 = vld [vmem:[#allocation2 + $0x30] sm:$0xff]  ;;  %v660_v21 = vld [vmem:[#allocation2 + $0x38] sm:$0xff] }
  0x2f   : > { %v664_v22 = vpack.c.bf16 %v660_v21, %v659_v20  ;;  %6035 = vmatprep.subr.bf16.mxu1 %v8506_v35 }
  0x31   : > { %6028 = vmatmul.mubr.msk.bf16.vlgmr.msra.gmra.mrb[0].mxu1 %vm688_vm2, %v662_v18 }
  0x32   : > { %6031 = vmatprep.mubr.msk.bf16.mxu1 %vm688_vm2, %v663_v19 }
  0x39   : > { %6032 = vmatmul.mubr.msk.bf16.gmra.mrb[4].mxu1 %vm688_vm2, %v664_v22 }
  0x3a   : > { %6037 = vmatprep.mubr.msk.bf16.mxu1 %vm6774_vm3, %v8506_v35 }
 0x104   : > { %v6029_v23 = vpop.f32.mrb[0].mxu1 }
 0x105   : > { %v735_v25 = vpop.f32.mrb[1].mxu1  ;;  %v744_v27 = vadd.f32 %v6029_v23, %v5736_v24 }
 0x106   : > { %v6030_v26 = vpop.f32.mrb[2].mxu1  ;;  %v736_v30 = vadd.f32 %v5736_v24, %v735_v25 }
 0x107   : > { %v747_v28 = vadd.f32 %v6030_v26, %v5736_v24  ;;  %v738_v29 = vpop.f32.mrb[3].mxu1  ;;  %v7019_v49 = vpack.c.bf16 %v744_v27, %v744_v27 }
 0x108   : > { %v739_v31 = vadd.f32 %v5736_v24, %v738_v29  ;;  %v7005_v45 = vpack.c.bf16 %v736_v30, %v736_v30 }
 0x109   : > { %v6993_v32 = vpack.i.bf16 %v747_v28, %v744_v27  ;;  %v7009_v46 = vpack.c.bf16 %v747_v28, %v747_v28 }
 0x10a   : > { %v6539_v33 = vpack.i.bf16 %v739_v31, %v736_v30  ;;  %v7011_v47 = vpack.c.bf16 %v739_v31, %v739_v31 }
 0x10c   : > { %v6033_v34 = vpop.f32.mrb[4].mxu1  ;;  %6540 = vrot.lane.b32.xlu0 %v6539_v33, %s6772_s24 }
 0x10d   : > { %v760_v36 = vadd.f32 %v6033_v34, %v5736_v24  ;;  %v751_v37 = vpop.f32.mrb[5].mxu1 }
 0x10e   : > { %v752_v38 = vadd.f32 %v5736_v24, %v751_v37  ;;  %v6034_v39 = vpop.f32.mrb[6].mxu1 }
 0x10f   : > { %v763_v40 = vadd.f32 %v6034_v39, %v5736_v24  ;;  %v754_v41 = vpop.f32.mrb[7].mxu1  ;;  %v7034_v52 = vpack.c.bf16 %v760_v36, %v760_v36 }
 0x110   : > { %v755_v42 = vadd.f32 %v5736_v24, %v754_v41  ;;  %6545 = vrot.lane.b32.xlu0 %v6993_v32, %s6772_s24  ;;  %v7017_v48 = vpack.c.bf16 %v752_v38, %v752_v38 }
 0x111   : > { %v7000_v43 = vpack.i.bf16 %v763_v40, %v760_v36  ;;  %v7026_v50 = vpack.c.bf16 %v763_v40, %v763_v40 }
 0x112   : > { %v6549_v44 = vpack.i.bf16 %v755_v42, %v752_v38  ;;  %v7028_v51 = vpack.c.bf16 %v755_v42, %v755_v42 }
 0x114   : > { %6550 = vrot.lane.b32.xlu1 %v6549_v44, %s6772_s24  ;;  %6555 = vrot.lane.b32.xlu0 %v7000_v43, %s6772_s24 }
 0x118   : > { %6560 = vrot.lane.b32.xlu0 %v6539_v33, %s6775_s30  ;;  %911 = vrot.lane.b32.xlu1 %v7005_v45, %s6776_s28 }
 0x11c   : > { %1059 = vrot.lane.b32.xlu0 %v7009_v46, %s6776_s28  ;;  %961 = vrot.lane.b32.xlu1 %v7011_v47, %s6776_s28 }
 0x120   : > { %1108 = vrot.lane.b32.xlu0 %v7017_v48, %s6776_s28  ;;  %1010 = vrot.lane.b32.xlu1 %v7019_v49, %s6776_s28 }
 0x124   : > { %6570 = vrot.lane.b32.xlu0 %v6549_v44, %s6775_s30  ;;  %6565 = vrot.lane.b32.xlu1 %v6993_v32, %s6775_s30 }
 0x128   : > { %1255 = vrot.lane.b32.xlu0 %v7026_v50, %s6776_s28  ;;  %1157 = vrot.lane.b32.xlu1 %v7028_v51, %s6776_s28 }
 0x12c   : > { %1206 = vrot.lane.b32.xlu1 %v7034_v52, %s6776_s28 }
 0x130   : > { %6575 = vrot.lane.b32.xlu1 %v7000_v43, %s6775_s30  ;;  %s8547_s30 = scalar_lea.vmem %s8494_s6, %s6861_s27 }
 0x17e   : > { %v6541_v53 = vpop.permute.xlu0 %6540 }
 0x17f   : > { %v6543_v54 = vunpack.i.h.bf16 %v6541_v53  ;;  %v6542_v55 = vunpack.i.l.bf16 %v6541_v53 }
 0x181   : > { %v7039_v56 = vpack.c.bf16 %v6542_v55, %v6542_v55  ;;  %v7041_v57 = vpack.c.bf16 %v6543_v54, %v6543_v54 }
 0x182   : > { %v6546_v58 = vpop.permute.xlu0 %6545 }
 0x183   : > { %v6547_v59 = vunpack.i.l.bf16 %v6546_v58  ;;  %1304 = vrot.lane.b32.xlu0 %v7039_v56, %s6776_s28  ;;  %1353 = vrot.lane.b32.xlu1 %v7041_v57, %s6776_s28  ;;  %v6548_v60 = vunpack.i.h.bf16 %v6546_v58 }
 0x185   : > { %v7047_v61 = vpack.c.bf16 %v6547_v59, %v6547_v59  ;;  %v7052_v2 = vpack.c.bf16 %v6548_v60, %v6548_v60 }
 0x186   : > { %v6551_v62 = vpop.permute.xlu1 %6550  ;;  %v6556_v63 = vpop.permute.xlu0 %6555 }
 0x187   : > { %v6553_v0 = vunpack.i.h.bf16 %v6551_v62  ;;  %v6552_v1 = vunpack.i.l.bf16 %v6551_v62  ;;  %6580 = vrot.lane.b32.xlu0 %v6539_v33, %s6777_s16  ;;  %1402 = vrot.lane.b32.xlu1 %v7047_v61, %s6776_s28  ;;  %v6557_v5 = vunpack.i.l.bf16 %v6556_v63  ;;  %v6558_v10 = vunpack.i.h.bf16 %v6556_v63 }
 0x189   : > { %v7059_v7 = vpack.c.bf16 %v6552_v1, %v6552_v1  ;;  %v7061_v8 = vpack.c.bf16 %v6553_v0, %v6553_v0  ;;  %v7068_v11 = vpack.c.bf16 %v6557_v5, %v6557_v5  ;;  %v7074_v15 = vpack.c.bf16 %v6558_v10, %v6558_v10 }
 0x18a   : > { %v6561_v3 = vpop.permute.xlu0 %6560  ;;  %v912_v4 = vpop.permute.xlu1 %911 }
 0x18b   : > { %v918_v6 = vsel %vm913_vm4, %v912_v4, 0  ;;  %1451 = vrot.lane.b32.xlu0 %v7052_v2, %s6776_s28  ;;  %6585 = vrot.lane.b32.xlu1 %v6993_v32, %s6777_s16  ;;  %v6563_v17 = vunpack.i.h.bf16 %v6561_v3  ;;  %v6562_v18 = vunpack.i.l.bf16 %v6561_v3 }
 0x18c   : > { %6036 = vmatpush3.bf16.xpose.msra.mxu1 %v918_v6 }
 0x18d   : > { %6041 = vmatprep.subr.bf16.mxu1 %v8506_v35  ;;  %v7087_v23 = vpack.c.bf16 %v6562_v18, %v6562_v18  ;;  %v7089_v24 = vpack.c.bf16 %v6563_v17, %v6563_v17 }
 0x18e   : > { %v962_v9 = vpop.permute.xlu1 %961  ;;  %v1060_v12 = vpop.permute.xlu0 %1059 }
 0x18f   : > { %1500 = vrot.lane.b32.xlu0 %v7059_v7, %s6776_s28  ;;  %1549 = vrot.lane.b32.xlu1 %v7061_v8, %s6776_s28  ;;  %v967_v16 = vsel %vm913_vm4, %v962_v9, 0  ;;  %v1065_v27 = vsel %vm913_vm4, %v1060_v12, 0 }
 0x192   : > { %v1011_v13 = vpop.permute.xlu1 %1010  ;;  %v1109_v19 = vpop.permute.xlu0 %1108 }
 0x193   : > { %6590 = vrot.lane.b32.xlu0 %v6549_v44, %s6777_s16  ;;  %1598 = vrot.lane.b32.xlu1 %v7068_v11, %s6776_s28  ;;  %v1016_v14 = vsel %vm913_vm4, %v1011_v13, 0  ;;  %v1114_v25 = vsel %vm913_vm4, %v1109_v19, 0 }
 0x194   : > { %6038 = vmatmul.mubr.msk.bf16.vlgmr.msra.gmra.mrb[8].mxu1 %vm913_vm4, %v7005_v45  ;;  %6048 = vmatpush3.bf16.xpose.msra.mxu0 %v1016_v14 }
 0x195   : > { %6042 = vmatpush3.bf16.xpose.msra.mxu1 %v967_v16  ;;  %6043 = vmatprep.mubr.msk.bf16.mxu1 %vm6774_vm3, %v8506_v35 }
 0x196   : > { %v6566_v20 = vpop.permute.xlu1 %6565  ;;  %6053 = vmatprep.subr.bf16.mxu1 %v8506_v35  ;;  %6059 = vmatprep.subr.bf16.mxu0 %v8506_v35  ;;  %v6571_v28 = vpop.permute.xlu0 %6570 }
 0x197   : > { %1647 = vrot.lane.b32.xlu0 %v7074_v15, %s6776_s28  ;;  %6595 = vrot.lane.b32.xlu1 %v7000_v43, %s6777_s16  ;;  %v6568_v21 = vunpack.i.h.bf16 %v6566_v20  ;;  %v6567_v22 = vunpack.i.l.bf16 %v6566_v20  ;;  %v6573_v29 = vunpack.i.h.bf16 %v6571_v28  ;;  %v6572_v30 = vunpack.i.l.bf16 %v6571_v28 }
 0x199   : > { %v7101_v31 = vpack.c.bf16 %v6568_v21, %v6568_v21  ;;  %v7103_v32 = vpack.c.bf16 %v6567_v22, %v6567_v22  ;;  %v7115_v34 = vpack.c.bf16 %v6573_v29, %v6573_v29  ;;  %v7117_v36 = vpack.c.bf16 %v6572_v30, %v6572_v30 }
 0x19a   : > { %v1158_v26 = vpop.permute.xlu1 %1157  ;;  %v1256_v44 = vpop.permute.xlu0 %1255 }
 0x19b   : > { %1696 = vrot.lane.b32.xlu0 %v7087_v23, %s6776_s28  ;;  %1745 = vrot.lane.b32.xlu1 %v7089_v24, %s6776_s28  ;;  %v1163_v40 = vsel %vm913_vm4, %v1158_v26, 0  ;;  %v1261_v53 = vsel %vm913_vm4, %v1256_v44, 0 }
 0x19c   : > { %6044 = vmatmul.mubr.msk.bf16.vlgmr.msra.gmra.mrb[12].mxu1 %vm913_vm4, %v7011_v47  ;;  %6050 = vmatmul.mubr.msk.bf16.vlgmr.msra.gmra.mrb[0].mxu0 %vm913_vm4, %v7019_v49 }
 0x19d   : > { %6054 = vmatpush3.bf16.xpose.msra.mxu1 %v1065_v27  ;;  %6060 = vmatpush3.bf16.xpose.msra.mxu0 %v1114_v25 }
 0x19e   : > { %v1207_v33 = vpop.permute.xlu1 %1206  ;;  %6055 = vmatprep.mubr.msk.bf16.mxu1 %vm6774_vm3, %v8506_v35  ;;  %6061 = vmatprep.mubr.msk.bf16.mxu0 %vm6774_vm3, %v8506_v35 }
 0x19f   : > { %1843 = vrot.lane.b32.xlu1 %v7101_v31, %s6776_s28  ;;  %1794 = vrot.lane.b32.xlu0 %v7103_v32, %s6776_s28  ;;  %v1212_v41 = vsel %vm913_vm4, %v1207_v33, 0 }
 0x1a0   : > { %6065 = vmatprep.subr.bf16.mxu1 %v8506_v35  ;;  %6071 = vmatprep.subr.bf16.mxu0 %v8506_v35 }
 0x1a2   : > { %v6576_v37 = vpop.permute.xlu1 %6575 }
 0x1a3   : > { %v6578_v38 = vunpack.i.h.bf16 %v6576_v37  ;;  %v6577_v39 = vunpack.i.l.bf16 %v6576_v37  ;;  %1941 = vrot.lane.b32.xlu1 %v7115_v34, %s6776_s28  ;;  %1892 = vrot.lane.b32.xlu0 %v7117_v36, %s6776_s28 }
 0x1a4   : > { %6056 = vmatmul.mubr.msk.bf16.vlgmr.msra.gmra.mrb[16].mxu1 %vm913_vm4, %v7009_v46  ;;  %6062 = vmatmul.mubr.msk.bf16.vlgmr.msra.gmra.mrb[4].mxu0 %vm913_vm4, %v7017_v48 }
 0x1a5   : > { %6066 = vmatpush3.bf16.xpose.msra.mxu1 %v1163_v40  ;;  %6072 = vmatpush3.bf16.xpose.msra.mxu0 %v1212_v41  ;;  %v7129_v42 = vpack.c.bf16 %v6578_v38, %v6578_v38  ;;  %v7131_v43 = vpack.c.bf16 %v6577_v39, %v6577_v39 }
 0x1a6   : > { %6067 = vmatprep.mubr.msk.bf16.mxu1 %vm6774_vm3, %v8506_v35  ;;  %6073 = vmatprep.mubr.msk.bf16.mxu0 %vm6774_vm3, %v8506_v35 }
 0x1a7   : > { %2039 = vrot.lane.b32.xlu1 %v7129_v42, %s6776_s28  ;;  %1990 = vrot.lane.b32.xlu0 %v7131_v43, %s6776_s28 }
 0x1a8   : > { %6077 = vmatprep.subr.bf16.mxu1 %v8506_v35  ;;  %6083 = vmatprep.subr.bf16.mxu0 %v8506_v35 }
 0x1ac   : > { %6068 = vmatmul.mubr.msk.bf16.vlgmr.msra.gmra.mrb[20].mxu1 %vm913_vm4, %v7028_v51  ;;  %6074 = vmatmul.mubr.msk.bf16.vlgmr.msra.gmra.mrb[8].mxu0 %vm913_vm4, %v7034_v52 }
 0x1ad   : > { %6078 = vmatpush3.bf16.xpose.msra.mxu1 %v1261_v53  ;;  %6079 = vmatprep.mubr.msk.bf16.mxu1 %vm6774_vm3, %v8506_v35 }
 0x1ae   : > { %6089 = vmatprep.subr.bf16.mxu1 %v8506_v35  ;;  %6085 = vmatprep.mubr.msk.bf16.mxu0 %vm6774_vm3, %v8506_v35 }
 0x1b4   : > { %6080 = vmatmul.mubr.msk.bf16.vlgmr.msra.gmra.mrb[24].mxu1 %vm913_vm4, %v7026_v50 }
 0x1b5   : > { %6091 = vmatprep.mubr.msk.bf16.mxu1 %vm6774_vm3, %v8506_v35 }
 0x1f5   : > { %v1305_v54 = vpop.permute.xlu0 %1304  ;;  %v1354_v55 = vpop.permute.xlu1 %1353 }
 0x1f6   : > { %v1310_v58 = vsel %vm913_vm4, %v1305_v54, 0  ;;  %v1359_v59 = vsel %vm913_vm4, %v1354_v55, 0 }
 0x1f7   : > { %6084 = vmatpush3.bf16.xpose.msra.mxu0 %v1310_v58  ;;  %6090 = vmatpush3.bf16.xpose.msra.mxu1 %v1359_v59 }
 0x1f8   : > { %6095 = vmatprep.subr.bf16.mxu0 %v8506_v35  ;;  %6101 = vmatprep.subr.bf16.mxu1 %v8506_v35 }
 0x1f9   : > { %v6581_v60 = vpop.permute.xlu0 %6580  ;;  %v1403_v62 = vpop.permute.xlu1 %1402 }
 0x1fa   : > { %v6583_v63 = vunpack.i.h.bf16 %v6581_v60  ;;  %v6582_v0 = vunpack.i.l.bf16 %v6581_v60  ;;  %v1408_v12 = vsel %vm913_vm4, %v1403_v62, 0 }
 0x1fc   : > { %v7161_v1 = vpack.c.bf16 %v6583_v63, %v6583_v63  ;;  %v7163_v3 = vpack.c.bf16 %v6582_v0, %v6582_v0 }
 0x1fd   : > { %v1452_v4 = vpop.permute.xlu0 %1451  ;;  %v6586_v5 = vpop.permute.xlu1 %6585 }
 0x1fe   : > { %v1457_v6 = vsel %vm913_vm4, %v1452_v4, 0  ;;  %v6588_v9 = vunpack.i.h.bf16 %v6586_v5  ;;  %v6587_v10 = vunpack.i.l.bf16 %v6586_v5  ;;  %6086 = vmatmul.mubr.msk.bf16.vlgmr.msra.gmra.mrb[12].mxu0 %vm913_vm4, %v7039_v56  ;;  %6092 = vmatmul.mubr.msk.bf16.vlgmr.msra.gmra.mrb[28].mxu1 %vm913_vm4, %v7041_v57 }
 0x1ff   : > { %2137 = vrot.lane.b32.xlu1 %v7161_v1, %s6776_s28  ;;  %2088 = vrot.lane.b32.xlu0 %v7163_v3, %s6776_s28 }
 0x200   : > { %6096 = vmatpush3.bf16.xpose.msra.mxu0 %v1408_v12  ;;  %6102 = vmatpush3.bf16.xpose.msra.mxu1 %v1457_v6  ;;  %v7175_v13 = vpack.c.bf16 %v6588_v9, %v6588_v9  ;;  %v7177_v14 = vpack.c.bf16 %v6587_v10, %v6587_v10 }
 0x201   : > { %v1501_v16 = vpop.permute.xlu0 %1500  ;;  %v1550_v17 = vpop.permute.xlu1 %1549  ;;  %6097 = vmatprep.mubr.msk.bf16.mxu0 %vm6774_vm3, %v8506_v35  ;;  %6103 = vmatprep.mubr.msk.bf16.mxu1 %vm6774_vm3, %v8506_v35 }
 0x202   : > { %6107 = vmatprep.subr.bf16.mxu0 %v8506_v35  ;;  %6113 = vmatprep.subr.bf16.mxu1 %v8506_v35  ;;  %v1506_v18 = vsel %vm913_vm4, %v1501_v16, 0  ;;  %v1555_v19 = vsel %vm913_vm4, %v1550_v17, 0 }
 0x203   : > { %2235 = vrot.lane.b32.xlu1 %v7175_v13, %s6776_s28  ;;  %2186 = vrot.lane.b32.xlu0 %v7177_v14, %s6776_s28 }
 0x205   : > { %v6591_v20 = vpop.permute.xlu0 %6590  ;;  %v1599_v21 = vpop.permute.xlu1 %1598 }
 0x206   : > { %v6593_v22 = vunpack.i.h.bf16 %v6591_v20  ;;  %v6592_v25 = vunpack.i.l.bf16 %v6591_v20  ;;  %v1604_v39 = vsel %vm913_vm4, %v1599_v21, 0  ;;  %v882_v20 = vld [vmem:[#allocation3 + $0x20] sm:$0xff] }
 0x207   : > { %6098 = vmatmul.mubr.msk.bf16.vlgmr.msra.gmra.mrb[16].mxu0 %vm913_vm4, %v7047_v61  ;;  %6104 = vmatmul.mubr.msk.bf16.vlgmr.msra.gmra.mrb[32].mxu1 %vm913_vm4, %v7052_v2 }
 0x208   : > { %6108 = vmatpush3.bf16.xpose.msra.mxu0 %v1506_v18  ;;  %6114 = vmatpush3.bf16.xpose.msra.mxu1 %v1555_v19  ;;  %v7195_v26 = vpack.c.bf16 %v6593_v22, %v6593_v22  ;;  %v7197_v27 = vpack.c.bf16 %v6592_v25, %v6592_v25  ;;  %v881_v19 = vld [vmem:[#allocation3 + $0x18] sm:$0xff] }
 0x209   : > { %v6596_v28 = vpop.permute.xlu1 %6595  ;;  %6109 = vmatprep.mubr.msk.bf16.mxu0 %vm6774_vm3, %v8506_v35  ;;  %6115 = vmatprep.mubr.msk.bf16.mxu1 %vm6774_vm3, %v8506_v35  ;;  %v1648_v33 = vpop.permute.xlu0 %1647 }
 0x20a   : > { %v6598_v29 = vunpack.i.h.bf16 %v6596_v28  ;;  %v6597_v30 = vunpack.i.l.bf16 %v6596_v28  ;;  %2333 = vrot.lane.b32.xlu1 %v7195_v26, %s6776_s28  ;;  %2284 = vrot.lane.b32.xlu0 %v7197_v27, %s6776_s28  ;;  %v1653_v40 = vsel %vm913_vm4, %v1648_v33, 0 }
 0x20b   : > { %6119 = vmatprep.subr.bf16.mxu0 %v8506_v35  ;;  %6125 = vmatprep.subr.bf16.mxu1 %v8506_v35 }
 0x20c   : > { %v7209_v37 = vpack.c.bf16 %v6598_v29, %v6598_v29  ;;  %v7211_v38 = vpack.c.bf16 %v6597_v30, %v6597_v30 }
 0x20d   : > { %v1697_v41 = vpop.permute.xlu0 %1696  ;;  %v1746_v44 = vpop.permute.xlu1 %1745 }
 0x20e   : > { %8518 = vst [vmem:[#allocation6_spill] sm:$0xff] %v7209_v37  ;;  %8519 = vst [vmem:[#allocation7_spill] sm:$0xff] %v7211_v38  ;;  %2431 = vrot.lane.b32.xlu1 %v7209_v37, %s6776_s28  ;;  %2382 = vrot.lane.b32.xlu0 %v7211_v38, %s6776_s28  ;;  %v1702_v53 = vsel %vm913_vm4, %v1697_v41, 0  ;;  %v1751_v54 = vsel %vm913_vm4, %v1746_v44, 0 }
 0x20f   : > { %6110 = vmatmul.mubr.msk.bf16.vlgmr.msra.gmra.mrb[20].mxu0 %vm913_vm4, %v7059_v7  ;;  %6116 = vmatmul.mubr.msk.bf16.vlgmr.msra.gmra.mrb[36].mxu1 %vm913_vm4, %v7061_v8 }
 0x210   : > { %6120 = vmatpush3.bf16.xpose.msra.mxu0 %v1604_v39  ;;  %6126 = vmatpush3.bf16.xpose.msra.mxu1 %v1653_v40 }
 0x211   : > { %6121 = vmatprep.mubr.msk.bf16.mxu0 %vm6774_vm3, %v8506_v35  ;;  %6127 = vmatprep.mubr.msk.bf16.mxu1 %vm6774_vm3, %v8506_v35 }
 0x212   : > { %2930 = vrot.lane.b32.xlu1 %v7005_v45, %s6778_s18  ;;  %2979 = vrot.lane.b32.xlu0 %v7011_v47, %s6778_s18  ;;  %v1844_v45 = vpop.permute.xlu1 %1843 }
 0x213   : > { %6131 = vmatprep.subr.bf16.mxu0 %v8506_v35  ;;  %6137 = vmatprep.subr.bf16.mxu1 %v8506_v35  ;;  %v1849_v47 = vsel %vm913_vm4, %v1844_v45, 0 }
 0x216   : > { %3027 = vrot.lane.b32.xlu1 %v7019_v49, %s6778_s18  ;;  %3075 = vrot.lane.b32.xlu0 %v7009_v46, %s6778_s18  ;;  %v1795_v46 = vpop.permute.xlu0 %1794 }
 0x217   : > { %6122 = vmatmul.mubr.msk.bf16.vlgmr.msra.gmra.mrb[24].mxu0 %vm913_vm4, %v7068_v11  ;;  %6128 = vmatmul.mubr.msk.bf16.vlgmr.msra.gmra.mrb[40].mxu1 %vm913_vm4, %v7074_v15  ;;  %v1800_v49 = vsel %vm913_vm4, %v1795_v46, 0 }
 0x218   : > { %6132 = vmatpush3.bf16.xpose.msra.mxu0 %v1702_v53  ;;  %6138 = vmatpush3.bf16.xpose.msra.mxu1 %v1751_v54 }
 0x219   : > { %6133 = vmatprep.mubr.msk.bf16.mxu0 %vm6774_vm3, %v8506_v35  ;;  %6139 = vmatprep.mubr.msk.bf16.mxu1 %vm6774_vm3, %v8506_v35 }
 0x21a   : > { %3123 = vrot.lane.b32.xlu1 %v7017_v48, %s6778_s18  ;;  %3171 = vrot.lane.b32.xlu0 %v7028_v51, %s6778_s18  ;;  %v1942_v48 = vpop.permute.xlu1 %1941 }
 0x21b   : > { %6143 = vmatprep.subr.bf16.mxu0 %v8506_v35  ;;  %6149 = vmatprep.subr.bf16.mxu1 %v8506_v35  ;;  %v1947_v51 = vsel %vm913_vm4, %v1942_v48, 0 }
 0x21e   : > { %3219 = vrot.lane.b32.xlu1 %v7034_v52, %s6778_s18  ;;  %3267 = vrot.lane.b32.xlu0 %v7026_v50, %s6778_s18  ;;  %v1893_v50 = vpop.permute.xlu0 %1892 }
 0x21f   : > { %6134 = vmatmul.mubr.msk.bf16.vlgmr.msra.gmra.mrb[28].mxu0 %vm913_vm4, %v7087_v23  ;;  %6140 = vmatmul.mubr.msk.bf16.vlgmr.msra.gmra.mrb[44].mxu1 %vm913_vm4, %v7089_v24  ;;  %v1898_v52 = vsel %vm913_vm4, %v1893_v50, 0 }
 0x220   : > { %6144 = vmatpush3.bf16.xpose.msra.mxu0 %v1800_v49  ;;  %6150 = vmatpush3.bf16.xpose.msra.mxu1 %v1849_v47 }
 0x221   : > { %6145 = vmatprep.mubr.msk.bf16.mxu0 %vm6774_vm3, %v8506_v35  ;;  %6151 = vmatprep.mubr.msk.bf16.mxu1 %vm6774_vm3, %v8506_v35 }
 0x222   : > { %3315 = vrot.lane.b32.xlu1 %v7039_v56, %s6778_s18  ;;  %3363 = vrot.lane.b32.xlu0 %v7041_v57, %s6778_s18  ;;  %v2040_v56 = vpop.permute.xlu1 %2039  ;;  %v1991_v57 = vpop.permute.xlu0 %1990 }
 0x223   : > { %6161 = vmatprep.subr.bf16.mxu1 %v8506_v35  ;;  %6155 = vmatprep.subr.bf16.mxu0 %v8506_v35 }
 0x226   : > { %3411 = vrot.lane.b32.xlu1 %v7047_v61, %s6778_s18  ;;  %3459 = vrot.lane.b32.xlu0 %v7052_v2, %s6778_s18  ;;  %v2045_v61 = vsel %vm913_vm4, %v2040_v56, 0  ;;  %v1996_v2 = vsel %vm913_vm4, %v1991_v57, 0  ;;  %v884_v56 = vld [vmem:[#allocation3 + $0x30] sm:$0xff] }
 0x227   : > { %6152 = vmatmul.mubr.msk.bf16.vlgmr.msra.gmra.mrb[48].mxu1 %vm913_vm4, %v7101_v31  ;;  %6146 = vmatmul.mubr.msk.bf16.vlgmr.msra.gmra.mrb[32].mxu0 %vm913_vm4, %v7103_v32 }
 0x228   : > { %6156 = vmatpush3.bf16.xpose.msra.mxu0 %v1898_v52  ;;  %6162 = vmatpush3.bf16.xpose.msra.mxu1 %v1947_v51  ;;  %v883_v52 = vld [vmem:[#allocation3 + $0x28] sm:$0xff] }
 0x229   : > { %6157 = vmatprep.mubr.msk.bf16.mxu0 %vm6774_vm3, %v8506_v35  ;;  %6163 = vmatprep.mubr.msk.bf16.mxu1 %vm6774_vm3, %v8506_v35 }
 0x22a   : > { %3507 = vrot.lane.b32.xlu1 %v7059_v7, %s6778_s18  ;;  %3651 = vrot.lane.b32.xlu0 %v7074_v15, %s6778_s18  ;;  %v878_v7 = vld [vmem:[#allocation3] sm:$0xff] }
 0x22b   : > { %6173 = vmatprep.subr.bf16.mxu1 %v8506_v35  ;;  %6167 = vmatprep.subr.bf16.mxu0 %v8506_v35 }
 0x22e   : > { %3603 = vrot.lane.b32.xlu1 %v7068_v11, %s6778_s18  ;;  %3747 = vrot.lane.b32.xlu0 %v7089_v24, %s6778_s18 }
 0x22f   : > { %6164 = vmatmul.mubr.msk.bf16.vlgmr.msra.gmra.mrb[52].mxu1 %vm913_vm4, %v7115_v34  ;;  %6158 = vmatmul.mubr.msk.bf16.vlgmr.msra.gmra.mrb[36].mxu0 %vm913_vm4, %v7117_v36 }
 0x230   : > { %6168 = vmatpush3.bf16.xpose.msra.mxu0 %v1996_v2  ;;  %6174 = vmatpush3.bf16.xpose.msra.mxu1 %v2045_v61 }
 0x231   : > { %6169 = vmatprep.mubr.msk.bf16.mxu0 %vm6774_vm3, %v8506_v35  ;;  %6175 = vmatprep.mubr.msk.bf16.mxu1 %vm6774_vm3, %v8506_v35 }
 0x232   : > { %3699 = vrot.lane.b32.xlu1 %v7087_v23, %s6778_s18  ;;  %3843 = vrot.lane.b32.xlu0 %v7101_v31, %s6778_s18  ;;  %v8505_v31 = vlaneseq }
 0x233   : > { %6179 = vmatprep.subr.bf16.mxu0 %v8506_v35  ;;  %6185 = vmatprep.subr.bf16.mxu1 %v8506_v35 }
 0x236   : > { %3795 = vrot.lane.b32.xlu1 %v7103_v32, %s6778_s18  ;;  %4035 = vrot.lane.b32.xlu0 %v7129_v42, %s6778_s18 }
 0x237   : > { %6176 = vmatmul.mubr.msk.bf16.vlgmr.msra.gmra.mrb[56].mxu1 %vm913_vm4, %v7129_v42  ;;  %6170 = vmatmul.mubr.msk.bf16.vlgmr.msra.gmra.mrb[40].mxu0 %vm913_vm4, %v7131_v43  ;;  %v7337_v42 = vand.u32 127, %v8505_v31 }
 0x238   : > { %6181 = vmatprep.mubr.msk.bf16.mxu0 %vm6774_vm3, %v8506_v35  ;;  %6187 = vmatprep.mubr.msk.bf16.mxu1 %vm6774_vm3, %v8506_v35 }
 0x239   : > { %vm2513_vm5 = vcmp.lt.s32.totalorder %v7337_v42, 7 }
 0x23a   : > { %3891 = vrot.lane.b32.xlu1 %v7117_v36, %s6778_s18  ;;  %3555 = vrot.lane.b32.xlu0 %v7061_v8, %s6778_s18  ;;  %v879_v36 = vld [vmem:[#allocation3 + $0x8] sm:$0xff]  ;;  %v880_v8 = vld [vmem:[#allocation3 + $0x10] sm:$0xff] }
 0x23e   : > { %3987 = vrot.lane.b32.xlu1 %v7131_v43, %s6778_s18  ;;  %3939 = vrot.lane.b32.xlu0 %v7115_v34, %s6778_s18 }
 0x242   : > { %4083 = vrot.lane.b32.xlu1 %v7163_v3, %s6778_s18 }
 0x267   : > { %v954_v11 = vpop.f32.mrb[8].mxu1 }
 0x268   : > { %v955_v15 = vadd.f32 %v954_v11, %v878_v7  ;;  %v6039_v23 = vpop.f32.mrb[9].mxu1 }
 0x269   : > { %v957_v24 = vpop.f32.mrb[10].mxu1 }
 0x26a   : > { %2479 = vst.msk [vmem:[#allocation3] sm:$0xff] %vm913_vm4, %v955_v15  ;;  %v6040_v32 = vpop.f32.mrb[11].mxu1  ;;  %v7358_v21 = vsel %vm2513_vm5, %v955_v15, -1e+30 }
 0x26b   : > { %v2546_v41 = vsel %vm913_vm4, %v7358_v21, -inf }
 0x26f   : > { %v1003_v43 = vpop.f32.mrb[12].mxu1  ;;  %v1052_v55 = vpop.f32.mrb[0].mxu0 }
 0x270   : > { %v1004_v34 = vadd.f32 %v1003_v43, %v879_v36  ;;  %v1053_v58 = vadd.f32 %v1052_v55, %v880_v8  ;;  %v6045_v59 = vpop.f32.mrb[13].mxu1  ;;  %v6051_v60 = vpop.f32.mrb[1].mxu0 }
 0x271   : > { %v1006_v62 = vpop.f32.mrb[14].mxu1  ;;  %v1055_v63 = vpop.f32.mrb[2].mxu0 }
 0x272   : > { %2480 = vst.msk [vmem:[#allocation3 + $0x8] sm:$0xff] %vm913_vm4, %v1004_v34  ;;  %2481 = vst.msk [vmem:[#allocation3 + $0x10] sm:$0xff] %vm913_vm4, %v1053_v58  ;;  %v2138_v0 = vpop.permute.xlu1 %2137  ;;  %v2089_v4 = vpop.permute.xlu0 %2088  ;;  %v7344_v5 = vsel %vm2513_vm5, %v1004_v34, -1e+30  ;;  %v7348_v6 = vsel %vm2513_vm5, %v1053_v58, -1e+30 }
 0x273   : > { %v2143_v9 = vsel %vm913_vm4, %v2138_v0, 0  ;;  %v2094_v10 = vsel %vm913_vm4, %v2089_v4, 0  ;;  %v6046_v12 = vpop.f32.mrb[15].mxu1  ;;  %v6052_v16 = vpop.f32.mrb[3].mxu0  ;;  %v2549_v17 = vsel %vm913_vm4, %v7344_v5, -inf  ;;  %v2552_v18 = vsel %vm913_vm4, %v7348_v6, -inf }
 0x274   : > { %6180 = vmatpush3.bf16.xpose.msra.mxu0 %v2094_v10  ;;  %6186 = vmatpush3.bf16.xpose.msra.mxu1 %v2143_v9  ;;  %v885_v62 = vld [vmem:[#allocation3 + $0x38] sm:$0xff] }
 0x275   : > { %2550 = vmax.xlane.f32.xlu1 %v2549_v17  ;;  %2553 = vmax.xlane.f32.xlu0 %v2552_v18 }
 0x276   : > { %v2236_v22 = vpop.permute.xlu1 %2235  ;;  %v2187_v25 = vpop.permute.xlu0 %2186  ;;  %6191 = vmatprep.subr.bf16.mxu0 %v8506_v35  ;;  %6197 = vmatprep.subr.bf16.mxu1 %v8506_v35 }
 0x277   : > { %v1101_v28 = vpop.f32.mrb[16].mxu1  ;;  %v1150_v29 = vpop.f32.mrb[4].mxu0  ;;  %v2241_v49 = vsel %vm913_vm4, %v2236_v22, 0  ;;  %v2192_v48 = vsel %vm913_vm4, %v2187_v25, 0 }
 0x278   : > { %v1102_v30 = vadd.f32 %v1101_v28, %v881_v19  ;;  %v1151_v33 = vadd.f32 %v1150_v29, %v882_v20  ;;  %v6057_v39 = vpop.f32.mrb[17].mxu1  ;;  %v6063_v40 = vpop.f32.mrb[5].mxu0 }
 0x279   : > { %2547 = vmax.xlane.f32.xlu0 %v2546_v41  ;;  %v1104_v44 = vpop.f32.mrb[18].mxu1  ;;  %v1153_v53 = vpop.f32.mrb[6].mxu0 }
 0x27a   : > { %2482 = vst.msk [vmem:[#allocation3 + $0x18] sm:$0xff] %vm913_vm4, %v1102_v30  ;;  %2483 = vst.msk [vmem:[#allocation3 + $0x20] sm:$0xff] %vm913_vm4, %v1151_v33  ;;  %v6058_v54 = vpop.f32.mrb[19].mxu1  ;;  %v6064_v45 = vpop.f32.mrb[7].mxu0  ;;  %v7368_v46 = vsel %vm2513_vm5, %v1151_v33, -1e+30 }
 0x27b   : > { %v7372_v47 = vsel %vm2513_vm5, %v1102_v30, -1e+30  ;;  %6182 = vmatmul.mubr.msk.bf16.vlgmr.msra.gmra.mrb[44].mxu0 %vm913_vm4, %v7163_v3  ;;  %6188 = vmatmul.mubr.msk.bf16.vlgmr.msra.gmra.mrb[60].mxu1 %vm913_vm4, %v7161_v1  ;;  %v2558_v50 = vsel %vm913_vm4, %v7368_v46, -inf  ;;  %v886_v44 = vld [vmem:[#allocation3 + $0x40] sm:$0xff]  ;;  %v887_v53 = vld [vmem:[#allocation3 + $0x48] sm:$0xff] }
 0x27c   : > { %v2555_v51 = vsel %vm913_vm4, %v7372_v47, -inf  ;;  %6192 = vmatpush3.bf16.xpose.msra.mxu0 %v2192_v48  ;;  %6198 = vmatpush3.bf16.xpose.msra.mxu1 %v2241_v49  ;;  %v2334_v57 = vpop.permute.xlu1 %2333  ;;  %v2285_v61 = vpop.permute.xlu0 %2284 }
 0x27d   : > { %2559 = vmax.xlane.f32.xlu1 %v2558_v50  ;;  %2556 = vmax.xlane.f32.xlu0 %v2555_v51  ;;  %v2339_v43 = vsel %vm913_vm4, %v2334_v57, 0  ;;  %v2290_v55 = vsel %vm913_vm4, %v2285_v61, 0 }
 0x27e   : > { %6199 = vmatprep.mubr.msk.bf16.mxu1 %vm6774_vm3, %v8506_v35  ;;  %6193 = vmatprep.mubr.msk.bf16.mxu0 %vm6774_vm3, %v8506_v35 }
 0x27f   : > { %v1199_v3 = vpop.f32.mrb[20].mxu1  ;;  %v1248_v2 = vpop.f32.mrb[8].mxu0  ;;  %6203 = vmatprep.subr.bf16.mxu0 %v8506_v35  ;;  %6209 = vmatprep.subr.bf16.mxu1 %v8506_v35 }
 0x280   : > { %v1200_v7 = vadd.f32 %v1199_v3, %v883_v52  ;;  %v1249_v11 = vadd.f32 %v1248_v2, %v884_v56  ;;  %v6069_v15 = vpop.f32.mrb[21].mxu1  ;;  %v6075_v23 = vpop.f32.mrb[9].mxu0 }
 0x281   : > { %v1202_v24 = vpop.f32.mrb[22].mxu1  ;;  %v1251_v32 = vpop.f32.mrb[10].mxu0 }
 0x282   : > { %2484 = vst.msk [vmem:[#allocation3 + $0x28] sm:$0xff] %vm913_vm4, %v1200_v7  ;;  %2485 = vst.msk [vmem:[#allocation3 + $0x30] sm:$0xff] %vm913_vm4, %v1249_v11  ;;  %v7394_v36 = vsel %vm2513_vm5, %v1249_v11, -1e+30  ;;  %v7398_v8 = vsel %vm2513_vm5, %v1200_v7, -1e+30  ;;  %v2432_v63 = vpop.permute.xlu1 %2431  ;;  %v2383_v4 = vpop.permute.xlu0 %2382 }
 0x283   : > { %v6070_v34 = vpop.f32.mrb[23].mxu1  ;;  %v6076_v58 = vpop.f32.mrb[11].mxu0  ;;  %6194 = vmatmul.mubr.msk.bf16.vlgmr.msra.gmra.mrb[48].mxu0 %vm913_vm4, %v7177_v14  ;;  %6200 = vmatmul.mubr.msk.bf16.vlgmr.msra.gmra.mrb[64].mxu1 %vm913_vm4, %v7175_v13  ;;  %v2564_v59 = vsel %vm913_vm4, %v7394_v36, -inf  ;;  %v2561_v60 = vsel %vm913_vm4, %v7398_v8, -inf  ;;  %v2437_v17 = vsel %vm913_vm4, %v2432_v63, 0  ;;  %v2388_v18 = vsel %vm913_vm4, %v2383_v4, 0 }
 0x284   : > { %6204 = vmatpush3.bf16.xpose.msra.mxu0 %v2290_v55  ;;  %6210 = vmatpush3.bf16.xpose.msra.mxu1 %v2339_v43  ;;  %v888_v24 = vld [vmem:[#allocation3 + $0x50] sm:$0xff]  ;;  %v889_v32 = vld [vmem:[#allocation3 + $0x58] sm:$0xff] }
 0x285   : > { %2565 = vmax.xlane.f32.xlu1 %v2564_v59  ;;  %2562 = vmax.xlane.f32.xlu0 %v2561_v60 }
 0x286   : > { %6211 = vmatprep.mubr.msk.bf16.mxu1 %vm6774_vm3, %v8506_v35  ;;  %6205 = vmatprep.mubr.msk.bf16.mxu0 %vm6774_vm3, %v8506_v35  ;;  %v2931_v22 = vpop.permute.xlu1 %2930  ;;  %v2980_v25 = vpop.permute.xlu0 %2979 }
 0x287   : > { %v1297_v0 = vpop.f32.mrb[24].mxu1  ;;  %6215 = vmatprep.subr.bf16.mxu0 %v8506_v35  ;;  %6221 = vmatprep.subr.bf16.mxu1 %v8506_v35  ;;  %v2937_v28 = vsel %vm2935_vm6, %v2931_v22, 0  ;;  %v2985_v29 = vsel %vm2935_vm6, %v2980_v25, 0  ;;  %v891_v22 = vld [vmem:[#allocation3 + $0x68] sm:$0xff] }
 0x288   : > { %v1298_v9 = vadd.f32 %v1297_v0, %v885_v62  ;;  %v6081_v10 = vpop.f32.mrb[25].mxu1 }
 0x289   : > { %v1300_v12 = vpop.f32.mrb[26].mxu1 }
 0x28a   : > { %2486 = vst.msk [vmem:[#allocation3 + $0x38] sm:$0xff] %vm913_vm4, %v1298_v9  ;;  %v7419_v16 = vsel %vm2513_vm5, %v1298_v9, -1e+30  ;;  %v6082_v19 = vpop.f32.mrb[27].mxu1  ;;  %v7447_v30 = vpop.permute.xlu1 %3027 }
 0x28b   : > { %6206 = vmatmul.mubr.msk.bf16.vlgmr.msra.gmra.mrb[52].mxu0 %vm913_vm4, %v7197_v27  ;;  %6212 = vmatmul.mubr.msk.bf16.vlgmr.msra.gmra.mrb[68].mxu1 %vm913_vm4, %v7195_v26  ;;  %v2567_v20 = vsel %vm913_vm4, %v7419_v16, -inf  ;;  %v7449_v33 = vpop.permute.xlu0 %3075 }
 0x28c   : > { %6216 = vmatpush3.bf16.xpose.msra.mxu0 %v2388_v18  ;;  %6222 = vmatpush3.bf16.xpose.msra.mxu1 %v2437_v17 }
 0x28d   : > { %2568 = vmax.xlane.f32.xlu0 %v2567_v20  ;;  %6223 = vmatprep.mubr.msk.bf16.mxu1 %vm6774_vm3, %v8506_v35  ;;  %v890_v20 = vld [vmem:[#allocation3 + $0x60] sm:$0xff] }
 0x28e   : > { %6217 = vmatprep.mubr.msk.bf16.mxu0 %vm6774_vm3, %v8506_v35  ;;  %6227 = vmatprep.subr.bf16.mxu0 %v8506_v35  ;;  %v7451_v39 = vpop.permute.xlu1 %3123 }
 0x28f   : > { %6233 = vmatprep.subr.bf16.mxu1 %v8506_v35  ;;  %v7453_v40 = vpop.permute.xlu0 %3171 }
 0x292   : > { %v7455_v41 = vpop.permute.xlu1 %3219 }
 0x293   : > { %6218 = vmatmul.mubr.msk.bf16.vlgmr.msra.gmra.mrb[56].mxu0 %vm913_vm4, %v7211_v38  ;;  %6224 = vmatmul.mubr.msk.bf16.vlgmr.msra.gmra.mrb[72].mxu1 %vm913_vm4, %v7209_v37  ;;  %v7457_v54 = vpop.permute.xlu0 %3267 }
 0x294   : > { %6228 = vmatpush3.bf16.msra.mxu0 %v2937_v28  ;;  %6234 = vmatpush3.bf16.msra.mxu1 %v2985_v29 }
 0x295   : > { %6235 = vmatprep.mubr.msk.bf16.mxu1 %vm6774_vm3, %v8506_v35  ;;  %6245 = vmatprep.subr.bf16.mxu1 %v8506_v35 }
 0x296   : > { %6229 = vmatprep.mubr.msk.bf16.mxu0 %vm6774_vm3, %v8506_v35  ;;  %6239 = vmatprep.subr.bf16.mxu0 %v8506_v35  ;;  %v7459_v45 = vpop.permute.xlu1 %3315 }
 0x297   : > { %v7475_v43 = vpop.permute.xlu0 %3363 }
 0x29a   : > { %v7477_v55 = vpop.permute.xlu1 %3411 }
 0x29b   : > { %v7493_v25 = vpop.permute.xlu0 %3459 }
 0x29e   : > { %v7495_v28 = vpop.permute.xlu1 %3507 }
 0x2d1   : > { %v1346_v49 = vpop.f32.mrb[12].mxu0  ;;  %v1395_v48 = vpop.f32.mrb[28].mxu1 }
 0x2d2   : > { %v1347_v50 = vadd.f32 %v1346_v49, %v886_v44  ;;  %v1396_v51 = vadd.f32 %v1395_v48, %v887_v53  ;;  %v6087_v52 = vpop.f32.mrb[13].mxu0  ;;  %v6093_v56 = vpop.f32.mrb[29].mxu1 }
 0x2d3   : > { %v1349_v57 = vpop.f32.mrb[14].mxu0  ;;  %v1398_v61 = vpop.f32.mrb[30].mxu1 }
 0x2d4   : > { %2487 = vst.msk [vmem:[#allocation3 + $0x40] sm:$0xff] %vm913_vm4, %v1347_v50  ;;  %2488 = vst.msk [vmem:[#allocation3 + $0x48] sm:$0xff] %vm913_vm4, %v1396_v51  ;;  %v6088_v3 = vpop.f32.mrb[15].mxu0  ;;  %v6094_v2 = vpop.f32.mrb[31].mxu1  ;;  %v7465_v7 = vsel %vm2513_vm5, %v1347_v50, -1e+30 }
 0x2d5   : > { %v7469_v11 = vsel %vm2513_vm5, %v1396_v51, -1e+30  ;;  %v2570_v15 = vsel %vm913_vm4, %v7465_v7, -inf }
 0x2d6   : > { %v2573_v23 = vsel %vm913_vm4, %v7469_v11, -inf  ;;  %2571 = vmax.xlane.f32.xlu1 %v2570_v15 }
 0x2d7   : > { %2574 = vmax.xlane.f32.xlu0 %v2573_v23  ;;  %v892_v23 = vld [vmem:[#allocation3 + $0x70] sm:$0xff] }
 0x2da   : > { %v1444_v34 = vpop.f32.mrb[16].mxu0  ;;  %v1493_v58 = vpop.f32.mrb[32].mxu1 }
 0x2db   : > { %v1445_v59 = vadd.f32 %v1444_v34, %v888_v24  ;;  %v1494_v60 = vadd.f32 %v1493_v58, %v889_v32  ;;  %v6099_v62 = vpop.f32.mrb[17].mxu0  ;;  %v6105_v63 = vpop.f32.mrb[33].mxu1  ;;  %v893_v24 = vld [vmem:[#allocation3 + $0x78] sm:$0xff] }
 0x2dc   : > { %v1447_v0 = vpop.f32.mrb[18].mxu0  ;;  %v1496_v4 = vpop.f32.mrb[34].mxu1 }
 0x2dd   : > { %2489 = vst.msk [vmem:[#allocation3 + $0x50] sm:$0xff] %vm913_vm4, %v1445_v59  ;;  %2490 = vst.msk [vmem:[#allocation3 + $0x58] sm:$0xff] %vm913_vm4, %v1494_v60  ;;  %v6100_v9 = vpop.f32.mrb[19].mxu0  ;;  %v6106_v10 = vpop.f32.mrb[35].mxu1  ;;  %v7483_v12 = vsel %vm2513_vm5, %v1445_v59, -1e+30 }
 0x2de   : > { %v7487_v17 = vsel %vm2513_vm5, %v1494_v60, -1e+30  ;;  %v2576_v18 = vsel %vm913_vm4, %v7483_v12, -inf  ;;  %v7511_v32 = vpop.permute.xlu0 %3651  ;;  %v7513_v34 = vpop.permute.xlu1 %3603 }
 0x2df   : > { %v2579_v19 = vsel %vm913_vm4, %v7487_v17, -inf  ;;  %2577 = vmax.xlane.f32.xlu1 %v2576_v18 }
 0x2e0   : > { %2580 = vmax.xlane.f32.xlu0 %v2579_v19 }
 0x2e2   : > { %v1542_v29 = vpop.f32.mrb[20].mxu0  ;;  %v1591_v44 = vpop.f32.mrb[36].mxu1 }
 0x2e3   : > { %v1543_v53 = vadd.f32 %v1542_v29, %v890_v20  ;;  %v1592_v49 = vadd.f32 %v1591_v44, %v891_v22  ;;  %v6111_v48 = vpop.f32.mrb[21].mxu0  ;;  %v6117_v50 = vpop.f32.mrb[37].mxu1  ;;  %v894_v44 = vld [vmem:[#allocation3 + $0x80] sm:$0xff] }
 0x2e4   : > { %v1545_v51 = vpop.f32.mrb[22].mxu0  ;;  %v1594_v52 = vpop.f32.mrb[38].mxu1 }
 0x2e5   : > { %2491 = vst.msk [vmem:[#allocation3 + $0x60] sm:$0xff] %vm913_vm4, %v1543_v53  ;;  %2492 = vst.msk [vmem:[#allocation3 + $0x68] sm:$0xff] %vm913_vm4, %v1592_v49  ;;  %v6112_v56 = vpop.f32.mrb[23].mxu0  ;;  %v6118_v57 = vpop.f32.mrb[39].mxu1  ;;  %v7501_v61 = vsel %vm2513_vm5, %v1543_v53, -1e+30 }
 0x2e6   : > { %v7505_v3 = vsel %vm2513_vm5, %v1592_v49, -1e+30  ;;  %v2582_v2 = vsel %vm913_vm4, %v7501_v61, -inf  ;;  %v895_v53 = vld [vmem:[#allocation3 + $0x88] sm:$0xff]  ;;  %v7529_v49 = vpop.permute.xlu0 %3747  ;;  %v7531_v48 = vpop.permute.xlu1 %3699 }
 0x2e7   : > { %v2585_v15 = vsel %vm913_vm4, %v7505_v3, -inf  ;;  %2583 = vmax.xlane.f32.xlu1 %v2582_v2  ;;  %8520 = vst [vmem:[#allocation8_spill] sm:$0xff] %v7529_v49  ;;  %8521 = vst [vmem:[#allocation9_spill] sm:$0xff] %v7531_v48 }
 0x2e8   : > { %2586 = vmax.xlane.f32.xlu0 %v2585_v15 }
 0x2ea   : > { %v1640_v58 = vpop.f32.mrb[24].mxu0  ;;  %v1689_v59 = vpop.f32.mrb[40].mxu1 }
 0x2eb   : > { %v1641_v60 = vadd.f32 %v1640_v58, %v892_v23  ;;  %v1690_v62 = vadd.f32 %v1689_v59, %v893_v24  ;;  %v6123_v63 = vpop.f32.mrb[25].mxu0  ;;  %v6129_v0 = vpop.f32.mrb[41].mxu1  ;;  %v896_v59 = vld [vmem:[#allocation3 + $0x90] sm:$0xff] }
 0x2ec   : > { %v1643_v4 = vpop.f32.mrb[26].mxu0  ;;  %v1692_v9 = vpop.f32.mrb[42].mxu1 }
 0x2ed   : > { %2493 = vst.msk [vmem:[#allocation3 + $0x70] sm:$0xff] %vm913_vm4, %v1641_v60  ;;  %2494 = vst.msk [vmem:[#allocation3 + $0x78] sm:$0xff] %vm913_vm4, %v1690_v62  ;;  %v6124_v10 = vpop.f32.mrb[27].mxu0  ;;  %v6130_v18 = vpop.f32.mrb[43].mxu1  ;;  %v7519_v19 = vsel %vm2513_vm5, %v1641_v60, -1e+30 }
 0x2ee   : > { %v7523_v20 = vsel %vm2513_vm5, %v1690_v62, -1e+30  ;;  %v2588_v22 = vsel %vm913_vm4, %v7519_v19, -inf  ;;  %v897_v60 = vld [vmem:[#allocation3 + $0x98] sm:$0xff]  ;;  %v7541_v62 = vpop.permute.xlu0 %3843  ;;  %v7543_v63 = vpop.permute.xlu1 %3795 }
 0x2ef   : > { %v2591_v29 = vsel %vm913_vm4, %v7523_v20, -inf  ;;  %2589 = vmax.xlane.f32.xlu1 %v2588_v22  ;;  %8522 = vst [vmem:[#allocation10_spill] sm:$0xff] %v7541_v62  ;;  %8523 = vst [vmem:[#allocation11_spill] sm:$0xff] %v7543_v63 }
 0x2f0   : > { %2592 = vmax.xlane.f32.xlu0 %v2591_v29 }
 0x2f2   : > { %v1738_v50 = vpop.f32.mrb[28].mxu0  ;;  %v1787_v51 = vpop.f32.mrb[44].mxu1 }
 0x2f3   : > { %v7533_v52 = vadd.f32 %v1738_v50, %v894_v44  ;;  %v7535_v56 = vadd.f32 %v1787_v51, %v895_v53  ;;  %v6135_v57 = vpop.f32.mrb[29].mxu0  ;;  %v6141_v2 = vpop.f32.mrb[45].mxu1  ;;  %v898_v51 = vld [vmem:[#allocation3 + $0xa0] sm:$0xff] }
 0x2f4   : > { %v1741_v15 = vpop.f32.mrb[30].mxu0  ;;  %v1790_v23 = vpop.f32.mrb[46].mxu1  ;;  %v899_v57 = vld [vmem:[#allocation3 + $0xa8] sm:$0xff] }
 0x2f5   : > { %2495 = vst.msk [vmem:[#allocation3 + $0x80] sm:$0xff] %vm913_vm4, %v7533_v52  ;;  %2496 = vst.msk [vmem:[#allocation3 + $0x88] sm:$0xff] %vm913_vm4, %v7535_v56  ;;  %v6136_v24 = vpop.f32.mrb[31].mxu0  ;;  %v6142_v58 = vpop.f32.mrb[47].mxu1 }
 0x2f6   : > { %v7555_v2 = vpop.permute.xlu0 %4035  ;;  %v7557_v15 = vpop.permute.xlu1 %3891 }
 0x2f7   : > { %8524 = vst [vmem:[#allocation12_spill] sm:$0xff] %v7555_v2  ;;  %8525 = vst [vmem:[#allocation13_spill] sm:$0xff] %v7557_v15 }
 0x2fa   : > { %v1836_v0 = vpop.f32.mrb[32].mxu0  ;;  %v1885_v4 = vpop.f32.mrb[48].mxu1 }
 0x2fb   : > { %v7545_v9 = vadd.f32 %v1836_v0, %v896_v59  ;;  %v7547_v10 = vadd.f32 %v1885_v4, %v897_v60  ;;  %v6147_v18 = vpop.f32.mrb[33].mxu0  ;;  %v6153_v22 = vpop.f32.mrb[49].mxu1 }
 0x2fc   : > { %v1839_v29 = vpop.f32.mrb[34].mxu0  ;;  %v1888_v44 = vpop.f32.mrb[50].mxu1 }
 0x2fd   : > { %2497 = vst.msk [vmem:[#allocation3 + $0x90] sm:$0xff] %vm913_vm4, %v7545_v9  ;;  %2498 = vst.msk [vmem:[#allocation3 + $0x98] sm:$0xff] %vm913_vm4, %v7547_v10  ;;  %v6148_v53 = vpop.f32.mrb[35].mxu0  ;;  %v6154_v50 = vpop.f32.mrb[51].mxu1  ;;  %v900_v29 = vld [vmem:[#allocation3 + $0xb0] sm:$0xff] }
 0x2fe   : > { %v7568_v44 = vpop.permute.xlu0 %3555  ;;  %v901_v53 = vld [vmem:[#allocation3 + $0xb8] sm:$0xff] }
 0x300   : > { %4179 = vrot.lane.b32.xlu1 %v7177_v14, %s6778_s18 }
 0x302   : > { %v1934_v23 = vpop.f32.mrb[36].mxu0  ;;  %v1983_v24 = vpop.f32.mrb[52].mxu1 }
 0x303   : > { %v7559_v58 = vadd.f32 %v1934_v23, %v898_v51  ;;  %v1984_v59 = vadd.f32 %v1983_v24, %v899_v57  ;;  %v6159_v60 = vpop.f32.mrb[37].mxu0  ;;  %v6165_v0 = vpop.f32.mrb[53].mxu1 }
 0x304   : > { %4227 = vrot.lane.b32.xlu1 %v7175_v13, %s6778_s18  ;;  %v1986_v4 = vpop.f32.mrb[54].mxu1  ;;  %v1937_v18 = vpop.f32.mrb[38].mxu0 }
 0x305   : > { %2499 = vst.msk [vmem:[#allocation3 + $0xa0] sm:$0xff] %vm913_vm4, %v7559_v58  ;;  %2500 = vst.msk [vmem:[#allocation3 + $0xa8] sm:$0xff] %vm913_vm4, %v1984_v59  ;;  %v6166_v14 = vpop.f32.mrb[55].mxu1  ;;  %v6160_v22 = vpop.f32.mrb[39].mxu0 }
 0x306   : > { %4131 = vrot.lane.b32.xlu0 %v7161_v1, %s6778_s18  ;;  %v7570_v51 = vpop.permute.xlu1 %3987  ;;  %v7577_v14 = vpop.permute.xlu0 %3939 }
 0x307   : > { %8526 = vst [vmem:[#allocation14_spill] sm:$0xff] %v7570_v51  ;;  %8527 = vst [vmem:[#allocation15_spill] sm:$0xff] %v7577_v14 }
 0x30a   : > { %v2032_v50 = vpop.f32.mrb[40].mxu0  ;;  %v2081_v57 = vpop.f32.mrb[56].mxu1 }
 0x30b   : > { %v7572_v13 = vadd.f32 %v2032_v50, %v900_v29  ;;  %v2082_v23 = vadd.f32 %v2081_v57, %v901_v53  ;;  %v6171_v24 = vpop.f32.mrb[41].mxu0  ;;  %v6177_v1 = vpop.f32.mrb[57].mxu1 }
 0x30c   : > { %v2035_v60 = vpop.f32.mrb[42].mxu0  ;;  %v2084_v0 = vpop.f32.mrb[58].mxu1 }
 0x30d   : > { %2501 = vst.msk [vmem:[#allocation3 + $0xb0] sm:$0xff] %vm913_vm4, %v7572_v13  ;;  %2502 = vst.msk [vmem:[#allocation3 + $0xb8] sm:$0xff] %vm913_vm4, %v2082_v23  ;;  %v6172_v4 = vpop.f32.mrb[43].mxu0  ;;  %v6178_v18 = vpop.f32.mrb[59].mxu1 }
 0x30e   : > { %v7579_v22 = vpop.permute.xlu1 %4083  ;;  %v2554_v31 = vpop.xlane.xlu0 %2553  ;;  %v7587_v4 = vsel %vm2513_vm5, %v7535_v56, -1e+30 }
 0x30f   : > { %8528 = vst [vmem:[#allocation16_spill] sm:$0xff] %v7579_v22  ;;  %v2644_v57 = vsub.f32 %v7348_v6, %v2554_v31  ;;  %v7595_v31 = vsel %vm2513_vm5, %v7533_v52, -1e+30  ;;  %v7600_v6 = vsel %vm2513_vm5, %v7547_v10, -1e+30 }
 0x310   : > { %v7609_v52 = vsel %vm2513_vm5, %v1984_v59, -1e+30  ;;  %v7614_v10 = vsel %vm2513_vm5, %v7545_v9, -1e+30 }
 0x311   : > { %v2678_v1 = vmul.f32 1.442695, %v2644_v57 }
 0x312   : > { %v2551_v29 = vpop.xlane.xlu1 %2550  ;;  %v2548_v53 = vpop.xlane.xlu0 %2547 }
 0x313   : > { %v2643_v50 = vsub.f32 %v7344_v5, %v2551_v29  ;;  %v2642_v60 = vsub.f32 %v7358_v21, %v2548_v53  ;;  %v2597_v5 = vsel %vm913_vm4, %v7587_v4, -inf  ;;  %v2603_v29 = vsel %vm913_vm4, %v7600_v6, -inf }
 0x314   : > { %v2600_v53 = vsel %vm913_vm4, %v7614_v10, -inf }
 0x315   : > { %v2676_v24 = vmul.f32 1.442695, %v2643_v50  ;;  %v2674_v18 = vmul.f32 1.442695, %v2642_v60  ;;  %v7633_v60 = vsel %vm2513_vm5, %v2082_v23, -1e+30 }
 0x316   : > { %v2557_v0 = vpop.xlane.xlu0 %2556  ;;  %v2560_v22 = vpop.xlane.xlu1 %2559 }
 0x317   : > { %6607 = vpow2.f32 %v2676_v24  ;;  %v2645_v35 = vsub.f32 %v7372_v47, %v2557_v0  ;;  %v2646_v21 = vsub.f32 %v7368_v46, %v2560_v22  ;;  %v2594_v47 = vsel %vm913_vm4, %v7595_v31, -inf }
 0x318   : > { %6609 = vpow2.f32 %v2678_v1  ;;  %v2609_v22 = vsel %vm913_vm4, %v7609_v52, -inf }
 0x319   : > { %6611 = vpow2.f32 %v2674_v18  ;;  %v2680_v56 = vmul.f32 1.442695, %v2645_v35  ;;  %v2682_v50 = vmul.f32 1.442695, %v2646_v21  ;;  %v2615_v18 = vsel %vm913_vm4, %v7633_v60, -inf }
 0x31a   : > { %v2566_v46 = vpop.xlane.xlu1 %2565  ;;  %v7644_v21 = vsel %vm2513_vm5, %v7559_v58, -1e+30  ;;  %v2563_v58 = vpop.xlane.xlu0 %2562 }
 0x31b   : > { %6613 = vpow2.f32 %v2680_v56  ;;  %v2648_v59 = vsub.f32 %v7394_v36, %v2566_v46  ;;  %v2606_v23 = vsel %vm913_vm4, %v7644_v21, -inf }
 0x31c   : > { %6615 = vpow2.f32 %v2682_v50  ;;  %v7657_v50 = vsel %vm2513_vm5, %v7572_v13, -1e+30 }
 0x31d   : > { %v2686_v0 = vmul.f32 1.442695, %v2648_v59  ;;  %v2612_v46 = vsel %vm913_vm4, %v7657_v50, -inf }
 0x31f   : > { %6617 = vpow2.f32 %v2686_v0  ;;  %v902_v0 = vld [vmem:[#allocation3 + $0xc0] sm:$0xff] }
 0x321   : > { %v7616_v35 = vpop.eup %6607 }
 0x322   : > { %v7622_v57 = vpop.eup %6609  ;;  %v2741_v9 = vsel %vm913_vm4, %v7616_v35, 0.0 }
 0x323   : > { %v2744_v24 = vsel %vm913_vm4, %v7622_v57, 0.0  ;;  %v7629_v1 = vpop.eup %6611 }
 0x324   : > { %v2738_v36 = vsel %vm913_vm4, %v7629_v1, 0.0 }
 0x325   : > { %2598 = vmax.xlane.f32.xlu0 %v2597_v5  ;;  %v7639_v5 = vpop.eup %6613 }
 0x326   : > { %v2747_v56 = vsel %vm913_vm4, %v7639_v5, 0.0 }
 0x328   : > { %2595 = vmax.xlane.f32.xlu1 %v2594_v47  ;;  %v7650_v47 = vpop.eup %6615 }
 0x329   : > { %2604 = vmax.xlane.f32.xlu0 %v2603_v29  ;;  %v2750_v29 = vsel %vm913_vm4, %v7650_v47, 0.0 }
 0x32c   : > { %2601 = vmax.xlane.f32.xlu1 %v2600_v53  ;;  %v2647_v53 = vsub.f32 %v7398_v8, %v2563_v58 }
 0x32d   : > { %2610 = vmax.xlane.f32.xlu0 %v2609_v22  ;;  %v7661_v22 = vpop.eup %6617 }
 0x32e   : > { %v2756_v59 = vsel %vm913_vm4, %v7661_v22, 0.0 }
 0x330   : > { %2745 = vadd.xlane.f32.xlu1 %v2744_v24  ;;  %v2569_v24 = vpop.xlane.xlu0 %2568 }
 0x331   : > { %2742 = vadd.xlane.f32.xlu0 %v2741_v9  ;;  %v2684_v9 = vmul.f32 1.442695, %v2647_v53  ;;  %v2649_v13 = vsub.f32 %v7419_v16, %v2569_v24  ;;  %v904_v24 = vld [vmem:[#allocation3 + $0xd0] sm:$0xff] }
 0x333   : > { %6619 = vpow2.f32 %v2684_v9 }
 0x334   : > { %2739 = vadd.xlane.f32.xlu1 %v2738_v36  ;;  %v2688_v36 = vmul.f32 1.442695, %v2649_v13  ;;  %v905_v13 = vld [vmem:[#allocation3 + $0xd8] sm:$0xff] }
 0x335   : > { %2616 = vmax.xlane.f32.xlu0 %v2615_v18  ;;  %v903_v18 = vld [vmem:[#allocation3 + $0xc8] sm:$0xff] }
 0x336   : > { %6621 = vpow2.f32 %v2688_v36 }
 0x338   : > { %2607 = vmax.xlane.f32.xlu1 %v2606_v23 }
 0x339   : > { %2748 = vadd.xlane.f32.xlu0 %v2747_v56 }
 0x33c   : > { %2751 = vadd.xlane.f32.xlu1 %v2750_v29 }
 0x33d   : > { %v7681_v9 = vpop.eup %6619 }
 0x340   : > { %2613 = vmax.xlane.f32.xlu1 %v2612_v46 }
 0x344   : > { %2757 = vadd.xlane.f32.xlu1 %v2756_v59 }
 0x34e   : > { %v2130_v23 = vpop.f32.mrb[44].mxu0  ;;  %v2179_v56 = vpop.f32.mrb[60].mxu1 }
 0x34f   : > { %v2131_v29 = vadd.f32 %v2130_v23, %v902_v0  ;;  %v2180_v51 = vadd.f32 %v2179_v56, %v903_v18  ;;  %v6183_v2 = vpop.f32.mrb[45].mxu0  ;;  %v6189_v46 = vpop.f32.mrb[61].mxu1 }
 0x350   : > { %v2133_v15 = vpop.f32.mrb[46].mxu0  ;;  %v2182_v8 = vpop.f32.mrb[62].mxu1 }
 0x351   : > { %2503 = vst.msk [vmem:[#allocation3 + $0xc0] sm:$0xff] %vm913_vm4, %v2131_v29  ;;  %v7670_v58 = vsel %vm2513_vm5, %v2131_v29, -1e+30  ;;  %2504 = vst.msk [vmem:[#allocation3 + $0xc8] sm:$0xff] %vm913_vm4, %v2180_v51  ;;  %v7675_v16 = vsel %vm2513_vm5, %v2180_v51, -1e+30 }
 0x352   : > { %v6184_v53 = vpop.f32.mrb[47].mxu0  ;;  %v6190_v59 = vpop.f32.mrb[63].mxu1  ;;  %v2618_v2 = vsel %vm913_vm4, %v7670_v58, -inf  ;;  %v2621_v15 = vsel %vm913_vm4, %v7675_v16, -inf  ;;  %v2753_v51 = vsel %vm913_vm4, %v7681_v9, 0.0 }
 0x353   : > { %2619 = vmax.xlane.f32.xlu1 %v2618_v2  ;;  %2622 = vmax.xlane.f32.xlu0 %v2621_v15 }
 0x356   : > { %v2228_v0 = vpop.f32.mrb[48].mxu0  ;;  %v2277_v18 = vpop.f32.mrb[64].mxu1 }
 0x357   : > { %v2229_v36 = vadd.f32 %v2228_v0, %v904_v24  ;;  %v2278_v23 = vadd.f32 %v2277_v18, %v905_v13  ;;  %v6195_v56 = vpop.f32.mrb[49].mxu0  ;;  %v6201_v29 = vpop.f32.mrb[65].mxu1  ;;  %2754 = vadd.xlane.f32.xlu0 %v2753_v51  ;;  %v906_v18 = vld [vmem:[#allocation3 + $0xe0] sm:$0xff]  ;;  %v907_v51 = vld [vmem:[#allocation3 + $0xe8] sm:$0xff] }
 0x358   : > { %v2231_v46 = vpop.f32.mrb[50].mxu0  ;;  %v2280_v8 = vpop.f32.mrb[66].mxu1 }
 0x359   : > { %2505 = vst.msk [vmem:[#allocation3 + $0xd0] sm:$0xff] %vm913_vm4, %v2229_v36  ;;  %v7688_v53 = vsel %vm2513_vm5, %v2229_v36, -1e+30  ;;  %2506 = vst.msk [vmem:[#allocation3 + $0xd8] sm:$0xff] %vm913_vm4, %v2278_v23  ;;  %v7693_v59 = vsel %vm2513_vm5, %v2278_v23, -1e+30  ;;  %v7699_v0 = vpop.eup %6621 }
 0x35a   : > { %v6196_v2 = vpop.f32.mrb[51].mxu0  ;;  %v6202_v15 = vpop.f32.mrb[67].mxu1  ;;  %v2624_v24 = vsel %vm913_vm4, %v7688_v53, -inf  ;;  %v2627_v13 = vsel %vm913_vm4, %v7693_v59, -inf  ;;  %v2759_v23 = vsel %vm913_vm4, %v7699_v0, 0.0 }
 0x35b   : > { %2625 = vmax.xlane.f32.xlu1 %v2624_v24  ;;  %2628 = vmax.xlane.f32.xlu0 %v2627_v13 }
 0x35e   : > { %v2326_v36 = vpop.f32.mrb[52].mxu0  ;;  %v2375_v56 = vpop.f32.mrb[68].mxu1 }
 0x35f   : > { %v2327_v29 = vadd.f32 %v2326_v36, %v906_v18  ;;  %v2376_v46 = vadd.f32 %v2375_v56, %v907_v51  ;;  %v6207_v8 = vpop.f32.mrb[53].mxu0  ;;  %v6213_v2 = vpop.f32.mrb[69].mxu1  ;;  %2760 = vadd.xlane.f32.xlu0 %v2759_v23 }
 0x360   : > { %v2329_v15 = vpop.f32.mrb[54].mxu0  ;;  %v2378_v14 = vpop.f32.mrb[70].mxu1  ;;  %v908_v8 = vld [vmem:[#allocation3 + $0xf0] sm:$0xff]  ;;  %v909_v2 = vld [vmem:[#allocation3 + $0xf8] sm:$0xff] }
 0x361   : > { %2507 = vst.msk [vmem:[#allocation3 + $0xe0] sm:$0xff] %vm913_vm4, %v2327_v29  ;;  %v7706_v24 = vsel %vm2513_vm5, %v2327_v29, -1e+30  ;;  %2508 = vst.msk [vmem:[#allocation3 + $0xe8] sm:$0xff] %vm913_vm4, %v2376_v46  ;;  %v7711_v13 = vsel %vm2513_vm5, %v2376_v46, -1e+30 }
 0x362   : > { %v6208_v63 = vpop.f32.mrb[55].mxu0  ;;  %v6214_v18 = vpop.f32.mrb[71].mxu1  ;;  %v2630_v51 = vsel %vm913_vm4, %v7706_v24, -inf  ;;  %v2633_v14 = vsel %vm913_vm4, %v7711_v13, -inf }
 0x363   : > { %2631 = vmax.xlane.f32.xlu1 %v2630_v51  ;;  %2634 = vmax.xlane.f32.xlu0 %v2633_v14  ;;  %v2572_v36 = vpop.xlane.xlu1 %2571 }
 0x364   : > { %v2575_v56 = vpop.xlane.xlu0 %2574  ;;  %v2650_v23 = vsub.f32 %v7465_v7, %v2572_v36 }
 0x365   : > { %v2651_v29 = vsub.f32 %v7469_v11, %v2575_v56 }
 0x366   : > { %v2690_v46 = vmul.f32 1.442695, %v2650_v23  ;;  %v2424_v63 = vpop.f32.mrb[56].mxu0  ;;  %v2473_v18 = vpop.f32.mrb[72].mxu1 }
 0x367   : > { %v2692_v15 = vmul.f32 1.442695, %v2651_v29  ;;  %v2425_v62 = vadd.f32 %v2424_v63, %v908_v8  ;;  %v2474_v38 = vadd.f32 %v2473_v18, %v909_v2  ;;  %v6219_v37 = vpop.f32.mrb[57].mxu0  ;;  %v6225_v49 = vpop.f32.mrb[73].mxu1 }
 0x368   : > { %6623 = vpow2.f32 %v2690_v46  ;;  %v2427_v48 = vpop.f32.mrb[58].mxu0  ;;  %v2476_v51 = vpop.f32.mrb[74].mxu1 }
 0x369   : > { %6625 = vpow2.f32 %v2692_v15  ;;  %2509 = vst.msk [vmem:[#allocation3 + $0xf0] sm:$0xff] %vm913_vm4, %v2425_v62  ;;  %v7722_v7 = vsel %vm2513_vm5, %v2425_v62, -1e+30  ;;  %2510 = vst.msk [vmem:[#allocation3 + $0xf8] sm:$0xff] %vm913_vm4, %v2474_v38  ;;  %v7727_v11 = vsel %vm2513_vm5, %v2474_v38, -1e+30 }
 0x36a   : > { %v6220_v14 = vpop.f32.mrb[59].mxu0  ;;  %v6226_v36 = vpop.f32.mrb[75].mxu1  ;;  %v2636_v37 = vsel %vm913_vm4, %v7722_v7, -inf  ;;  %v2639_v49 = vsel %vm913_vm4, %v7727_v11, -inf }
 0x36b   : > { %2637 = vmax.xlane.f32.xlu1 %v2636_v37  ;;  %2640 = vmax.xlane.f32.xlu0 %v2639_v49 }
 0x36c   : > { %v2578_v48 = vpop.xlane.xlu1 %2577 }
 0x36d   : > { %v2581_v56 = vpop.xlane.xlu0 %2580  ;;  %v2652_v62 = vsub.f32 %v7483_v12, %v2578_v48 }
 0x36e   : > { %v2653_v23 = vsub.f32 %v7487_v17, %v2581_v56 }
 0x36f   : > { %v2694_v29 = vmul.f32 1.442695, %v2652_v62 }
 0x370   : > { %v2696_v42 = vmul.f32 1.442695, %v2653_v23 }
 0x371   : > { %6627 = vpow2.f32 %v2694_v29 }
 0x372   : > { %v7735_v38 = vpop.eup %6623  ;;  %6629 = vpow2.f32 %v2696_v42 }
 0x373   : > { %v7737_v8 = vpop.eup %6625  ;;  %v2762_v2 = vsel %vm913_vm4, %v7735_v38, 0.0 }
 0x374   : > { %v2584_v46 = vpop.xlane.xlu1 %2583  ;;  %2763 = vadd.xlane.f32.xlu1 %v2762_v2  ;;  %v2765_v63 = vsel %vm913_vm4, %v7737_v8, 0.0 }
 0x375   : > { %v2587_v15 = vpop.xlane.xlu0 %2586  ;;  %v2654_v12 = vsub.f32 %v7501_v61, %v2584_v46  ;;  %2766 = vadd.xlane.f32.xlu0 %v2765_v63 }
 0x376   : > { %v2655_v17 = vsub.f32 %v7505_v3, %v2587_v15 }
 0x377   : > { %v2698_v18 = vmul.f32 1.442695, %v2654_v12 }
 0x378   : > { %v2700_v51 = vmul.f32 1.442695, %v2655_v17 }
 0x379   : > { %6631 = vpow2.f32 %v2698_v18 }
 0x37a   : > { %6633 = vpow2.f32 %v2700_v51 }
 0x37b   : > { %v7745_v14 = vpop.eup %6627 }
 0x37c   : > { %v7747_v36 = vpop.eup %6629  ;;  %v2590_v37 = vpop.xlane.xlu1 %2589  ;;  %v2768_v48 = vsel %vm913_vm4, %v7745_v14, 0.0 }
 0x37d   : > { %v2593_v49 = vpop.xlane.xlu0 %2592  ;;  %v2656_v56 = vsub.f32 %v7519_v19, %v2590_v37  ;;  %2769 = vadd.xlane.f32.xlu1 %v2768_v48  ;;  %v2771_v3 = vsel %vm913_vm4, %v7747_v36, 0.0 }
 0x37e   : > { %v2657_v61 = vsub.f32 %v7523_v20, %v2593_v49  ;;  %2772 = vadd.xlane.f32.xlu0 %v2771_v3 }
 0x37f   : > { %v2702_v62 = vmul.f32 1.442695, %v2656_v56 }
 0x380   : > { %v2704_v23 = vmul.f32 1.442695, %v2657_v61  ;;  %v7771_v12 = vpop.permute.xlu1 %4179 }
 0x381   : > { %6635 = vpow2.f32 %v2702_v62  ;;  %v7773_v17 = vpop.permute.xlu0 %4131 }
 0x382   : > { %6637 = vpow2.f32 %v2704_v23 }
 0x383   : > { %v7755_v29 = vpop.eup %6631 }
 0x384   : > { %v7757_v42 = vpop.eup %6633  ;;  %v2774_v2 = vsel %vm913_vm4, %v7755_v29, 0.0  ;;  %v7775_v18 = vpop.permute.xlu1 %4227 }
 0x385   : > { %2775 = vadd.xlane.f32.xlu1 %v2774_v2  ;;  %v2777_v19 = vsel %vm913_vm4, %v7757_v42, 0.0  ;;  %8529 = vst [vmem:[#allocation17_spill] sm:$0xff] %v7775_v18 }
 0x386   : > { %2778 = vadd.xlane.f32.xlu0 %v2777_v19 }
 0x38b   : > { %v7763_v20 = vpop.eup %6635 }
 0x38c   : > { %v7765_v46 = vpop.eup %6637  ;;  %v2780_v15 = vsel %vm913_vm4, %v7763_v20, 0.0 }
 0x38d   : > { %2781 = vadd.xlane.f32.xlu1 %v2780_v15  ;;  %v2783_v63 = vsel %vm913_vm4, %v7765_v46, 0.0 }
 0x38e   : > { %2784 = vadd.xlane.f32.xlu0 %v2783_v63 }
 0x3b2   : > { %v2599_v51 = vpop.xlane.xlu0 %2598 }
 0x3b3   : > { %v2659_v37 = vsub.f32 %v7587_v4, %v2599_v51 }
 0x3b5   : > { %v2708_v49 = vmul.f32 1.442695, %v2659_v37  ;;  %v2596_v48 = vpop.xlane.xlu1 %2595 }
 0x3b6   : > { %v2605_v56 = vpop.xlane.xlu0 %2604  ;;  %v2658_v61 = vsub.f32 %v7595_v31, %v2596_v48 }
 0x3b7   : > { %6639 = vpow2.f32 %v2708_v49  ;;  %v2661_v3 = vsub.f32 %v7600_v6, %v2605_v56 }
 0x3b8   : > { %v2706_v62 = vmul.f32 1.442695, %v2658_v61 }
 0x3b9   : > { %v2712_v23 = vmul.f32 1.442695, %v2661_v3  ;;  %v2602_v2 = vpop.xlane.xlu1 %2601 }
 0x3ba   : > { %v2611_v19 = vpop.xlane.xlu0 %2610  ;;  %6641 = vpow2.f32 %v2706_v62  ;;  %v2660_v15 = vsub.f32 %v7614_v10, %v2602_v2 }
 0x3bb   : > { %v2663_v63 = vsub.f32 %v7609_v52, %v2611_v19  ;;  %6643 = vpow2.f32 %v2712_v23 }
 0x3bc   : > { %v2710_v18 = vmul.f32 1.442695, %v2660_v15 }
 0x3bd   : > { %v2716_v4 = vmul.f32 1.442695, %v2663_v63  ;;  %v2746_v51 = vpop.xlane.xlu1 %2745 }
 0x3be   : > { %v2743_v37 = vpop.xlane.xlu0 %2742  ;;  %6645 = vpow2.f32 %v2710_v18 }
 0x3bf   : > { %6647 = vpow2.f32 %v2716_v4 }
 0x3c0   : > { %6649 = vrcp.f32 %v2743_v37 }
 0x3c1   : > { %v7782_v49 = vpop.eup %6639  ;;  %v2740_v31 = vpop.xlane.xlu1 %2739 }
 0x3c2   : > { %v2617_v6 = vpop.xlane.xlu0 %2616  ;;  %v2789_v48 = vsel %vm913_vm4, %v7782_v49, 0.0  ;;  %6651 = vrcp.f32 %v2740_v31 }
 0x3c3   : > { %v2665_v10 = vsub.f32 %v7633_v60, %v2617_v6  ;;  %2790 = vadd.xlane.f32.xlu0 %v2789_v48  ;;  %6653 = vrcp.f32 %v2746_v51 }
 0x3c4   : > { %v7787_v52 = vpop.eup %6641 }
 0x3c5   : > { %v2720_v56 = vmul.f32 1.442695, %v2665_v10  ;;  %v7789_v61 = vpop.eup %6643  ;;  %v2608_v18 = vpop.xlane.xlu1 %2607  ;;  %v2786_v62 = vsel %vm913_vm4, %v7787_v52, 0.0 }
 0x3c6   : > { %v2749_v3 = vpop.xlane.xlu0 %2748  ;;  %v2662_v23 = vsub.f32 %v7644_v21, %v2608_v18  ;;  %2787 = vadd.xlane.f32.xlu1 %v2786_v62  ;;  %v2795_v2 = vsel %vm913_vm4, %v7789_v61, 0.0 }
 0x3c7   : > { %6655 = vpow2.f32 %v2720_v56  ;;  %2796 = vadd.xlane.f32.xlu0 %v2795_v2 }
 0x3c8   : > { %6657 = vrcp.f32 %v2749_v3  ;;  %v7796_v60 = vpop.eup %6645  ;;  %v2714_v19 = vmul.f32 1.442695, %v2662_v23  ;;  %v3081_v23 = vsel %vm2935_vm6, %v7449_v33, 0 }
 0x3c9   : > { %v7798_v15 = vpop.eup %6647  ;;  %v2752_v63 = vpop.xlane.xlu1 %2751  ;;  %v2792_v4 = vsel %vm913_vm4, %v7796_v60, 0.0 }
 0x3ca   : > { %6659 = vpow2.f32 %v2714_v19  ;;  %2793 = vadd.xlane.f32.xlu1 %v2792_v4  ;;  %v2801_v21 = vsel %vm913_vm4, %v7798_v15, 0.0  ;;  %v6650_v51 = vpop.eup %6649  ;;  %v8530_v4 = vmov 0.0  }
 0x3cb   : > { %2802 = vadd.xlane.f32.xlu0 %v2801_v21  ;;  %v2867_v31 = vmul.f32 %v6650_v51, %v7616_v35  ;;  %6661 = vrcp.f32 %v2752_v63  ;;  %v3033_v35 = vsel %vm2935_vm6, %v7447_v30, 0 }
 0x3cc   : > { %v6652_v37 = vpop.eup %6651 }
 0x3cd   : > { %v2866_v6 = vmul.f32 %v6652_v37, %v7629_v1  ;;  %v2614_v48 = vpop.xlane.xlu1 %2613  ;;  %v2899_v56 = vpack.c.bf16 %v2867_v31, %v2867_v31  ;;  %v6654_v18 = vpop.eup %6653  ;;  %v3177_v37 = vsel %vm2935_vm6, %v7453_v40, 0  ;;  %v3129_v31 = vsel %vm2935_vm6, %v7451_v39, 0 }
 0x3ce   : > { %v2664_v10 = vsub.f32 %v7657_v50, %v2614_v48  ;;  %v2868_v33 = vmul.f32 %v6654_v18, %v7622_v57 }
 0x3cf   : > { %v2898_v3 = vpack.c.bf16 %v2866_v6, %v2866_v6  ;;  %6236 = vmatmul.mubr.msk.bf16.vlgmr.msra.gmra.mrb[76].mxu1 %vm913_vm4, %v2899_v56 }
 0x3d0   : > { %v2718_v2 = vmul.f32 1.442695, %v2664_v10  ;;  %6246 = vmatpush3.bf16.msra.mxu1 %v3081_v23  ;;  %6247 = vmatprep.mubr.msk.bf16.mxu1 %vm6774_vm3, %v8530_v4  ;;  %v2900_v57 = vpack.c.bf16 %v2868_v33, %v2868_v33 }
 0x3d1   : > { %v7807_v62 = vpop.eup %6655  ;;  %6230 = vmatmul.mubr.msk.bf16.vlgmr.msra.gmra.mrb[60].mxu0 %vm913_vm4, %v2898_v3  ;;  %v2758_v63 = vpop.xlane.xlu1 %2757  ;;  %6257 = vmatprep.subr.bf16.mxu1 %v8530_v4 }
 0x3d2   : > { %v6658_v19 = vpop.eup %6657  ;;  %v2807_v1 = vsel %vm913_vm4, %v7807_v62, 0.0  ;;  %6663 = vpow2.f32 %v2718_v2  ;;  %6240 = vmatpush3.bf16.msra.mxu0 %v3033_v35  ;;  %6241 = vmatprep.mubr.msk.bf16.mxu0 %vm6774_vm3, %v8530_v4 }
 0x3d3   : > { %v2869_v50 = vmul.f32 %v6658_v19, %v7639_v5  ;;  %2808 = vadd.xlane.f32.xlu0 %v2807_v1  ;;  %6251 = vmatprep.subr.bf16.mxu0 %v8530_v4  ;;  %6665 = vrcp.f32 %v2758_v63 }
 0x3d4   : > { %v7822_v30 = vpop.eup %6659 }
 0x3d5   : > { %v2901_v21 = vpack.c.bf16 %v2869_v50, %v2869_v50  ;;  %v2798_v5 = vsel %vm913_vm4, %v7822_v30, 0.0  ;;  %v6662_v51 = vpop.eup %6661 }
 0x3d6   : > { %2799 = vadd.xlane.f32.xlu1 %v2798_v5  ;;  %v2870_v6 = vmul.f32 %v6662_v51, %v7650_v47  ;;  %v3225_v47 = vsel %vm2935_vm6, %v7455_v41, 0 }
 0x3d7   : > { %6248 = vmatmul.mubr.msk.bf16.vlgmr.msra.gmra.mrb[80].mxu1 %vm913_vm4, %v2901_v21 }
 0x3d8   : > { %6258 = vmatpush3.bf16.msra.mxu1 %v3177_v37  ;;  %6259 = vmatprep.mubr.msk.bf16.mxu1 %vm6774_vm3, %v8530_v4  ;;  %v2902_v48 = vpack.c.bf16 %v2870_v6, %v2870_v6  ;;  %v3273_v6 = vsel %vm2935_vm6, %v7457_v54, 0 }
 0x3d9   : > { %6242 = vmatmul.mubr.msk.bf16.vlgmr.msra.gmra.mrb[64].mxu0 %vm913_vm4, %v2900_v57  ;;  %6269 = vmatprep.subr.bf16.mxu1 %v8530_v4 }
 0x3da   : > { %6252 = vmatpush3.bf16.msra.mxu0 %v3129_v31  ;;  %6253 = vmatprep.mubr.msk.bf16.mxu0 %vm6774_vm3, %v8530_v4 }
 0x3db   : > { %6263 = vmatprep.subr.bf16.mxu0 %v8530_v4 }
 0x3dc   : > { %v7841_v40 = vpop.eup %6663 }
 0x3dd   : > { %v2804_v39 = vsel %vm913_vm4, %v7841_v40, 0.0  ;;  %v6666_v10 = vpop.eup %6665 }
 0x3de   : > { %2805 = vadd.xlane.f32.xlu1 %v2804_v39  ;;  %v2872_v2 = vmul.f32 %v6666_v10, %v7661_v22 }
 0x3e0   : > { %v2620_v56 = vpop.xlane.xlu1 %2619  ;;  %v2623_v18 = vpop.xlane.xlu0 %2622  ;;  %v2904_v41 = vpack.c.bf16 %v2872_v2, %v2872_v2  ;;  %v3369_v2 = vsel %vm2935_vm6, %v7475_v43, 0 }
 0x3e1   : > { %v2666_v3 = vsub.f32 %v7670_v58, %v2620_v56  ;;  %v2667_v23 = vsub.f32 %v7675_v16, %v2623_v18  ;;  %6254 = vmatmul.mubr.msk.bf16.vlgmr.msra.gmra.mrb[68].mxu0 %vm913_vm4, %v2902_v48  ;;  %v3321_v16 = vsel %vm2935_vm6, %v7459_v45, 0 }
 0x3e2   : > { %6264 = vmatpush3.bf16.msra.mxu0 %v3225_v47  ;;  %6265 = vmatprep.mubr.msk.bf16.mxu0 %vm6774_vm3, %v8530_v4 }
 0x3e3   : > { %v2722_v19 = vmul.f32 1.442695, %v2666_v3  ;;  %v2724_v35 = vmul.f32 1.442695, %v2667_v23  ;;  %6275 = vmatprep.subr.bf16.mxu0 %v8530_v4 }
 0x3e4   : > { %v2755_v1 = vpop.xlane.xlu0 %2754 }
 0x3e5   : > { %6667 = vpow2.f32 %v2722_v19 }
 0x3e6   : > { %6669 = vpow2.f32 %v2724_v35 }
 0x3e7   : > { %6671 = vrcp.f32 %v2755_v1 }
 0x3e8   : > { %v2626_v58 = vpop.xlane.xlu1 %2625  ;;  %v2629_v50 = vpop.xlane.xlu0 %2628 }
 0x3e9   : > { %v2668_v33 = vsub.f32 %v7688_v53, %v2626_v58  ;;  %v2669_v63 = vsub.f32 %v7693_v59, %v2629_v50  ;;  %6266 = vmatmul.mubr.msk.bf16.vlgmr.msra.gmra.mrb[72].mxu0 %vm913_vm4, %v2904_v41 }
 0x3ea   : > { %6276 = vmatpush3.bf16.msra.mxu0 %v3321_v16  ;;  %6277 = vmatprep.mubr.msk.bf16.mxu0 %vm6774_vm3, %v8530_v4 }
 0x3eb   : > { %v2726_v22 = vmul.f32 1.442695, %v2668_v33  ;;  %v2728_v21 = vmul.f32 1.442695, %v2669_v63  ;;  %6287 = vmatprep.subr.bf16.mxu0 %v8530_v4 }
 0x3ec   : > { %v2761_v5 = vpop.xlane.xlu0 %2760 }
 0x3ed   : > { %6673 = vpow2.f32 %v2726_v22  ;;  %v3417_v22 = vsel %vm2935_vm6, %v7477_v55, 0 }
 0x3ee   : > { %6675 = vpow2.f32 %v2728_v21 }
 0x3ef   : > { %v7863_v57 = vpop.eup %6667  ;;  %6677 = vrcp.f32 %v2761_v5 }
 0x3f0   : > { %v7865_v45 = vpop.eup %6669  ;;  %v2810_v53 = vsel %vm913_vm4, %v7863_v57, 0.0  ;;  %v2632_v56 = vpop.xlane.xlu1 %2631 }
 0x3f1   : > { %v6672_v59 = vpop.eup %6671  ;;  %2811 = vadd.xlane.f32.xlu1 %v2810_v53  ;;  %v2813_v51 = vsel %vm913_vm4, %v7865_v45, 0.0  ;;  %v2635_v47 = vpop.xlane.xlu0 %2634  ;;  %v2670_v5 = vsub.f32 %v7706_v24, %v2632_v56 }
 0x3f2   : > { %v2871_v37 = vmul.f32 %v6672_v59, %v7681_v9  ;;  %2814 = vadd.xlane.f32.xlu0 %v2813_v51  ;;  %v2671_v59 = vsub.f32 %v7711_v13, %v2635_v47 }
 0x3f4   : > { %v2903_v31 = vpack.c.bf16 %v2871_v37, %v2871_v37  ;;  %v3513_v37 = vsel %vm2935_vm6, %v7495_v28, 0  ;;  %v2732_v13 = vmul.f32 1.442695, %v2671_v59 }
 0x3f6   : > { %6260 = vmatmul.mubr.msk.bf16.vlgmr.msra.gmra.mrb[84].mxu1 %vm913_vm4, %v2903_v31 }
 0x3f7   : > { %v7875_v39 = vpop.eup %6673  ;;  %6270 = vmatpush3.bf16.msra.mxu1 %v3273_v6  ;;  %6271 = vmatprep.mubr.msk.bf16.mxu1 %vm6774_vm3, %v8530_v4  ;;  %v3561_v6 = vsel %vm2935_vm6, %v7568_v44, 0 }
 0x3f8   : > { %v7879_v48 = vpop.eup %6675  ;;  %v2816_v10 = vsel %vm913_vm4, %v7875_v39, 0.0  ;;  %6281 = vmatprep.subr.bf16.mxu1 %v8530_v4  ;;  %v7887_v23 = vpop.xlane.xlu1 %2637 }
 0x3f9   : > { %v6678_v9 = vpop.eup %6677  ;;  %2817 = vadd.xlane.f32.xlu1 %v2816_v10  ;;  %v2819_v54 = vsel %vm913_vm4, %v7879_v48, 0.0  ;;  %v7891_v19 = vpop.xlane.xlu0 %2640  ;;  %v2672_v24 = vsub.f32 %v7722_v7, %v7887_v23 }
 0x3fa   : > { %v2873_v18 = vmul.f32 %v6678_v9, %v7699_v0  ;;  %2820 = vadd.xlane.f32.xlu0 %v2819_v54  ;;  %v2673_v10 = vsub.f32 %v7727_v11, %v7891_v19  ;;  %v3609_v11 = vsel %vm2935_vm6, %v7513_v34, 0 }
 0x3fb   : > { %v2734_v56 = vmul.f32 1.442695, %v2672_v24  ;;  %v8536_v24 = vld [vmem:[#allocation11_spill] sm:$0xff] }
 0x3fc   : > { %v2905_v3 = vpack.c.bf16 %v2873_v18, %v2873_v18  ;;  %v2736_v18 = vmul.f32 1.442695, %v2673_v10 }
 0x3fe   : > { %6272 = vmatmul.mubr.msk.bf16.vlgmr.msra.gmra.mrb[88].mxu1 %vm913_vm4, %v2905_v3  ;;  %v3657_v3 = vsel %vm2935_vm6, %v7511_v32, 0 }
 0x3ff   : > { %6282 = vmatpush3.bf16.msra.mxu1 %v3369_v2  ;;  %6283 = vmatprep.mubr.msk.bf16.mxu1 %vm6774_vm3, %v8530_v4 }
 0x400   : > { %6293 = vmatprep.subr.bf16.mxu1 %v8530_v4 }
 0x401   : > { %v2764_v35 = vpop.xlane.xlu1 %2763 }
 0x402   : > { %6679 = vrcp.f32 %v2764_v35  ;;  %v2767_v0 = vpop.xlane.xlu0 %2766  ;;  %v8531_v35 = vld [vmem:[#allocation9_spill] sm:$0xff] }
 0x403   : > { %6681 = vrcp.f32 %v2767_v0  ;;  %v3705_v0 = vsel %vm2935_vm6, %v8531_v35, 0 }
 0x40a   : > { %4323 = vrot.lane.b32.xlu1 %v7195_v26, %s6778_s18  ;;  %v2770_v1 = vpop.xlane.xlu1 %2769  ;;  %v3465_v26 = vsel %vm2935_vm6, %v7493_v25, 0 }
 0x40b   : > { %6683 = vrcp.f32 %v2770_v1  ;;  %v2773_v43 = vpop.xlane.xlu0 %2772 }
 0x40c   : > { %v6680_v41 = vpop.eup %6679  ;;  %6685 = vrcp.f32 %v2773_v43  ;;  %v8532_v43 = vld [vmem:[#allocation8_spill] sm:$0xff] }
 0x40d   : > { %v6682_v58 = vpop.eup %6681  ;;  %v2874_v50 = vmul.f32 %v6680_v41, %v7735_v38  ;;  %v3753_v41 = vsel %vm2935_vm6, %v8532_v43, 0 }
 0x40e   : > { %v2875_v16 = vmul.f32 %v6682_v58, %v7737_v8 }
 0x40f   : > { %v2906_v33 = vpack.c.bf16 %v2874_v50, %v2874_v50 }
 0x410   : > { %4275 = vrot.lane.b32.xlu0 %v7197_v27, %s6778_s18  ;;  %v2907_v63 = vpack.c.bf16 %v2875_v16, %v2875_v16 }
 0x411   : > { %6278 = vmatmul.mubr.msk.bf16.vlgmr.msra.gmra.mrb[76].mxu0 %vm913_vm4, %v2906_v33 }
 0x412   : > { %6288 = vmatpush3.bf16.msra.mxu0 %v3417_v22  ;;  %v2776_v21 = vpop.xlane.xlu1 %2775  ;;  %6284 = vmatmul.mubr.msk.bf16.vlgmr.msra.gmra.mrb[92].mxu1 %vm913_vm4, %v2907_v63  ;;  %v8533_v63 = vld [vmem:[#allocation6_spill] sm:$0xff]  ;;  %v8534_v22 = vld [vmem:[#allocation7_spill] sm:$0xff] }
 0x413   : > { %6687 = vrcp.f32 %v2776_v21  ;;  %6294 = vmatpush3.bf16.msra.mxu1 %v3465_v26  ;;  %v2779_v38 = vpop.xlane.xlu0 %2778  ;;  %6289 = vmatprep.mubr.msk.bf16.mxu0 %vm6774_vm3, %v8530_v4 }
 0x414   : > { %6689 = vrcp.f32 %v2779_v38  ;;  %6295 = vmatprep.mubr.msk.bf16.mxu1 %vm6774_vm3, %v8530_v4  ;;  %6299 = vmatprep.subr.bf16.mxu0 %v8530_v4 }
 0x415   : > { %v6684_v27 = vpop.eup %6683  ;;  %6305 = vmatprep.subr.bf16.mxu1 %v8530_v4 }
 0x416   : > { %v6686_v55 = vpop.eup %6685  ;;  %v2876_v25 = vmul.f32 %v6684_v27, %v7745_v14 }
 0x417   : > { %v2877_v8 = vmul.f32 %v6686_v55, %v7747_v36  ;;  %v2730_v36 = vmul.f32 1.442695, %v2670_v5 }
 0x418   : > { %v2908_v53 = vpack.c.bf16 %v2876_v25, %v2876_v25 }
 0x419   : > { %v2909_v51 = vpack.c.bf16 %v2877_v8, %v2877_v8 }
 0x41a   : > { %6290 = vmatmul.mubr.msk.bf16.vlgmr.msra.gmra.mrb[80].mxu0 %vm913_vm4, %v2908_v53  ;;  %v2782_v31 = vpop.xlane.xlu1 %2781 }
 0x41b   : > { %6300 = vmatpush3.bf16.msra.mxu0 %v3513_v37  ;;  %6691 = vrcp.f32 %v2782_v31  ;;  %6296 = vmatmul.mubr.msk.bf16.vlgmr.msra.gmra.mrb[96].mxu1 %vm913_vm4, %v2909_v51  ;;  %v2785_v14 = vpop.xlane.xlu0 %2784  ;;  %v8535_v51 = vld [vmem:[#allocation10_spill] sm:$0xff] }
 0x41c   : > { %6306 = vmatpush3.bf16.msra.mxu1 %v3561_v6  ;;  %6693 = vrcp.f32 %v2785_v14  ;;  %6301 = vmatprep.mubr.msk.bf16.mxu0 %vm6774_vm3, %v8530_v4  ;;  %v3849_v37 = vsel %vm2935_vm6, %v8535_v51, 0 }
 0x41d   : > { %v6688_v28 = vpop.eup %6687  ;;  %6307 = vmatprep.mubr.msk.bf16.mxu1 %vm6774_vm3, %v8530_v4  ;;  %6311 = vmatprep.subr.bf16.mxu0 %v8530_v4  ;;  %6695 = vpow2.f32 %v2730_v36 }
 0x41e   : > { %v6690_v44 = vpop.eup %6689  ;;  %v2878_v9 = vmul.f32 %v6688_v28, %v7755_v29  ;;  %6317 = vmatprep.subr.bf16.mxu1 %v8530_v4  ;;  %6697 = vpow2.f32 %v2732_v13  ;;  %v3801_v28 = vsel %vm2935_vm6, %v8536_v24, 0 }
 0x41f   : > { %v2879_v7 = vmul.f32 %v6690_v44, %v7757_v42  ;;  %6699 = vpow2.f32 %v2734_v56  ;;  %v8537_v44 = vld [vmem:[#allocation15_spill] sm:$0xff] }
 0x420   : > { %v2910_v54 = vpack.c.bf16 %v2878_v9, %v2878_v9  ;;  %6701 = vpow2.f32 %v2736_v18  ;;  %v3945_v9 = vsel %vm2935_vm6, %v8537_v44, 0 }
 0x421   : > { %v2911_v47 = vpack.c.bf16 %v2879_v7, %v2879_v7 }
 0x422   : > { %6302 = vmatmul.mubr.msk.bf16.vlgmr.msra.gmra.mrb[84].mxu0 %vm913_vm4, %v2910_v54  ;;  %v8538_v54 = vld [vmem:[#allocation13_spill] sm:$0xff] }
 0x423   : > { %6308 = vmatmul.mubr.msk.bf16.vlgmr.msra.gmra.mrb[100].mxu1 %vm913_vm4, %v2911_v47  ;;  %6312 = vmatpush3.bf16.msra.mxu0 %v3609_v11 }
 0x424   : > { %6318 = vmatpush3.bf16.msra.mxu1 %v3657_v3  ;;  %6313 = vmatprep.mubr.msk.bf16.mxu0 %vm6774_vm3, %v8530_v4 }
 0x425   : > { %v6692_v29 = vpop.eup %6691  ;;  %6319 = vmatprep.mubr.msk.bf16.mxu1 %vm6774_vm3, %v8530_v4  ;;  %6323 = vmatprep.subr.bf16.mxu0 %v8530_v4 }
 0x426   : > { %v6694_v34 = vpop.eup %6693  ;;  %v2880_v42 = vmul.f32 %v6692_v29, %v7763_v20  ;;  %6329 = vmatprep.subr.bf16.mxu1 %v8530_v4 }
 0x427   : > { %v2881_v32 = vmul.f32 %v6694_v34, %v7765_v46  ;;  %v7951_v19 = vpop.eup %6695 }
 0x428   : > { %v2912_v23 = vpack.c.bf16 %v2880_v42, %v2880_v42  ;;  %v7956_v1 = vpop.eup %6697  ;;  %v2822_v20 = vsel %vm913_vm4, %v7951_v19, 0.0 }
 0x429   : > { %v2913_v2 = vpack.c.bf16 %v2881_v32, %v2881_v32  ;;  %v7968_v46 = vpop.eup %6699  ;;  %v2825_v58 = vsel %vm913_vm4, %v7956_v1, 0.0 }
 0x42a   : > { %6314 = vmatmul.mubr.msk.bf16.vlgmr.msra.gmra.mrb[88].mxu0 %vm913_vm4, %v2912_v23  ;;  %v7973_v50 = vpop.eup %6701  ;;  %v2828_v16 = vsel %vm913_vm4, %v7968_v46, 0.0  ;;  %v8540_v23 = vld [vmem:[#allocation14_spill] sm:$0xff] }
 0x42b   : > { %6320 = vmatmul.mubr.msk.bf16.vlgmr.msra.gmra.mrb[104].mxu1 %vm913_vm4, %v2913_v2  ;;  %6324 = vmatpush3.bf16.msra.mxu0 %v3705_v0  ;;  %v2831_v33 = vsel %vm913_vm4, %v7973_v50, 0.0  ;;  %v3993_v2 = vsel %vm2935_vm6, %v8540_v23, 0  ;;  %v4137_v0 = vsel %vm2935_vm6, %v7773_v17, 0 }
 0x42c   : > { %6330 = vmatpush3.bf16.msra.mxu1 %v3753_v41  ;;  %6331 = vmatprep.mubr.msk.bf16.mxu1 %vm6774_vm3, %v8530_v4  ;;  %v8541_v41 = vld [vmem:[#allocation16_spill] sm:$0xff] }
 0x42d   : > { %6341 = vmatprep.subr.bf16.mxu1 %v8530_v4  ;;  %6325 = vmatprep.mubr.msk.bf16.mxu0 %vm6774_vm3, %v8530_v4 }
 0x42e   : > { %2823 = vadd.xlane.f32.xlu1 %v2822_v20  ;;  %6335 = vmatprep.subr.bf16.mxu0 %v8530_v4  ;;  %v4089_v20 = vsel %vm2935_vm6, %v8541_v41, 0 }
 0x42f   : > { %2826 = vadd.xlane.f32.xlu0 %v2825_v58 }
 0x432   : > { %2829 = vadd.xlane.f32.xlu1 %v2828_v16 }
 0x433   : > { %2832 = vadd.xlane.f32.xlu0 %v2831_v33 }
 0x443   : > { %4419 = vrot.lane.b32.xlu1 %v8533_v63, %s6778_s18 }
 0x449   : > { %4371 = vrot.lane.b32.xlu0 %v8534_v22, %s6778_s18 }
 0x450   : > { %v2791_v26 = vpop.xlane.xlu0 %2790 }
 0x451   : > { %6703 = vrcp.f32 %v2791_v26 }
 0x453   : > { %v2788_v21 = vpop.xlane.xlu1 %2787 }
 0x454   : > { %6705 = vrcp.f32 %v2788_v21  ;;  %v2797_v38 = vpop.xlane.xlu0 %2796 }
 0x455   : > { %6707 = vrcp.f32 %v2797_v38 }
 0x457   : > { %v2794_v27 = vpop.xlane.xlu1 %2793 }
 0x458   : > { %6709 = vrcp.f32 %v2794_v27  ;;  %v2803_v55 = vpop.xlane.xlu0 %2802  ;;  %v4185_v27 = vsel %vm2935_vm6, %v7771_v12, 0 }
 0x459   : > { %6711 = vrcp.f32 %v2803_v55  ;;  %v8542_v55 = vld [vmem:[#allocation17_spill] sm:$0xff] }
 0x45b   : > { %v6704_v25 = vpop.eup %6703 }
 0x45c   : > { %v2883_v8 = vmul.f32 %v6704_v25, %v7782_v49  ;;  %v4233_v25 = vsel %vm2935_vm6, %v8542_v55, 0 }
 0x45e   : > { %v2915_v5 = vpack.c.bf16 %v2883_v8, %v2883_v8  ;;  %v6706_v53 = vpop.eup %6705 }
 0x45f   : > { %v6708_v59 = vpop.eup %6707  ;;  %v2882_v31 = vmul.f32 %v6706_v53, %v7787_v52 }
 0x460   : > { %6332 = vmatmul.mubr.msk.bf16.vlgmr.msra.gmra.mrb[108].mxu1 %vm913_vm4, %v2915_v5  ;;  %v2809_v6 = vpop.xlane.xlu0 %2808  ;;  %v2885_v14 = vmul.f32 %v6708_v59, %v7789_v61 }
 0x461   : > { %6342 = vmatpush3.bf16.msra.mxu1 %v3849_v37  ;;  %6343 = vmatprep.mubr.msk.bf16.mxu1 %vm6774_vm3, %v8530_v4  ;;  %v2914_v36 = vpack.c.bf16 %v2882_v31, %v2882_v31  ;;  %6713 = vrcp.f32 %v2809_v6 }
 0x462   : > { %6353 = vmatprep.subr.bf16.mxu1 %v8530_v4  ;;  %v6710_v49 = vpop.eup %6709  ;;  %v2917_v10 = vpack.c.bf16 %v2885_v14, %v2885_v14 }
 0x463   : > { %6326 = vmatmul.mubr.msk.bf16.vlgmr.msra.gmra.mrb[92].mxu0 %vm913_vm4, %v2914_v36  ;;  %v2800_v52 = vpop.xlane.xlu1 %2799  ;;  %v2884_v13 = vmul.f32 %v6710_v49, %v7796_v60  ;;  %v6712_v61 = vpop.eup %6711  ;;  %v3897_v60 = vsel %vm2935_vm6, %v8538_v54, 0 }
 0x464   : > { %6336 = vmatpush3.bf16.msra.mxu0 %v3801_v28  ;;  %6715 = vrcp.f32 %v2800_v52  ;;  %6337 = vmatprep.mubr.msk.bf16.mxu0 %vm6774_vm3, %v8530_v4  ;;  %v2887_v7 = vmul.f32 %v6712_v61, %v7798_v15  ;;  %v8539_v15 = vld [vmem:[#allocation12_spill] sm:$0xff] }
 0x465   : > { %6347 = vmatprep.subr.bf16.mxu0 %v8530_v4  ;;  %v2916_v56 = vpack.c.bf16 %v2884_v13, %v2884_v13  ;;  %v4041_v29 = vsel %vm2935_vm6, %v8539_v15, 0 }
 0x466   : > { %v2919_v11 = vpack.c.bf16 %v2887_v7, %v2887_v7 }
 0x468   : > { %6344 = vmatmul.mubr.msk.bf16.vlgmr.msra.gmra.mrb[112].mxu1 %vm913_vm4, %v2917_v10 }
 0x469   : > { %6354 = vmatpush3.bf16.msra.mxu1 %v3945_v9  ;;  %6355 = vmatprep.mubr.msk.bf16.mxu1 %vm6774_vm3, %v8530_v4 }
 0x46a   : > { %6365 = vmatprep.subr.bf16.mxu1 %v8530_v4 }
 0x46b   : > { %6338 = vmatmul.mubr.msk.bf16.vlgmr.msra.gmra.mrb[96].mxu0 %vm913_vm4, %v2916_v56  ;;  %v2806_v18 = vpop.xlane.xlu1 %2805  ;;  %v6714_v47 = vpop.eup %6713 }
 0x46c   : > { %6348 = vmatpush3.bf16.msra.mxu0 %v3897_v60  ;;  %6717 = vrcp.f32 %v2806_v18  ;;  %6349 = vmatprep.mubr.msk.bf16.mxu0 %vm6774_vm3, %v8530_v4  ;;  %v2889_v42 = vmul.f32 %v6714_v47, %v7807_v62 }
 0x46d   : > { %6359 = vmatprep.subr.bf16.mxu0 %v8530_v4 }
 0x46e   : > { %v6716_v3 = vpop.eup %6715 }
 0x46f   : > { %v2886_v34 = vmul.f32 %v6716_v3, %v7822_v30  ;;  %v2921_v30 = vpack.c.bf16 %v2889_v42, %v2889_v42 }
 0x470   : > { %6356 = vmatmul.mubr.msk.bf16.vlgmr.msra.gmra.mrb[116].mxu1 %vm913_vm4, %v2919_v11 }
 0x471   : > { %6366 = vmatpush3.bf16.msra.mxu1 %v4041_v29  ;;  %6367 = vmatprep.mubr.msk.bf16.mxu1 %vm6774_vm3, %v8530_v4  ;;  %v2918_v32 = vpack.c.bf16 %v2886_v34, %v2886_v34 }
 0x472   : > { %6377 = vmatprep.subr.bf16.mxu1 %v8530_v4 }
 0x473   : > { %6350 = vmatmul.mubr.msk.bf16.vlgmr.msra.gmra.mrb[100].mxu0 %vm913_vm4, %v2918_v32 }
 0x474   : > { %6360 = vmatpush3.bf16.msra.mxu0 %v3993_v2  ;;  %6361 = vmatprep.mubr.msk.bf16.mxu0 %vm6774_vm3, %v8530_v4 }
 0x475   : > { %6371 = vmatprep.subr.bf16.mxu0 %v8530_v4 }
 0x476   : > { %v6718_v35 = vpop.eup %6717 }
 0x477   : > { %v2888_v62 = vmul.f32 %v6718_v35, %v7841_v40 }
 0x478   : > { %6368 = vmatmul.mubr.msk.bf16.vlgmr.msra.gmra.mrb[120].mxu1 %vm913_vm4, %v2921_v30 }
 0x479   : > { %6378 = vmatpush3.bf16.msra.mxu1 %v4137_v0  ;;  %6379 = vmatprep.mubr.msk.bf16.mxu1 %vm6774_vm3, %v8530_v4  ;;  %v2920_v43 = vpack.c.bf16 %v2888_v62, %v2888_v62 }
 0x47a   : > { %6389 = vmatprep.subr.bf16.mxu1 %v8530_v4 }
 0x47b   : > { %6362 = vmatmul.mubr.msk.bf16.vlgmr.msra.gmra.mrb[104].mxu0 %vm913_vm4, %v2920_v43 }
 0x47c   : > { %6372 = vmatpush3.bf16.msra.mxu0 %v4089_v20  ;;  %6373 = vmatprep.mubr.msk.bf16.mxu0 %vm6774_vm3, %v8530_v4 }
 0x47d   : > { %6383 = vmatprep.subr.bf16.mxu0 %v8530_v4 }
 0x47e   : > { %v2812_v17 = vpop.xlane.xlu1 %2811 }
 0x47f   : > { %6719 = vrcp.f32 %v2812_v17  ;;  %v2815_v40 = vpop.xlane.xlu0 %2814 }
 0x480   : > { %6721 = vrcp.f32 %v2815_v40 }
 0x486   : > { %v2818_v58 = vpop.xlane.xlu1 %2817 }
 0x487   : > { %6723 = vrcp.f32 %v2818_v58  ;;  %v2821_v16 = vpop.xlane.xlu0 %2820 }
 0x488   : > { %6725 = vrcp.f32 %v2821_v16 }
 0x489   : > { %v6720_v33 = vpop.eup %6719 }
 0x48a   : > { %v6722_v63 = vpop.eup %6721  ;;  %v2890_v22 = vmul.f32 %v6720_v33, %v7863_v57  ;;  %v4324_v53 = vpop.permute.xlu1 %4323 }
 0x48b   : > { %v2891_v26 = vmul.f32 %v6722_v63, %v7865_v45  ;;  %v4276_v5 = vpop.permute.xlu0 %4275  ;;  %v4329_v31 = vsel %vm2935_vm6, %v4324_v53, 0  ;;  %v5812_v53 = vld [vmem:[%s8543_s19 + $0x4] sm:$0xf] }
 0x48c   : > { %v2922_v21 = vpack.c.bf16 %v2890_v22, %v2890_v22  ;;  %v4281_v37 = vsel %vm2935_vm6, %v4276_v5, 0 }
 0x48d   : > { %v2923_v38 = vpack.c.bf16 %v2891_v26, %v2891_v26 }
 0x48e   : > { %6374 = vmatmul.mubr.msk.bf16.vlgmr.msra.gmra.mrb[108].mxu0 %vm913_vm4, %v2922_v21 }
 0x48f   : > { %6380 = vmatmul.mubr.msk.bf16.vlgmr.msra.gmra.mrb[124].mxu1 %vm913_vm4, %v2923_v38  ;;  %6384 = vmatpush3.bf16.msra.mxu0 %v4185_v27  ;;  %v4472_v38 = vld [vmem:[%s8543_s19] sm:$0xf] }
 0x490   : > { %6390 = vmatpush3.bf16.msra.mxu1 %v4233_v25  ;;  %6385 = vmatprep.mubr.msk.bf16.mxu0 %vm6774_vm3, %v8530_v4  ;;  %v4486_v5 = vsel %vm2935_vm6, %v4472_v38, 0 }
 0x491   : > { %v6724_v57 = vpop.eup %6723  ;;  %6391 = vmatprep.mubr.msk.bf16.mxu1 %vm6774_vm3, %v8530_v4  ;;  %6395 = vmatprep.subr.bf16.mxu0 %v8530_v4 }
 0x492   : > { %v6726_v45 = vpop.eup %6725  ;;  %v2892_v12 = vmul.f32 %v6724_v57, %v7875_v39  ;;  %6401 = vmatprep.subr.bf16.mxu1 %v8530_v4 }
 0x493   : > { %v2893_v8 = vmul.f32 %v6726_v45, %v7879_v48 }
 0x494   : > { %v2924_v59 = vpack.c.bf16 %v2892_v12, %v2892_v12 }
 0x495   : > { %v2925_v51 = vpack.c.bf16 %v2893_v8, %v2893_v8 }
 0x496   : > { %6386 = vmatmul.mubr.msk.bf16.vlgmr.msra.gmra.mrb[112].mxu0 %vm913_vm4, %v2924_v59 }
 0x497   : > { %6392 = vmatmul.mubr.msk.bf16.vlgmr.msra.gmra.mrb[128].mxu1 %vm913_vm4, %v2925_v51  ;;  %6396 = vmatpush3.bf16.msra.mxu0 %v4281_v37  ;;  %v5817_v51 = vld [vmem:[%s8543_s19 + $0x8] sm:$0xf] }
 0x498   : > { %6402 = vmatpush3.bf16.msra.mxu1 %v4329_v31  ;;  %6397 = vmatprep.mubr.msk.bf16.mxu0 %vm6774_vm3, %v8530_v4 }
 0x499   : > { %6403 = vmatprep.mubr.msk.bf16.mxu1 %vm6774_vm3, %v8530_v4  ;;  %6407 = vmatprep.subr.bf16.mxu0 %v8530_v4 }
 0x49a   : > { %6413 = vmatprep.subr.bf16.mxu1 %v8530_v4 }
 0x4a2   : > { %v8065_v39 = vpop.f32.mrb[76].mxu1 }
 0x4a3   : > { %v6237_v48 = vpop.f32.mrb[77].mxu1 }
 0x4a4   : > { %v8067_v6 = vpop.f32.mrb[60].mxu0  ;;  %v3024_v14 = vpop.f32.mrb[78].mxu1 }
 0x4a5   : > { %v4468_v36 = vpack.c.bf16 %v8065_v39, %v8067_v6  ;;  %v6231_v49 = vpop.f32.mrb[61].mxu0  ;;  %v6238_v24 = vpop.f32.mrb[79].mxu1 }
 0x4a6   : > { %v2976_v28 = vpop.f32.mrb[62].mxu0 }
 0x4a7   : > { %v6232_v52 = vpop.f32.mrb[63].mxu0 }
 0x4aa   : > { %v8071_v13 = vpop.f32.mrb[80].mxu1 }
 0x4ab   : > { %v6249_v10 = vpop.f32.mrb[81].mxu1 }
 0x4ac   : > { %v8073_v61 = vpop.f32.mrb[64].mxu0  ;;  %v3120_v44 = vpop.f32.mrb[82].mxu1 }
 0x4ad   : > { %v4469_v9 = vpack.c.bf16 %v8071_v13, %v8073_v61  ;;  %v6243_v7 = vpop.f32.mrb[65].mxu0  ;;  %v6250_v56 = vpop.f32.mrb[83].mxu1 }
 0x4ae   : > { %v3072_v54 = vpop.f32.mrb[66].mxu0 }
 0x4af   : > { %v6244_v60 = vpop.f32.mrb[67].mxu0  ;;  %v5822_v54 = vld [vmem:[%s8543_s19 + $0xc] sm:$0xf] }
 0x4b4   : > { %v3165_v18 = vpop.f32.mrb[68].mxu0 }
 0x4b5   : > { %v6255_v47 = vpop.f32.mrb[69].mxu0 }
 0x4b6   : > { %v3168_v11 = vpop.f32.mrb[70].mxu0 }
 0x4b7   : > { %v6256_v3 = vpop.f32.mrb[71].mxu0 }
 0x4bb   : > { %v2824_v15 = vpop.xlane.xlu1 %2823 }
 0x4bc   : > { %6727 = vrcp.f32 %v2824_v15  ;;  %v2827_v29 = vpop.xlane.xlu0 %2826  ;;  %v3261_v34 = vpop.f32.mrb[72].mxu0 }
 0x4bd   : > { %6729 = vrcp.f32 %v2827_v29  ;;  %v6267_v42 = vpop.f32.mrb[73].mxu0 }
 0x4be   : > { %v3264_v32 = vpop.f32.mrb[74].mxu0 }
 0x4bf   : > { %v2830_v23 = vpop.xlane.xlu1 %2829  ;;  %v6268_v2 = vpop.f32.mrb[75].mxu0 }
 0x4c0   : > { %6731 = vrcp.f32 %v2830_v23  ;;  %v2833_v30 = vpop.xlane.xlu0 %2832 }
 0x4c1   : > { %6733 = vrcp.f32 %v2833_v30 }
 0x4c3   : > { %v4420_v20 = vpop.permute.xlu1 %4419 }
 0x4c4   : > { %v4372_v41 = vpop.permute.xlu0 %4371  ;;  %v4425_v27 = vsel %vm2935_vm6, %v4420_v20, 0 }
 0x4c5   : > { %v4377_v26 = vsel %vm2935_vm6, %v4372_v41, 0 }
 0x4c6   : > { %v6728_v35 = vpop.eup %6727 }
 0x4c7   : > { %v6730_v0 = vpop.eup %6729  ;;  %v2894_v62 = vmul.f32 %v6728_v35, %v7951_v19 }
 0x4c8   : > { %v2895_v43 = vmul.f32 %v6730_v0, %v7956_v1 }
 0x4c9   : > { %v3213_v17 = vpop.f32.mrb[84].mxu1  ;;  %v2926_v40 = vpack.c.bf16 %v2894_v62, %v2894_v62 }
 0x4ca   : > { %v6732_v58 = vpop.eup %6731  ;;  %v4470_v16 = vpack.c.bf16 %v3213_v17, %v3165_v18  ;;  %v6261_v33 = vpop.f32.mrb[85].mxu1  ;;  %v2927_v63 = vpack.c.bf16 %v2895_v43, %v2895_v43 }
 0x4cb   : > { %v6734_v22 = vpop.eup %6733  ;;  %v3216_v21 = vpop.f32.mrb[86].mxu1  ;;  %6398 = vmatmul.mubr.msk.bf16.vlgmr.msra.gmra.mrb[116].mxu0 %vm913_vm4, %v2926_v40  ;;  %v2896_v1 = vmul.f32 %v6732_v58, %v7968_v46 }
 0x4cc   : > { %v6262_v19 = vpop.f32.mrb[87].mxu1  ;;  %6404 = vmatmul.mubr.msk.bf16.vlgmr.msra.gmra.mrb[132].mxu1 %vm913_vm4, %v2927_v63  ;;  %6408 = vmatpush3.bf16.msra.mxu0 %v4377_v26  ;;  %v2897_v55 = vmul.f32 %v6734_v22, %v7973_v50  ;;  %v4586_v50 = vsel %vm2935_vm6, %v5812_v53, 0 }
 0x4cd   : > { %6414 = vmatpush3.bf16.msra.mxu1 %v4425_v27  ;;  %6409 = vmatprep.mubr.msk.bf16.mxu0 %vm6774_vm3, %v8530_v4  ;;  %v2928_v57 = vpack.c.bf16 %v2896_v1, %v2896_v1 }
 0x4ce   : > { %6415 = vmatprep.mubr.msk.bf16.mxu1 %vm6774_vm3, %v8530_v4  ;;  %6519 = vmatprep.subr.msk.bf16.mxu0 %vm2935_vm6, %v4472_v38  ;;  %v2929_v8 = vpack.c.bf16 %v2897_v55, %v2897_v55 }
 0x4d1   : > { %v3309_v25 = vpop.f32.mrb[88].mxu1 }
 0x4d2   : > { %v4471_v45 = vpack.c.bf16 %v3309_v25, %v3261_v34  ;;  %v6273_v12 = vpop.f32.mrb[89].mxu1 }
 0x4d3   : > { %v3312_v46 = vpop.f32.mrb[90].mxu1  ;;  %6410 = vmatmul.mubr.msk.bf16.vlgmr.msra.gmra.mrb[120].mxu0 %vm913_vm4, %v2928_v57 }
 0x4d4   : > { %v6274_v59 = vpop.f32.mrb[91].mxu1  ;;  %6416 = vmatmul.mubr.msk.bf16.vlgmr.msra.gmra.mrb[136].mxu1 %vm913_vm4, %v2929_v8  ;;  %6421 = vmatprep.mubr.msk.bf16.mxu0 %vm913_vm4, %v4468_v36 }
 0x4d5   : > { %6420 = vmatpush3.bf16.msra.mxu0 %v4486_v5 }
 0x4d6   : > { %6520 = vmatprep.subr.msk.bf16.mxu0 %vm2935_vm6, %v5812_v53 }
 0x4db   : > { %6422 = vmatmul.mubr.msk.bf16.vlgmr.msra.gmra.mrb[124].mxu0 %vm913_vm4, %v4469_v9  ;;  %v4680_v9 = vsel %vm2935_vm6, %v5817_v51, 0 }
 0x4dc   : > { %6425 = vmatprep.mubr.msk.bf16.mxu0 %vm913_vm4, %v4470_v16  ;;  %6430 = vmatpush3.bf16.msra.mxu0 %v4586_v50 }
 0x4dd   : > { %6521 = vmatprep.subr.msk.bf16.mxu0 %vm2935_vm6, %v5817_v51 }
 0x4e3   : > { %6426 = vmatmul.mubr.msk.bf16.gmra.mrb[128].mxu0 %vm913_vm4, %v4471_v45  ;;  %v4774_v45 = vsel %vm2935_vm6, %v5822_v54, 0 }
 0x4e4   : > { %v3357_v37 = vpop.f32.mrb[76].mxu0 }
 0x4e5   : > { %v3405_v31 = vpop.f32.mrb[92].mxu1  ;;  %v6279_v39 = vpop.f32.mrb[77].mxu0 }
 0x4e6   : > { %v4567_v48 = vpack.c.bf16 %v3405_v31, %v3357_v37  ;;  %v6285_v6 = vpop.f32.mrb[93].mxu1  ;;  %v3360_v14 = vpop.f32.mrb[78].mxu0 }
 0x4e7   : > { %v3408_v36 = vpop.f32.mrb[94].mxu1  ;;  %v6280_v49 = vpop.f32.mrb[79].mxu0 }
 0x4e8   : > { %v6286_v24 = vpop.f32.mrb[95].mxu1  ;;  %6431 = vmatprep.mubr.msk.bf16.mxu0 %vm913_vm4, %v4567_v48 }
 0x4ed   : > { %v3453_v28 = vpop.f32.mrb[80].mxu0 }
 0x4ee   : > { %v3501_v52 = vpop.f32.mrb[96].mxu1  ;;  %v6291_v13 = vpop.f32.mrb[81].mxu0 }
 0x4ef   : > { %v4568_v10 = vpack.c.bf16 %v3501_v52, %v3453_v28  ;;  %v6297_v61 = vpop.f32.mrb[97].mxu1  ;;  %v3456_v44 = vpop.f32.mrb[82].mxu0 }
 0x4f0   : > { %v3504_v7 = vpop.f32.mrb[98].mxu1  ;;  %v6292_v56 = vpop.f32.mrb[83].mxu0 }
 0x4f1   : > { %v6298_v60 = vpop.f32.mrb[99].mxu1  ;;  %6432 = vmatmul.mubr.msk.bf16.vlgmr.msra.gmra.mrb[124].mxu0 %vm913_vm4, %v4568_v10 }
 0x4f2   : > { %6440 = vmatpush3.bf16.msra.mxu0 %v4680_v9 }
 0x4f3   : > { %6522 = vmatprep.subr.msk.bf16.mxu0 %vm2935_vm6, %v5822_v54 }
 0x4f5   : > { %v3549_v18 = vpop.f32.mrb[84].mxu0 }
 0x4f6   : > { %v3597_v47 = vpop.f32.mrb[100].mxu1  ;;  %v6303_v11 = vpop.f32.mrb[85].mxu0 }
 0x4f7   : > { %v4569_v3 = vpack.c.bf16 %v3597_v47, %v3549_v18  ;;  %v6309_v15 = vpop.f32.mrb[101].mxu1  ;;  %v3552_v29 = vpop.f32.mrb[86].mxu0 }
 0x4f8   : > { %v3600_v34 = vpop.f32.mrb[102].mxu1  ;;  %v6304_v42 = vpop.f32.mrb[87].mxu0 }
 0x4f9   : > { %v6310_v32 = vpop.f32.mrb[103].mxu1  ;;  %6435 = vmatprep.mubr.msk.bf16.mxu0 %vm913_vm4, %v4569_v3 }
 0x4fd   : > { %v3645_v23 = vpop.f32.mrb[88].mxu0 }
 0x4fe   : > { %v3693_v2 = vpop.f32.mrb[104].mxu1  ;;  %v6315_v30 = vpop.f32.mrb[89].mxu0 }
 0x4ff   : > { %v4570_v35 = vpack.c.bf16 %v3693_v2, %v3645_v23  ;;  %v6321_v0 = vpop.f32.mrb[105].mxu1  ;;  %v3648_v62 = vpop.f32.mrb[90].mxu0 }
 0x500   : > { %v3696_v43 = vpop.f32.mrb[106].mxu1  ;;  %v6316_v41 = vpop.f32.mrb[91].mxu0 }
 0x501   : > { %v6322_v20 = vpop.f32.mrb[107].mxu1  ;;  %6436 = vmatmul.mubr.msk.bf16.gmra.mrb[128].mxu0 %vm913_vm4, %v4570_v35 }
 0x533   : > { %v3789_v17 = vpop.f32.mrb[108].mxu1 }
 0x534   : > { %v6333_v40 = vpop.f32.mrb[109].mxu1 }
 0x535   : > { %v3792_v58 = vpop.f32.mrb[110].mxu1 }
 0x536   : > { %v6334_v16 = vpop.f32.mrb[111].mxu1  ;;  %v3741_v33 = vpop.f32.mrb[92].mxu0 }
 0x537   : > { %v4661_v63 = vpack.c.bf16 %v3789_v17, %v3741_v33  ;;  %v6327_v22 = vpop.f32.mrb[93].mxu0 }
 0x538   : > { %v3744_v26 = vpop.f32.mrb[94].mxu0 }
 0x539   : > { %v6328_v21 = vpop.f32.mrb[95].mxu0  ;;  %6441 = vmatprep.mubr.msk.bf16.mxu0 %vm913_vm4, %v4661_v63 }
 0x53b   : > { %v3885_v38 = vpop.f32.mrb[112].mxu1 }
 0x53c   : > { %v6345_v27 = vpop.f32.mrb[113].mxu1 }
 0x53d   : > { %v3888_v19 = vpop.f32.mrb[114].mxu1  ;;  %v8544_v27 = vlaneseq }
 0x53e   : > { %v6346_v1 = vpop.f32.mrb[115].mxu1  ;;  %v3837_v55 = vpop.f32.mrb[96].mxu0 }
 0x53f   : > { %v4662_v25 = vpack.c.bf16 %v3885_v38, %v3837_v55  ;;  %v6339_v57 = vpop.f32.mrb[97].mxu0  ;;  %v4860_v19 = vshrl.u32 %v8544_v27, 7  ;;  %v8131_v1 = vld [vmem:[%s8545_s22] ss:$0 sm:$0xff] }
 0x540   : > { %v3840_v12 = vpop.f32.mrb[98].mxu0 }
 0x541   : > { %v6340_v8 = vpop.f32.mrb[99].mxu0  ;;  %6442 = vmatmul.mubr.msk.bf16.vlgmr.msra.gmra.mrb[124].mxu0 %vm913_vm4, %v4662_v25  ;;  %vm4861_vm7 = vcmp.lt.s32.totalorder %v4860_v19, 7 }
 0x542   : > { %6450 = vmatpush3.bf16.msra.mxu0 %v4774_v45  ;;  %v8135_v45 = vsel %vm4861_vm7, 1.0, %v8530_v4 }
 0x543   : > { %v3981_v5 = vpop.f32.mrb[116].mxu1 }
 0x544   : > { %v6357_v46 = vpop.f32.mrb[117].mxu1 }
 0x545   : > { %v3984_v53 = vpop.f32.mrb[118].mxu1 }
 0x546   : > { %v6358_v59 = vpop.f32.mrb[119].mxu1  ;;  %v3933_v50 = vpop.f32.mrb[100].mxu0 }
 0x547   : > { %v4663_v51 = vpack.c.bf16 %v3981_v5, %v3933_v50  ;;  %v6351_v37 = vpop.f32.mrb[101].mxu0  ;;  %v6755_v5 = vld [vmem:[#allocation2 + $0x10] sm:$0xff]  ;;  %v6756_v50 = vld [vmem:[#allocation2] sm:$0xff] }
 0x548   : > { %v3936_v31 = vpop.f32.mrb[102].mxu0 }
 0x549   : > { %v6352_v39 = vpop.f32.mrb[103].mxu0  ;;  %6445 = vmatprep.mubr.msk.bf16.mxu0 %vm913_vm4, %v4663_v51 }
 0x54a   : > { %v6757_v39 = vld [vmem:[#allocation2 + $0x18] sm:$0xff] }
 0x54b   : > { %v4077_v48 = vpop.f32.mrb[120].mxu1 }
 0x54c   : > { %v6369_v6 = vpop.f32.mrb[121].mxu1 }
 0x54d   : > { %v4080_v14 = vpop.f32.mrb[122].mxu1  ;;  %v6758_v6 = vld [vmem:[#allocation2 + $0x8] sm:$0xff] }
 0x54e   : > { %v6370_v36 = vpop.f32.mrb[123].mxu1  ;;  %v4029_v49 = vpop.f32.mrb[104].mxu0 }
 0x54f   : > { %v4664_v24 = vpack.c.bf16 %v4077_v48, %v4029_v49  ;;  %v6363_v28 = vpop.f32.mrb[105].mxu0 }
 0x550   : > { %v4032_v52 = vpop.f32.mrb[106].mxu0 }
 0x551   : > { %v6364_v13 = vpop.f32.mrb[107].mxu0  ;;  %6446 = vmatmul.mubr.msk.bf16.gmra.mrb[128].mxu0 %vm913_vm4, %v4664_v24 }
 0x561   : > { %v4125_v10 = vpop.f32.mrb[108].mxu0 }
 0x562   : > { %v4173_v61 = vpop.f32.mrb[124].mxu1  ;;  %v6375_v44 = vpop.f32.mrb[109].mxu0 }
 0x563   : > { %v4755_v9 = vpack.c.bf16 %v4173_v61, %v4125_v10  ;;  %v6381_v7 = vpop.f32.mrb[125].mxu1  ;;  %v4128_v56 = vpop.f32.mrb[110].mxu0 }
 0x564   : > { %v4176_v54 = vpop.f32.mrb[126].mxu1  ;;  %v6376_v60 = vpop.f32.mrb[111].mxu0 }
 0x565   : > { %v6382_v18 = vpop.f32.mrb[127].mxu1  ;;  %6451 = vmatprep.mubr.msk.bf16.mxu0 %vm913_vm4, %v4755_v9 }
 0x569   : > { %v4221_v47 = vpop.f32.mrb[112].mxu0 }
 0x56a   : > { %v4269_v11 = vpop.f32.mrb[128].mxu1  ;;  %v6387_v3 = vpop.f32.mrb[113].mxu0 }
 0x56b   : > { %v4756_v15 = vpack.c.bf16 %v4269_v11, %v4221_v47  ;;  %v6393_v29 = vpop.f32.mrb[129].mxu1  ;;  %v4224_v34 = vpop.f32.mrb[114].mxu0 }
 0x56c   : > { %v4272_v42 = vpop.f32.mrb[130].mxu1  ;;  %v6388_v32 = vpop.f32.mrb[115].mxu0 }
 0x56d   : > { %v6394_v23 = vpop.f32.mrb[131].mxu1  ;;  %6452 = vmatmul.mubr.msk.bf16.vlgmr.msra.gmra.mrb[124].mxu0 %vm913_vm4, %v4756_v15  ;;  %v6601_v42 = vld [vmem:[%s6893_s1] sm:$0xff]  }
 0x56e   : > { %6459 = vmatprep.subr.bf16.mxu1 %v6601_v42 }
 0x56f   : > { %6460 = vmatpush3.bf16.msra.mxu1 %v6601_v42 }
 0x59e   : > { %v4317_v2 = vpop.f32.mrb[116].mxu0 }
 0x59f   : > { %v4365_v30 = vpop.f32.mrb[132].mxu1  ;;  %v6399_v35 = vpop.f32.mrb[117].mxu0 }
 0x5a0   : > { %v4757_v0 = vpack.c.bf16 %v4365_v30, %v4317_v2  ;;  %v6405_v62 = vpop.f32.mrb[133].mxu1  ;;  %v4320_v43 = vpop.f32.mrb[118].mxu0  ;;  %v6602_v30 = vld [vmem:[%s6893_s1 + $0x8] sm:$0xff]  }
 0x5a1   : > { %v4368_v41 = vpop.f32.mrb[134].mxu1  ;;  %v6400_v20 = vpop.f32.mrb[119].mxu0  ;;  %6461 = vmatprep.subr.bf16.mxu1 %v6602_v30 }
 0x5a2   : > { %v6406_v17 = vpop.f32.mrb[135].mxu1  ;;  %6455 = vmatprep.mubr.msk.bf16.mxu0 %vm913_vm4, %v4757_v0  ;;  %6462 = vmatpush3.bf16.msra.mxu1 %v6602_v30 }
 0x5a6   : > { %v4413_v40 = vpop.f32.mrb[120].mxu0 }
 0x5a7   : > { %v4461_v58 = vpop.f32.mrb[136].mxu1  ;;  %v6411_v16 = vpop.f32.mrb[121].mxu0 }
 0x5a8   : > { %v4758_v33 = vpack.c.bf16 %v4461_v58, %v4413_v40  ;;  %v6417_v63 = vpop.f32.mrb[137].mxu1  ;;  %v4416_v22 = vpop.f32.mrb[122].mxu0 }
 0x5a9   : > { %v4464_v26 = vpop.f32.mrb[138].mxu1  ;;  %v6412_v21 = vpop.f32.mrb[123].mxu0 }
 0x5aa   : > { %v6418_v38 = vpop.f32.mrb[139].mxu1  ;;  %6456 = vmatmul.mubr.msk.bf16.gmra.mrb[128].mxu0 %vm913_vm4, %v4758_v33 }
 0x640   : > { %v6453_v55 = vpop.f32.mrb[124].mxu0 }
 0x641   : > { %v6487_v25 = vadd.f32 %v6453_v55, %v8131_v1  ;;  %v4810_v57 = vpop.f32.mrb[125].mxu0  ;;  %v6759_v55 = vld [vmem:[#allocation2 + $0x30] sm:$0xff] }
 0x642   : > { %v6488_v12 = vadd.f32 %v8131_v1, %v4810_v57  ;;  %v6454_v8 = vpop.f32.mrb[126].mxu0 }
 0x643   : > { %v8138_v46 = vadd.f32 %v6755_v5, %v6487_v25  ;;  %v6489_v53 = vadd.f32 %v6454_v8, %v8131_v1  ;;  %v4813_v59 = vpop.f32.mrb[127].mxu0  ;;  %v6760_v8 = vld [vmem:[#allocation2 + $0x20] sm:$0xff] }
 0x644   : > { %v8141_v51 = vadd.f32 %v6756_v50, %v6488_v12  ;;  %v6490_v37 = vadd.f32 %v8131_v1, %v4813_v59  ;;  %v6761_v50 = vld [vmem:[#allocation2 + $0x38] sm:$0xff] }
 0x645   : > { %v4866_v31 = vmul.f32 %v8135_v45, %v8138_v46  ;;  %v8146_v4 = vadd.f32 %v6757_v39, %v6489_v53  ;;  %v6762_v39 = vld [vmem:[#allocation2 + $0x28] sm:$0xff] }
 0x646   : > { %v4864_v48 = vmul.f32 %v8135_v45, %v8141_v51  ;;  %v8150_v14 = vadd.f32 %v6758_v6, %v6490_v37 }
 0x647   : > { %v4886_v36 = vsel %vm688_vm2, %v4866_v31, 0.0  ;;  %v4867_v49 = vmul.f32 %v8135_v45, %v8146_v4 }
 0x648   : > { %v4887_v24 = vrot.slane %v4886_v36, 4  ;;  %v4872_v28 = vsel %vm688_vm2, %v4864_v48, 0.0  ;;  %v4865_v52 = vmul.f32 %v8135_v45, %v8150_v14 }
 0x649   : > { %v4873_v13 = vrot.slane %v4872_v28, 4  ;;  %v4893_v10 = vsel %vm688_vm2, %v4867_v49, 0.0 }
 0x64a   : > { %v4888_v61 = vadd.f32 %v4887_v24, %v4886_v36  ;;  %v4894_v44 = vrot.slane %v4893_v10, 4  ;;  %v4879_v9 = vsel %vm688_vm2, %v4865_v52, 0.0 }
 0x64b   : > { %v4874_v7 = vadd.f32 %v4873_v13, %v4872_v28  ;;  %v4880_v56 = vrot.slane %v4879_v9, 4 }
 0x64c   : > { %v4889_v54 = vrot.slane %v4888_v61, 2  ;;  %v4895_v60 = vadd.f32 %v4894_v44, %v4893_v10 }
 0x64d   : > { %v4875_v18 = vrot.slane %v4874_v7, 2  ;;  %v4881_v47 = vadd.f32 %v4880_v56, %v4879_v9 }
 0x64e   : > { %v4890_v11 = vadd.f32 %v4889_v54, %v4888_v61  ;;  %v4896_v3 = vrot.slane %v4895_v60, 2 }
 0x64f   : > { %v4876_v15 = vadd.f32 %v4875_v18, %v4874_v7  ;;  %v4882_v29 = vrot.slane %v4881_v47, 2 }
 0x650   : > { %v4897_v34 = vadd.f32 %v4896_v3, %v4895_v60  ;;  %v4891_v32 = vrot.slane %v4890_v11, 1 }
 0x651   : > { %v4877_v23 = vrot.slane %v4876_v15, 1  ;;  %v4883_v2 = vadd.f32 %v4882_v29, %v4881_v47 }
 0x652   : > { %v4898_v0 = vrot.slane %v4897_v34, 1  ;;  %v4892_v43 = vadd.f32 %v4891_v32, %v4890_v11 }
 0x653   : > { %v4878_v35 = vadd.f32 %v4877_v23, %v4876_v15  ;;  %v4884_v62 = vrot.slane %v4883_v2, 1 }
 0x654   : > { %v4899_v17 = vadd.f32 %v4898_v0, %v4897_v34  ;;  %v4931_v16 = vsel %vm688_vm2, %v4892_v43, 0.0 }
 0x655   : > { %v4885_v41 = vadd.f32 %v4884_v62, %v4883_v2  ;;  %v4928_v20 = vsel %vm688_vm2, %v4878_v35, 0.0 }
 0x656   : > { %v4933_v63 = vsel %vm688_vm2, %v4899_v17, 0.0 }
 0x657   : > { %v4929_v40 = vsel %vm688_vm2, %v4885_v41, 0.0 }
 0x658   : > { %v4930_v58 = vadd.f32 %v4929_v40, %v4928_v20 }
 0x65a   : > { %v4932_v33 = vadd.f32 %v4931_v16, %v4930_v58 }
 0x65c   : > { %v4934_v22 = vadd.f32 %v4933_v63, %v4932_v33 }
 0x67d   : > { %v6457_v26 = vpop.f32.mrb[128].mxu0 }
 0x67e   : > { %v6491_v21 = vadd.f32 %v6457_v26, %v8131_v1  ;;  %v4826_v38 = vpop.f32.mrb[129].mxu0 }
 0x67f   : > { %v6492_v27 = vadd.f32 %v8131_v1, %v4826_v38  ;;  %v6458_v19 = vpop.f32.mrb[130].mxu0 }
 0x680   : > { %v4855_v25 = vadd.f32 %v6759_v55, %v6491_v21  ;;  %v6493_v57 = vadd.f32 %v6458_v19, %v8131_v1  ;;  %v4829_v12 = vpop.f32.mrb[131].mxu0 }
 0x681   : > { %v4853_v5 = vadd.f32 %v6760_v8, %v6492_v27  ;;  %v6494_v53 = vadd.f32 %v8131_v1, %v4829_v12 }
 0x682   : > { %v4870_v59 = vmul.f32 %v8135_v45, %v4855_v25  ;;  %v4856_v37 = vadd.f32 %v6761_v50, %v6493_v57 }
 0x683   : > { %v4868_v31 = vmul.f32 %v8135_v45, %v4853_v5  ;;  %v4854_v48 = vadd.f32 %v6762_v39, %v6494_v53 }
 0x684   : > { %v4914_v6 = vsel %vm688_vm2, %v4870_v59, 0.0  ;;  %v4871_v36 = vmul.f32 %v8135_v45, %v4856_v37 }
 0x685   : > { %v4915_v49 = vrot.slane %v4914_v6, 4  ;;  %v4900_v24 = vsel %vm688_vm2, %v4868_v31, 0.0  ;;  %v4869_v28 = vmul.f32 %v8135_v45, %v4854_v48 }
 0x686   : > { %v4901_v52 = vrot.slane %v4900_v24, 4  ;;  %v4921_v1 = vsel %vm688_vm2, %v4871_v36, 0.0 }
 0x687   : > { %v4916_v13 = vadd.f32 %v4915_v49, %v4914_v6  ;;  %v4922_v10 = vrot.slane %v4921_v1, 4  ;;  %v4907_v61 = vsel %vm688_vm2, %v4869_v28, 0.0 }
 0x688   : > { %v4902_v44 = vadd.f32 %v4901_v52, %v4900_v24  ;;  %v4908_v9 = vrot.slane %v4907_v61, 4 }
 0x689   : > { %v4917_v7 = vrot.slane %v4916_v13, 2  ;;  %v4923_v56 = vadd.f32 %v4922_v10, %v4921_v1 }
 0x68a   : > { %v4903_v54 = vrot.slane %v4902_v44, 2  ;;  %v4909_v60 = vadd.f32 %v4908_v9, %v4907_v61 }
 0x68b   : > { %v4918_v18 = vadd.f32 %v4917_v7, %v4916_v13  ;;  %v4924_v47 = vrot.slane %v4923_v56, 2 }
 0x68c   : > { %v4904_v11 = vadd.f32 %v4903_v54, %v4902_v44  ;;  %v4910_v3 = vrot.slane %v4909_v60, 2 }
 0x68d   : > { %v4925_v15 = vadd.f32 %v4924_v47, %v4923_v56  ;;  %v4919_v29 = vrot.slane %v4918_v18, 1 }
 0x68e   : > { %v4905_v34 = vrot.slane %v4904_v11, 1  ;;  %v4911_v42 = vadd.f32 %v4910_v3, %v4909_v60 }
 0x68f   : > { %v4926_v23 = vrot.slane %v4925_v15, 1  ;;  %v4920_v30 = vadd.f32 %v4919_v29, %v4918_v18 }
 0x690   : > { %v4906_v32 = vadd.f32 %v4905_v34, %v4904_v11  ;;  %v4912_v2 = vrot.slane %v4911_v42, 1 }
 0x691   : > { %v4927_v43 = vadd.f32 %v4926_v23, %v4925_v15  ;;  %v4939_v17 = vsel %vm688_vm2, %v4920_v30, 0.0 }
 0x692   : > { %v4935_v35 = vsel %vm688_vm2, %v4906_v32, 0.0  ;;  %v4913_v0 = vadd.f32 %v4912_v2, %v4911_v42 }
 0x693   : > { %v4936_v62 = vadd.f32 %v4935_v35, %v4934_v22  ;;  %v4941_v58 = vsel %vm688_vm2, %v4927_v43, 0.0 }
 0x694   : > { %v4937_v41 = vsel %vm688_vm2, %v4913_v0, 0.0 }
 0x695   : > { %v4938_v20 = vadd.f32 %v4937_v41, %v4936_v62 }
 0x697   : > { %v4940_v40 = vadd.f32 %v4939_v17, %v4938_v20 }
 0x699   : > { %v4942_v16 = vadd.f32 %v4941_v58, %v4940_v40 }
 0x69b   : > { %v4943_v33 = vmul.f32 0.017857144, %v4942_v16 }
 0x69d   : > { %v8183_v63 = vsub.f32 %v8141_v51, %v4943_v33  ;;  %v8186_v26 = vsub.f32 %v8150_v14, %v4943_v33  ;;  %v8189_v21 = vsub.f32 %v8138_v46, %v4943_v33  ;;  %v8192_v22 = vsub.f32 %v8146_v4, %v4943_v33 }
 0x69e   : > { %v8194_v38 = vsub.f32 %v4853_v5, %v4943_v33  ;;  %v8196_v27 = vsub.f32 %v4854_v48, %v4943_v33  ;;  %v8198_v19 = vsub.f32 %v4855_v25, %v4943_v33  ;;  %v8200_v55 = vsub.f32 %v4856_v37, %v4943_v33 }
 0x69f   : > { %v4952_v51 = vmul.f32 %v8183_v63, %v8183_v63  ;;  %v4953_v14 = vmul.f32 %v8186_v26, %v8186_v26  ;;  %v4954_v46 = vmul.f32 %v8189_v21, %v8189_v21  ;;  %v4955_v4 = vmul.f32 %v8192_v22, %v8192_v22 }
 0x6a0   : > { %v4956_v57 = vmul.f32 %v8194_v38, %v8194_v38  ;;  %v4957_v25 = vmul.f32 %v8196_v27, %v8196_v27  ;;  %v4958_v12 = vmul.f32 %v8198_v19, %v8198_v19  ;;  %v4959_v8 = vmul.f32 %v8200_v55, %v8200_v55 }
 0x6a1   : > { %v4960_v5 = vmul.f32 %v8135_v45, %v4952_v51  ;;  %v4961_v53 = vmul.f32 %v8135_v45, %v4953_v14  ;;  %v4962_v59 = vmul.f32 %v8135_v45, %v4954_v46  ;;  %v4963_v50 = vmul.f32 %v8135_v45, %v4955_v4 }
 0x6a2   : > { %v4964_v37 = vmul.f32 %v8135_v45, %v4956_v57  ;;  %v4965_v31 = vmul.f32 %v8135_v45, %v4957_v25  ;;  %v4966_v39 = vmul.f32 %v8135_v45, %v4958_v12  ;;  %v4967_v48 = vmul.f32 %v8135_v45, %v4959_v8 }
 0x6a3   : > { %v4968_v6 = vsel %vm688_vm2, %v4960_v5, 0.0  ;;  %v4975_v36 = vsel %vm688_vm2, %v4961_v53, 0.0  ;;  %v4982_v49 = vsel %vm688_vm2, %v4962_v59, 0.0  ;;  %v4989_v24 = vsel %vm688_vm2, %v4963_v50, 0.0 }
 0x6a4   : > { %v4969_v28 = vrot.slane %v4968_v6, 4  ;;  %v4976_v52 = vrot.slane %v4975_v36, 4  ;;  %v4983_v1 = vrot.slane %v4982_v49, 4  ;;  %v4990_v13 = vrot.slane %v4989_v24, 4 }
 0x6a5   : > { %v4996_v10 = vsel %vm688_vm2, %v4964_v37, 0.0  ;;  %v5003_v61 = vsel %vm688_vm2, %v4965_v31, 0.0  ;;  %v5010_v44 = vsel %vm688_vm2, %v4966_v39, 0.0  ;;  %v5017_v9 = vsel %vm688_vm2, %v4967_v48, 0.0 }
 0x6a6   : > { %v4970_v7 = vadd.f32 %v4969_v28, %v4968_v6  ;;  %v4977_v56 = vadd.f32 %v4976_v52, %v4975_v36  ;;  %v4984_v54 = vadd.f32 %v4983_v1, %v4982_v49  ;;  %v4991_v60 = vadd.f32 %v4990_v13, %v4989_v24 }
 0x6a7   : > { %v4997_v18 = vrot.slane %v4996_v10, 4  ;;  %v5004_v47 = vrot.slane %v5003_v61, 4  ;;  %v5011_v11 = vrot.slane %v5010_v44, 4  ;;  %v5018_v3 = vrot.slane %v5017_v9, 4 }
 0x6a8   : > { %v4971_v15 = vrot.slane %v4970_v7, 2  ;;  %v4978_v29 = vrot.slane %v4977_v56, 2  ;;  %v4985_v34 = vrot.slane %v4984_v54, 2  ;;  %v4992_v42 = vrot.slane %v4991_v60, 2 }
 0x6a9   : > { %v4998_v32 = vadd.f32 %v4997_v18, %v4996_v10  ;;  %v5005_v23 = vadd.f32 %v5004_v47, %v5003_v61  ;;  %v5012_v2 = vadd.f32 %v5011_v11, %v5010_v44  ;;  %v5019_v30 = vadd.f32 %v5018_v3, %v5017_v9  ;;  %v5828_v3 = vld [vmem:[%s8546_s25] ss:$0 sm:$0xff] }
 0x6aa   : > { %v4972_v35 = vadd.f32 %v4971_v15, %v4970_v7  ;;  %v4979_v0 = vadd.f32 %v4978_v29, %v4977_v56  ;;  %v4986_v62 = vadd.f32 %v4985_v34, %v4984_v54  ;;  %v4993_v43 = vadd.f32 %v4992_v42, %v4991_v60 }
 0x6ab   : > { %v4999_v41 = vrot.slane %v4998_v32, 2  ;;  %v5006_v20 = vrot.slane %v5005_v23, 2  ;;  %v5013_v17 = vrot.slane %v5012_v2, 2  ;;  %v5020_v46 = vrot.slane %v5019_v30, 2 }
 0x6ac   : > { %v4973_v40 = vrot.slane %v4972_v35, 1  ;;  %v4980_v58 = vrot.slane %v4979_v0, 1  ;;  %v4987_v16 = vrot.slane %v4986_v62, 1  ;;  %v4994_v33 = vrot.slane %v4993_v43, 1 }
 0x6ad   : > { %v5000_v51 = vadd.f32 %v4999_v41, %v4998_v32  ;;  %v5007_v14 = vadd.f32 %v5006_v20, %v5005_v23  ;;  %v5014_v8 = vadd.f32 %v5013_v17, %v5012_v2  ;;  %v5021_v37 = vadd.f32 %v5020_v46, %v5019_v30  ;;  %v5829_v32 = vld [vmem:[%s8547_s30] ss:$0 sm:$0xff] }
 0x6ae   : > { %v4974_v4 = vadd.f32 %v4973_v40, %v4972_v35  ;;  %v4981_v57 = vadd.f32 %v4980_v58, %v4979_v0  ;;  %v4988_v25 = vadd.f32 %v4987_v16, %v4986_v62  ;;  %v4995_v59 = vadd.f32 %v4994_v33, %v4993_v43  ;;  %v6603_v46 = vld [vmem:[%s6903_s23] sm:$0xff]  }
 0x6af   : > { %v5001_v12 = vrot.slane %v5000_v51, 1  ;;  %v5008_v50 = vrot.slane %v5007_v14, 1  ;;  %v5015_v48 = vrot.slane %v5014_v8, 1  ;;  %v5022_v24 = vrot.slane %v5021_v37, 1  ;;  %6471 = vmatprep.subr.bf16.mxu1 %v6603_v46 }
 0x6b0   : > { %v5024_v5 = vsel %vm688_vm2, %v4974_v4, 0.0  ;;  %v5025_v53 = vsel %vm688_vm2, %v4981_v57, 0.0  ;;  %v5027_v6 = vsel %vm688_vm2, %v4988_v25, 0.0  ;;  %v5029_v28 = vsel %vm688_vm2, %v4995_v59, 0.0  ;;  %v6604_v4 = vld [vmem:[%s6903_s23 + $0x8] sm:$0xff]   ;;  %v6605_v57 = vld [vmem:[%s6903_s23 + $0x10] sm:$0xff]  }
 0x6b1   : > { %v5026_v31 = vadd.f32 %v5025_v53, %v5024_v5  ;;  %v5002_v39 = vadd.f32 %v5001_v12, %v5000_v51  ;;  %v5009_v49 = vadd.f32 %v5008_v50, %v5007_v14  ;;  %v5016_v1 = vadd.f32 %v5015_v48, %v5014_v8  ;;  %v6606_v25 = vld [vmem:[%s6903_s23 + $0x18] sm:$0xff]   ;;  %v5830_v12 = vld [vmem:[%s583_s3] ss:$0 sm:$0xff] }
 0x6b2   : > { %v5023_v61 = vadd.f32 %v5022_v24, %v5021_v37 }
 0x6b3   : > { %v5028_v36 = vadd.f32 %v5027_v6, %v5026_v31  ;;  %v5031_v13 = vsel %vm688_vm2, %v5002_v39, 0.0  ;;  %v5033_v44 = vsel %vm688_vm2, %v5009_v49, 0.0  ;;  %v5035_v7 = vsel %vm688_vm2, %v5016_v1, 0.0 }
 0x6b4   : > { %v5037_v54 = vsel %vm688_vm2, %v5023_v61, 0.0 }
 0x6b5   : > { %v5030_v52 = vadd.f32 %v5029_v28, %v5028_v36 }
 0x6b7   : > { %v5032_v10 = vadd.f32 %v5031_v13, %v5030_v52 }
 0x6b9   : > { %v5034_v9 = vadd.f32 %v5033_v44, %v5032_v10 }
 0x6bb   : > { %v5036_v56 = vadd.f32 %v5035_v7, %v5034_v9 }
 0x6bd   : > { %v5038_v60 = vadd.f32 %v5037_v54, %v5036_v56 }
 0x6bf   : > { %v5039_v18 = vmul.f32 0.017857144, %v5038_v60 }
 0x6c1   : > { %v5040_v47 = vadd.f32 1e-05, %v5039_v18 }
 0x6c3   : > { %6735 = vrsqrt.f32 %v5040_v47 }
 0x6cd   : > { %v6736_v11 = vpop.eup %6735 }
 0x6ce   : > { %v5047_v15 = vmul.f32 %v6736_v11, %v8196_v27  ;;  %v5042_v29 = vmul.f32 %v6736_v11, %v8183_v63  ;;  %v5043_v34 = vmul.f32 %v6736_v11, %v8186_v26  ;;  %v5044_v42 = vmul.f32 %v6736_v11, %v8189_v21 }
 0x6cf   : > { %v5045_v23 = vmul.f32 %v6736_v11, %v8192_v22  ;;  %v5046_v2 = vmul.f32 %v6736_v11, %v8194_v38  ;;  %v5048_v30 = vmul.f32 %v6736_v11, %v8198_v19  ;;  %v5049_v35 = vmul.f32 %v6736_v11, %v8200_v55 }
 0x6d0   : > { %v5061_v27 = vmul.f32 %v5828_v3, %v5047_v15  ;;  %v5056_v0 = vmul.f32 %v5828_v3, %v5042_v29  ;;  %v5057_v63 = vmul.f32 %v5828_v3, %v5043_v34  ;;  %v5058_v62 = vmul.f32 %v5828_v3, %v5044_v42 }
 0x6d1   : > { %v5059_v26 = vmul.f32 %v5828_v3, %v5045_v23  ;;  %v5060_v43 = vmul.f32 %v5828_v3, %v5046_v2  ;;  %v5062_v40 = vmul.f32 %v5828_v3, %v5048_v30  ;;  %v5063_v58 = vmul.f32 %v5828_v3, %v5049_v35 }
 0x6d2   : > { %v8260_v21 = vadd.f32 %v5829_v32, %v5056_v0  ;;  %v8262_v41 = vadd.f32 %v5829_v32, %v5057_v63  ;;  %v8264_v20 = vadd.f32 %v5829_v32, %v5058_v62  ;;  %v8266_v22 = vadd.f32 %v5829_v32, %v5061_v27 }
 0x6d3   : > { %v8268_v38 = vadd.f32 %v5829_v32, %v5059_v26  ;;  %v8270_v19 = vadd.f32 %v5829_v32, %v5060_v43  ;;  %v8281_v33 = vadd.f32 %v5829_v32, %v5062_v40  ;;  %v8283_v51 = vadd.f32 %v5829_v32, %v5063_v58 }
 0x6d4   : > { %v5078_v55 = vpack.c.bf16 %v8262_v41, %v8260_v21 }
 0x6d5   : > { %v5079_v17 = vpack.c.bf16 %v8268_v38, %v8264_v20  ;;  %v5080_v16 = vpack.c.bf16 %v8266_v22, %v8270_v19  ;;  %v5081_v14 = vpack.c.bf16 %v8283_v51, %v8281_v33 }
 0x6d6   : > { %6463 = vmatprep.mubr.msk.bf16.mxu1 %vm688_vm2, %v5078_v55 }
 0x6d7   : > { %6464 = vmatmul.mubr.msk.bf16.vlgmr.msra.gmra.mrb[140].mxu1 %vm688_vm2, %v5079_v17 }
 0x6d8   : > { %6467 = vmatprep.mubr.msk.bf16.mxu1 %vm688_vm2, %v5080_v16  ;;  %6472 = vmatpush3.bf16.msra.mxu1 %v6603_v46 }
 0x6d9   : > { %6473 = vmatprep.subr.bf16.mxu1 %v6604_v4 }
 0x6dc   : > { %6474 = vmatpush3.bf16.msra.mxu1 %v6604_v4 }
 0x6dd   : > { %6475 = vmatprep.subr.bf16.mxu1 %v6605_v57 }
 0x6df   : > { %6468 = vmatmul.mubr.msk.bf16.gmra.mrb[144].mxu1 %vm688_vm2, %v5081_v14 }
 0x6e0   : > { %6476 = vmatpush3.bf16.msra.mxu1 %v6605_v57 }
 0x6e1   : > { %6477 = vmatprep.subr.bf16.mxu1 %v6606_v25 }
 0x6e4   : > { %6478 = vmatpush3.bf16.msra.mxu1 %v6606_v25 }
 0x7aa   : > { %v6465_v8 = vpop.f32.mrb[140].mxu1 }
 0x7ab   : > { %v5160_v5 = vadd.f32 %v6465_v8, %v5830_v12  ;;  %v5151_v53 = vpop.f32.mrb[141].mxu1 }
 0x7ac   : > { %v5152_v59 = vadd.f32 %v5830_v12, %v5151_v53  ;;  %v6466_v50 = vpop.f32.mrb[142].mxu1 }
 0x7ad   : > { %v5192_v37 = vmul.f32 0.70710677, %v5160_v5  ;;  %v5163_v31 = vadd.f32 %v6466_v50, %v5830_v12  ;;  %v5154_v39 = vpop.f32.mrb[143].mxu1  ;;  %v5184_v29 = vmul.f32 0.5, %v5160_v5 }
 0x7ae   : > { %v5190_v48 = vmul.f32 0.70710677, %v5152_v59  ;;  %v5155_v6 = vadd.f32 %v5830_v12, %v5154_v39  ;;  %v5182_v32 = vmul.f32 0.5, %v5152_v59 }
 0x7af   : > { %6737 = verf.f32 %v5192_v37  ;;  %v5193_v36 = vmul.f32 0.70710677, %v5163_v31  ;;  %v5185_v34 = vmul.f32 0.5, %v5163_v31  ;;  %v5837_v37 = vld [vmem:[%s591_s29] ss:$0 sm:$0xff] }
 0x7b0   : > { %6739 = verf.f32 %v5190_v48  ;;  %v5191_v49 = vmul.f32 0.70710677, %v5155_v6  ;;  %v5183_v23 = vmul.f32 0.5, %v5155_v6 }
 0x7b1   : > { %6741 = verf.f32 %v5193_v36 }
 0x7b2   : > { %6743 = verf.f32 %v5191_v49  ;;  %v6469_v24 = vpop.f32.mrb[144].mxu1 }
 0x7b3   : > { %v5176_v28 = vadd.f32 %v6469_v24, %v5830_v12  ;;  %v5167_v52 = vpop.f32.mrb[145].mxu1 }
 0x7b4   : > { %v5168_v1 = vadd.f32 %v5830_v12, %v5167_v52  ;;  %v6470_v13 = vpop.f32.mrb[146].mxu1 }
 0x7b5   : > { %v5196_v10 = vmul.f32 0.70710677, %v5176_v28  ;;  %v5179_v61 = vadd.f32 %v6470_v13, %v5830_v12  ;;  %v5170_v44 = vpop.f32.mrb[147].mxu1  ;;  %v5188_v16 = vmul.f32 0.5, %v5176_v28 }
 0x7b6   : > { %v5194_v9 = vmul.f32 0.70710677, %v5168_v1  ;;  %v5171_v7 = vadd.f32 %v5830_v12, %v5170_v44  ;;  %v5186_v4 = vmul.f32 0.5, %v5168_v1 }
 0x7b7   : > { %6745 = verf.f32 %v5196_v10  ;;  %v5197_v56 = vmul.f32 0.70710677, %v5179_v61  ;;  %v5189_v14 = vmul.f32 0.5, %v5179_v61 }
 0x7b8   : > { %6747 = verf.f32 %v5194_v9  ;;  %v5195_v54 = vmul.f32 0.70710677, %v5171_v7  ;;  %v5187_v57 = vmul.f32 0.5, %v5171_v7 }
 0x7b9   : > { %v6738_v60 = vpop.eup %6737  ;;  %6749 = verf.f32 %v5197_v56 }
 0x7ba   : > { %v6740_v18 = vpop.eup %6739  ;;  %v5208_v47 = vadd.f32 1.0, %v6738_v60  ;;  %6751 = verf.f32 %v5195_v54 }
 0x7bb   : > { %v6742_v11 = vpop.eup %6741  ;;  %v5206_v3 = vadd.f32 1.0, %v6740_v18 }
 0x7bc   : > { %v6744_v15 = vpop.eup %6743  ;;  %v5209_v42 = vadd.f32 1.0, %v6742_v11  ;;  %v5216_v30 = vmul.f32 %v5208_v47, %v5184_v29 }
 0x7bd   : > { %v5207_v2 = vadd.f32 1.0, %v6744_v15  ;;  %v5214_v27 = vmul.f32 %v5206_v3, %v5182_v32 }
 0x7be   : > { %v5217_v35 = vmul.f32 %v5209_v42, %v5185_v34 }
 0x7bf   : > { %v5215_v0 = vmul.f32 %v5207_v2, %v5183_v23 }
 0x7c0   : > { %v5223_v63 = vpack.c.bf16 %v5217_v35, %v5216_v30 }
 0x7c1   : > { %v6746_v62 = vpop.eup %6745  ;;  %v5222_v26 = vpack.c.bf16 %v5215_v0, %v5214_v27 }
 0x7c2   : > { %v6748_v43 = vpop.eup %6747  ;;  %v5212_v55 = vadd.f32 1.0, %v6746_v62 }
 0x7c3   : > { %v6750_v17 = vpop.eup %6749  ;;  %v5210_v40 = vadd.f32 1.0, %v6748_v43  ;;  %6479 = vmatprep.mubr.msk.bf16.mxu1 %vm5265_vm8, %v5222_v26 }
 0x7c4   : > { %v6752_v58 = vpop.eup %6751  ;;  %v5213_v46 = vadd.f32 1.0, %v6750_v17  ;;  %6480 = vmatmul.mubr.msk.bf16.vlgmr.msra.gmra.mrb[148].mxu1 %vm5265_vm8, %v5223_v63  ;;  %v5220_v12 = vmul.f32 %v5212_v55, %v5188_v16 }
 0x7c5   : > { %v5211_v25 = vadd.f32 1.0, %v6752_v58  ;;  %v5218_v5 = vmul.f32 %v5210_v40, %v5186_v4 }
 0x7c6   : > { %v5221_v8 = vmul.f32 %v5213_v46, %v5189_v14 }
 0x7c7   : > { %v5219_v53 = vmul.f32 %v5211_v25, %v5187_v57 }
 0x7c8   : > { %v5225_v59 = vpack.c.bf16 %v5221_v8, %v5220_v12 }
 0x7c9   : > { %v5224_v50 = vpack.c.bf16 %v5219_v53, %v5218_v5 }
 0x7cb   : > { %6483 = vmatprep.mubr.msk.bf16.mxu1 %vm5265_vm8, %v5224_v50 }
 0x7cc   : > { %6484 = vmatmul.mubr.msk.bf16.gmra.mrb[152].mxu1 %vm5265_vm8, %v5225_v59 }
 0x897   : > { %v6481_v31 = vpop.f32.mrb[148].mxu1 }
 0x898   : > { %v5321_v39 = vadd.f32 %v6481_v31, %v5837_v37  ;;  %v5312_v48 = vpop.f32.mrb[149].mxu1 }
 0x899   : > { %v5313_v6 = vadd.f32 %v5837_v37, %v5312_v48  ;;  %v6482_v36 = vpop.f32.mrb[150].mxu1 }
 0x89a   : > { %v8307_v49 = vadd.f32 %v5321_v39, %v8264_v20  ;;  %v5324_v24 = vadd.f32 %v6482_v36, %v5837_v37  ;;  %v5315_v28 = vpop.f32.mrb[151].mxu1 }
 0x89b   : > { %v8310_v52 = vadd.f32 %v5313_v6, %v8260_v21  ;;  %v5316_v1 = vadd.f32 %v5837_v37, %v5315_v28 }
 0x89c   : > { %v5355_v13 = vmul.f32 %v8135_v45, %v8307_v49  ;;  %v8315_v10 = vadd.f32 %v5324_v24, %v8268_v38 }
 0x89d   : > { %v5353_v61 = vmul.f32 %v8135_v45, %v8310_v52  ;;  %v8320_v44 = vadd.f32 %v5316_v1, %v8262_v41 }
 0x89e   : > { %v5375_v20 = vsel %vm688_vm2, %v5355_v13, 0.0  ;;  %v5356_v9 = vmul.f32 %v8135_v45, %v8315_v10 }
 0x89f   : > { %v5376_v21 = vrot.slane %v5375_v20, 4  ;;  %v5361_v7 = vsel %vm688_vm2, %v5353_v61, 0.0  ;;  %v5354_v56 = vmul.f32 %v8135_v45, %v8320_v44  ;;  %v6485_v54 = vpop.f32.mrb[152].mxu1 }
 0x8a0   : > { %v5362_v38 = vrot.slane %v5361_v7, 4  ;;  %v5382_v60 = vsel %vm688_vm2, %v5356_v9, 0.0  ;;  %v5337_v18 = vadd.f32 %v6485_v54, %v5837_v37  ;;  %v5328_v47 = vpop.f32.mrb[153].mxu1 }
 0x8a1   : > { %v5377_v11 = vadd.f32 %v5376_v21, %v5375_v20  ;;  %v5383_v41 = vrot.slane %v5382_v60, 4  ;;  %v5368_v3 = vsel %vm688_vm2, %v5354_v56, 0.0  ;;  %v5329_v15 = vadd.f32 %v5837_v37, %v5328_v47  ;;  %v6486_v29 = vpop.f32.mrb[154].mxu1 }
 0x8a2   : > { %v5363_v34 = vadd.f32 %v5362_v38, %v5361_v7  ;;  %v5369_v42 = vrot.slane %v5368_v3, 4  ;;  %v8331_v32 = vadd.f32 %v5337_v18, %v8281_v33  ;;  %v5340_v23 = vadd.f32 %v6486_v29, %v5837_v37  ;;  %v5331_v2 = vpop.f32.mrb[155].mxu1 }
 0x8a3   : > { %v5378_v30 = vrot.slane %v5377_v11, 2  ;;  %v5384_v35 = vadd.f32 %v5383_v41, %v5382_v60  ;;  %v8334_v27 = vadd.f32 %v5329_v15, %v8270_v19  ;;  %v5332_v0 = vadd.f32 %v5837_v37, %v5331_v2 }
 0x8a4   : > { %v5364_v63 = vrot.slane %v5363_v34, 2  ;;  %v5370_v62 = vadd.f32 %v5369_v42, %v5368_v3  ;;  %v5359_v26 = vmul.f32 %v8135_v45, %v8331_v32  ;;  %v8339_v43 = vadd.f32 %v5340_v23, %v8283_v51 }
 0x8a5   : > { %v5379_v55 = vadd.f32 %v5378_v30, %v5377_v11  ;;  %v5385_v17 = vrot.slane %v5384_v35, 2  ;;  %v5357_v33 = vmul.f32 %v8135_v45, %v8334_v27  ;;  %v8344_v40 = vadd.f32 %v5332_v0, %v8266_v22 }
 0x8a6   : > { %v5365_v58 = vadd.f32 %v5364_v63, %v5363_v34  ;;  %v5371_v19 = vrot.slane %v5370_v62, 2  ;;  %v5403_v16 = vsel %vm688_vm2, %v5359_v26, 0.0  ;;  %v5360_v14 = vmul.f32 %v8135_v45, %v8339_v43 }
 0x8a7   : > { %v5380_v46 = vrot.slane %v5379_v55, 1  ;;  %v5386_v4 = vadd.f32 %v5385_v17, %v5384_v35  ;;  %v5404_v57 = vrot.slane %v5403_v16, 4  ;;  %v5389_v51 = vsel %vm688_vm2, %v5357_v33, 0.0 }
 0x8a8   : > { %v5366_v25 = vrot.slane %v5365_v58, 1  ;;  %v5372_v12 = vadd.f32 %v5371_v19, %v5370_v62  ;;  %v5390_v8 = vrot.slane %v5389_v51, 4  ;;  %v5410_v5 = vsel %vm688_vm2, %v5360_v14, 0.0 }
 0x8a9   : > { %v5387_v53 = vrot.slane %v5386_v4, 1  ;;  %v5405_v22 = vadd.f32 %v5404_v57, %v5403_v16  ;;  %v5411_v59 = vrot.slane %v5410_v5, 4  ;;  %v5358_v39 = vmul.f32 %v8135_v45, %v8344_v40 }
 0x8aa   : > { %v5367_v50 = vadd.f32 %v5366_v25, %v5365_v58  ;;  %v5373_v37 = vrot.slane %v5372_v12, 1  ;;  %v5391_v31 = vadd.f32 %v5390_v8, %v5389_v51  ;;  %v5381_v36 = vadd.f32 %v5380_v46, %v5379_v55 }
 0x8ab   : > { %v5406_v48 = vrot.slane %v5405_v22, 2  ;;  %v5412_v6 = vadd.f32 %v5411_v59, %v5410_v5  ;;  %v5396_v1 = vsel %vm688_vm2, %v5358_v39, 0.0  ;;  %v5388_v9 = vadd.f32 %v5387_v53, %v5386_v4 }
 0x8ac   : > { %v5374_v24 = vadd.f32 %v5373_v37, %v5372_v12  ;;  %v5392_v28 = vrot.slane %v5391_v31, 2  ;;  %v5397_v61 = vrot.slane %v5396_v1, 4  ;;  %v5417_v20 = vsel %vm688_vm2, %v5367_v50, 0.0 }
 0x8ad   : > { %v5413_v13 = vrot.slane %v5412_v6, 2  ;;  %v5407_v54 = vadd.f32 %v5406_v48, %v5405_v22  ;;  %v5420_v60 = vsel %vm688_vm2, %v5381_v36, 0.0  ;;  %v5422_v3 = vsel %vm688_vm2, %v5388_v9, 0.0 }
 0x8ae   : > { %v5418_v21 = vsel %vm688_vm2, %v5374_v24, 0.0  ;;  %v5393_v7 = vadd.f32 %v5392_v28, %v5391_v31  ;;  %v5398_v38 = vadd.f32 %v5397_v61, %v5396_v1 }
 0x8af   : > { %v5419_v56 = vadd.f32 %v5418_v21, %v5417_v20  ;;  %v5414_v11 = vadd.f32 %v5413_v13, %v5412_v6  ;;  %v5408_v29 = vrot.slane %v5407_v54, 1 }
 0x8b0   : > { %v5394_v18 = vrot.slane %v5393_v7, 1  ;;  %v5399_v41 = vrot.slane %v5398_v38, 2 }
 0x8b1   : > { %v5421_v47 = vadd.f32 %v5420_v60, %v5419_v56  ;;  %v5415_v30 = vrot.slane %v5414_v11, 1  ;;  %v5409_v0 = vadd.f32 %v5408_v29, %v5407_v54 }
 0x8b2   : > { %v5395_v15 = vadd.f32 %v5394_v18, %v5393_v7  ;;  %v5400_v42 = vadd.f32 %v5399_v41, %v5398_v38 }
 0x8b3   : > { %v5423_v34 = vadd.f32 %v5422_v3, %v5421_v47  ;;  %v5416_v62 = vadd.f32 %v5415_v30, %v5414_v11  ;;  %v5428_v17 = vsel %vm688_vm2, %v5409_v0, 0.0 }
 0x8b4   : > { %v5424_v23 = vsel %vm688_vm2, %v5395_v15, 0.0  ;;  %v5401_v35 = vrot.slane %v5400_v42, 1 }
 0x8b5   : > { %v5425_v2 = vadd.f32 %v5424_v23, %v5423_v34  ;;  %v5430_v58 = vsel %vm688_vm2, %v5416_v62, 0.0 }
 0x8b6   : > { %v5402_v63 = vadd.f32 %v5401_v35, %v5400_v42 }
 0x8b8   : > { %v5426_v26 = vsel %vm688_vm2, %v5402_v63, 0.0 }
 0x8b9   : > { %v5427_v55 = vadd.f32 %v5426_v26, %v5425_v2 }
 0x8bb   : > { %v5429_v33 = vadd.f32 %v5428_v17, %v5427_v55 }
 0x8bd   : > { %v5431_v19 = vadd.f32 %v5430_v58, %v5429_v33 }
 0x8bf   : > { %v5432_v16 = vmul.f32 0.017857144, %v5431_v19 }
 0x8c1   : > { %v8363_v14 = vsub.f32 %v8310_v52, %v5432_v16  ;;  %v8366_v46 = vsub.f32 %v8320_v44, %v5432_v16  ;;  %v8369_v4 = vsub.f32 %v8307_v49, %v5432_v16  ;;  %v8372_v57 = vsub.f32 %v8315_v10, %v5432_v16 }
 0x8c2   : > { %v8375_v51 = vsub.f32 %v8334_v27, %v5432_v16  ;;  %v8378_v25 = vsub.f32 %v8344_v40, %v5432_v16  ;;  %v8381_v12 = vsub.f32 %v8331_v32, %v5432_v16  ;;  %v8384_v52 = vsub.f32 %v8339_v43, %v5432_v16 }
 0x8c3   : > { %v5441_v44 = vmul.f32 %v8363_v14, %v8363_v14  ;;  %v5442_v49 = vmul.f32 %v8366_v46, %v8366_v46  ;;  %v5443_v10 = vmul.f32 %v8369_v4, %v8369_v4  ;;  %v5444_v27 = vmul.f32 %v8372_v57, %v8372_v57 }
 0x8c4   : > { %v5445_v40 = vmul.f32 %v8375_v51, %v8375_v51  ;;  %v5446_v32 = vmul.f32 %v8378_v25, %v8378_v25  ;;  %v5447_v43 = vmul.f32 %v8381_v12, %v8381_v12  ;;  %v5448_v8 = vmul.f32 %v8384_v52, %v8384_v52 }
 0x8c5   : > { %v5449_v5 = vmul.f32 %v8135_v45, %v5441_v44  ;;  %v5450_v53 = vmul.f32 %v8135_v45, %v5442_v49  ;;  %v5451_v22 = vmul.f32 %v8135_v45, %v5443_v10  ;;  %v5452_v59 = vmul.f32 %v8135_v45, %v5444_v27 }
 0x8c6   : > { %v5453_v50 = vmul.f32 %v8135_v45, %v5445_v40  ;;  %v5454_v37 = vmul.f32 %v8135_v45, %v5446_v32  ;;  %v5455_v31 = vmul.f32 %v8135_v45, %v5447_v43  ;;  %v5456_v39 = vmul.f32 %v8135_v45, %v5448_v8 }
 0x8c7   : > { %v5457_v48 = vsel %vm688_vm2, %v5449_v5, 0.0  ;;  %v5464_v6 = vsel %vm688_vm2, %v5450_v53, 0.0  ;;  %v5471_v36 = vsel %vm688_vm2, %v5451_v22, 0.0  ;;  %v5478_v24 = vsel %vm688_vm2, %v5452_v59, 0.0 }
 0x8c8   : > { %v5458_v28 = vrot.slane %v5457_v48, 4  ;;  %v5465_v1 = vrot.slane %v5464_v6, 4  ;;  %v5472_v13 = vrot.slane %v5471_v36, 4  ;;  %v5479_v61 = vrot.slane %v5478_v24, 4 }
 0x8c9   : > { %v5485_v20 = vsel %vm688_vm2, %v5453_v50, 0.0  ;;  %v5492_v9 = vsel %vm688_vm2, %v5454_v37, 0.0  ;;  %v5499_v21 = vsel %vm688_vm2, %v5455_v31, 0.0  ;;  %v5506_v45 = vsel %vm688_vm2, %v5456_v39, 0.0 }
 0x8ca   : > { %v5459_v7 = vadd.f32 %v5458_v28, %v5457_v48  ;;  %v5466_v56 = vadd.f32 %v5465_v1, %v5464_v6  ;;  %v5473_v54 = vadd.f32 %v5472_v13, %v5471_v36  ;;  %v5480_v38 = vadd.f32 %v5479_v61, %v5478_v24 }
 0x8cb   : > { %v5486_v60 = vrot.slane %v5485_v20, 4  ;;  %v5493_v18 = vrot.slane %v5492_v9, 4  ;;  %v5500_v47 = vrot.slane %v5499_v21, 4  ;;  %v5507_v11 = vrot.slane %v5506_v45, 4 }
 0x8cc   : > { %v5460_v41 = vrot.slane %v5459_v7, 2  ;;  %v5467_v3 = vrot.slane %v5466_v56, 2  ;;  %v5474_v15 = vrot.slane %v5473_v54, 2  ;;  %v5481_v29 = vrot.slane %v5480_v38, 2 }
 0x8cd   : > { %v5487_v34 = vadd.f32 %v5486_v60, %v5485_v20  ;;  %v5494_v42 = vadd.f32 %v5493_v18, %v5492_v9  ;;  %v5501_v23 = vadd.f32 %v5500_v47, %v5499_v21  ;;  %v5508_v2 = vadd.f32 %v5507_v11, %v5506_v45  ;;  %v5846_v47 = vld [vmem:[%s594_s15] ss:$0 sm:$0xff]  ;;  %s8548_s15 = sld [smem:[#allocation20_spill]] (!%p5848_p5) }
 0x8ce   : > { %v5461_v30 = vadd.f32 %v5460_v41, %v5459_v7  ;;  %v5468_v35 = vadd.f32 %v5467_v3, %v5466_v56  ;;  %v5475_v0 = vadd.f32 %v5474_v15, %v5473_v54  ;;  %v5482_v63 = vadd.f32 %v5481_v29, %v5480_v38  ;;  %v5847_v29 = vld [vmem:[%s597_s13] ss:$0 sm:$0xff] }
 0x8cf   : > { %v5488_v62 = vrot.slane %v5487_v34, 2  ;;  %v5495_v26 = vrot.slane %v5494_v42, 2  ;;  %v5502_v55 = vrot.slane %v5501_v23, 2  ;;  %v5509_v49 = vrot.slane %v5508_v2, 2 }
 0x8d0   : > { %v5462_v17 = vrot.slane %v5461_v30, 1  ;;  %v5469_v33 = vrot.slane %v5468_v35, 1  ;;  %v5476_v58 = vrot.slane %v5475_v0, 1  ;;  %v5483_v19 = vrot.slane %v5482_v63, 1 }
 0x8d1   : > { %v5489_v16 = vadd.f32 %v5488_v62, %v5487_v34  ;;  %v5496_v44 = vadd.f32 %v5495_v26, %v5494_v42  ;;  %v5503_v43 = vadd.f32 %v5502_v55, %v5501_v23  ;;  %v5510_v59 = vadd.f32 %v5509_v49, %v5508_v2 }
 0x8d2   : > { %v5463_v10 = vadd.f32 %v5462_v17, %v5461_v30  ;;  %v5470_v27 = vadd.f32 %v5469_v33, %v5468_v35  ;;  %v5477_v40 = vadd.f32 %v5476_v58, %v5475_v0  ;;  %v5484_v53 = vadd.f32 %v5483_v19, %v5482_v63 }
 0x8d3   : > { %v5490_v32 = vrot.slane %v5489_v16, 1  ;;  %v5497_v22 = vrot.slane %v5496_v44, 1  ;;  %v5504_v31 = vrot.slane %v5503_v43, 1  ;;  %v5511_v36 = vrot.slane %v5510_v59, 1 }
 0x8d4   : > { %v5513_v8 = vsel %vm688_vm2, %v5463_v10, 0.0  ;;  %v5514_v5 = vsel %vm688_vm2, %v5470_v27, 0.0  ;;  %v5516_v39 = vsel %vm688_vm2, %v5477_v40, 0.0  ;;  %v5518_v24 = vsel %vm688_vm2, %v5484_v53, 0.0 }
 0x8d5   : > { %v5515_v50 = vadd.f32 %v5514_v5, %v5513_v8  ;;  %v5491_v37 = vadd.f32 %v5490_v32, %v5489_v16  ;;  %v5498_v6 = vadd.f32 %v5497_v22, %v5496_v44  ;;  %v5505_v1 = vadd.f32 %v5504_v31, %v5503_v43 }
 0x8d6   : > { %v5512_v20 = vadd.f32 %v5511_v36, %v5510_v59 }
 0x8d7   : > { %v5517_v48 = vadd.f32 %v5516_v39, %v5515_v50  ;;  %v5520_v13 = vsel %vm688_vm2, %v5491_v37, 0.0  ;;  %v5522_v9 = vsel %vm688_vm2, %v5498_v6, 0.0  ;;  %v5524_v45 = vsel %vm688_vm2, %v5505_v1, 0.0 }
 0x8d8   : > { %v5526_v56 = vsel %vm688_vm2, %v5512_v20, 0.0 }
 0x8d9   : > { %v5519_v28 = vadd.f32 %v5518_v24, %v5517_v48 }
 0x8db   : > { %v5521_v61 = vadd.f32 %v5520_v13, %v5519_v28 }
 0x8dd   : > { %v5523_v21 = vadd.f32 %v5522_v9, %v5521_v61 }
 0x8df   : > { %v5525_v7 = vadd.f32 %v5524_v45, %v5523_v21 }
 0x8e1   : > { %v5527_v54 = vadd.f32 %v5526_v56, %v5525_v7 }
 0x8e3   : > { %v5528_v38 = vmul.f32 0.017857144, %v5527_v54 }
 0x8e5   : > { %v5529_v60 = vadd.f32 1e-05, %v5528_v38 }
 0x8e7   : > { %6753 = vrsqrt.f32 %v5529_v60 }
 0x8f1   : > { %v6754_v18 = vpop.eup %6753 }
 0x8f2   : > { %v5531_v11 = vmul.f32 %v6754_v18, %v8363_v14  ;;  %v5532_v41 = vmul.f32 %v6754_v18, %v8366_v46  ;;  %v5533_v3 = vmul.f32 %v6754_v18, %v8369_v4  ;;  %v5534_v15 = vmul.f32 %v6754_v18, %v8372_v57 }
 0x8f3   : > { %v5535_v34 = vmul.f32 %v6754_v18, %v8375_v51  ;;  %v5536_v42 = vmul.f32 %v6754_v18, %v8378_v25  ;;  %v5537_v23 = vmul.f32 %v6754_v18, %v8381_v12  ;;  %v5538_v2 = vmul.f32 %v6754_v18, %v8384_v52 }
 0x8f4   : > { %v5545_v14 = vmul.f32 %v5846_v47, %v5531_v11  ;;  %v5546_v30 = vmul.f32 %v5846_v47, %v5532_v41  ;;  %v5547_v46 = vmul.f32 %v5846_v47, %v5533_v3  ;;  %v5548_v35 = vmul.f32 %v5846_v47, %v5534_v15 }
 0x8f5   : > { %v5549_v4 = vmul.f32 %v5846_v47, %v5535_v34  ;;  %v5550_v0 = vmul.f32 %v5846_v47, %v5536_v42  ;;  %v5551_v57 = vmul.f32 %v5846_v47, %v5537_v23  ;;  %v5552_v63 = vmul.f32 %v5846_v47, %v5538_v2  ;;  %5578 = sbr.rel (%p5848_p5) target bundleno = 2304 (0x900), region = 80 }
 0x8f6   : > { %v5559_v62 = vadd.f32 %v5847_v29, %v5545_v14  ;;  %v5560_v26 = vadd.f32 %v5847_v29, %v5546_v30  ;;  %v5561_v55 = vadd.f32 %v5847_v29, %v5547_v46  ;;  %v5562_v17 = vadd.f32 %v5847_v29, %v5548_v35 }
 0x8f7   : > { %v5563_v33 = vadd.f32 %v5847_v29, %v5549_v4  ;;  %v5564_v51 = vadd.f32 %v5847_v29, %v5550_v0  ;;  %v5565_v58 = vadd.f32 %v5847_v29, %v5551_v57  ;;  %v5566_v25 = vadd.f32 %v5847_v29, %v5552_v63 }
 0x8f8   : > { %5567 = vst.msk [vmem:[#allocation2] sm:$0xff] %vm688_vm2, %v5559_v62  ;;  %5568 = vst.msk [vmem:[#allocation2 + $0x8] sm:$0xff] %vm688_vm2, %v5560_v26 }
 0x8f9   : > { %5569 = vst.msk [vmem:[#allocation2 + $0x10] sm:$0xff] %vm688_vm2, %v5561_v55  ;;  %5570 = vst.msk [vmem:[#allocation2 + $0x18] sm:$0xff] %vm688_vm2, %v5562_v17 }
 0x8fa   : > { %5571 = vst.msk [vmem:[#allocation2 + $0x20] sm:$0xff] %vm688_vm2, %v5563_v33  ;;  %5572 = vst.msk [vmem:[#allocation2 + $0x28] sm:$0xff] %vm688_vm2, %v5564_v51 }
 0x8fb   : > { %5573 = vst.msk [vmem:[#allocation2 + $0x30] sm:$0xff] %vm688_vm2, %v5565_v58  ;;  %5574 = vst.msk [vmem:[#allocation2 + $0x38] sm:$0xff] %vm688_vm2, %v5566_v25 }
 0x8fc   : > { %5579 = vst.msk [vmem:[%s8548_s15] sm:$0xff] %vm688_vm2, %v5559_v62  ;;  %5580 = vst.msk [vmem:[%s8548_s15 + $0x8] sm:$0xff] %vm688_vm2, %v5560_v26 }
 0x8fd   : > { %5581 = vst.msk [vmem:[%s8548_s15 + $0x10] sm:$0xff] %vm688_vm2, %v5561_v55  ;;  %5582 = vst.msk [vmem:[%s8548_s15 + $0x18] sm:$0xff] %vm688_vm2, %v5562_v17 }
 0x8fe   : > { %5583 = vst.msk [vmem:[%s8548_s15 + $0x20] sm:$0xff] %vm688_vm2, %v5563_v33  ;;  %5584 = vst.msk [vmem:[%s8548_s15 + $0x28] sm:$0xff] %vm688_vm2, %v5564_v51 }
 0x8ff   : > { %5585 = vst.msk [vmem:[%s8548_s15 + $0x30] sm:$0xff] %vm688_vm2, %v5565_v58  ;;  %5586 = vst.msk [vmem:[%s8548_s15 + $0x38] sm:$0xff] %vm688_vm2, %v5566_v25 }
 0x900 PF: > { %s8549_s18 = sld [smem:[#allocation4_spill]] }
 0x906   : > { %s23_s25 = sadd.s32 1, %s8549_s18  }
 0x907   : > { %p20_p6 = scmp.ge.s32.totalorder %s23_s25, 4  }
 0x909   :  { %22 = sbr.rel (!%p20_p6) target bundleno = 4 (0x4), region = 142 }

</bundles_post_ra>
